<compile_context>
chip_gen: v7x
topology: tpu7x:2x2x1
jax: 0.10.0
libtpu: 0.0.40
codegen_flags: <defaults>
</compile_context>

<pallas_src>
import jax
import jax.numpy as jnp
from jax.experimental import pallas as pl


MXU_DTYPE = jnp.bfloat16   # MXU operand dtype (f32 accumulate). Set to jnp.float32 to disable.
POOL = 20                  # MaxPool1d(kernel_size=20, stride=20) from the torch model.


# ----------------------------------------------------------------------------
# Fused forward kernel factory (static dims captured in the closure)
# ----------------------------------------------------------------------------
def _ip_kernel(B, Lout, T, H, E):
    S = 2 * T        # GRU sequence length (x1 windows followed by x2 windows)

    def kernel(pat_ref, wc_ref, bc_ref,
               wi0f_ref, wh0f_ref, bi0f_ref, bn0f_ref,
               wi0b_ref, wh0b_ref, bi0b_ref, bn0b_ref,
               wi1ff_ref, wi1fb_ref, wh1f_ref, bi1f_ref, bn1f_ref,
               wi1bf_ref, wi1bb_ref, wh1b_ref, bi1b_ref, bn1b_ref,
               wo_ref, bo_ref,
               pred_ref, attn_ref):
        f32 = jnp.float32
        mxdt = wc_ref.dtype

        # ---- Conv1d(4->E, K, stride=1) + ReLU + MaxPool1d(20,20) ------------
        # One im2col matmul for both inputs and both batch rows.
        acc = jnp.dot(pat_ref[...].astype(mxdt), wc_ref[...],
                      preferred_element_type=f32)              # (2*B*Lout, E)
        acc = jnp.maximum(acc + bc_ref[...], 0.0)

        # Pool and gather rows straight into time-major (row = t*B + b) order.
        rows = []
        for s in range(S):
            i, t = (0, s) if s < T else (1, s - T)             # which input (x1/x2)
            for b in range(B):
                base = (i * B + b) * Lout + t * POOL
                rows.append(jnp.max(acc[base:base + POOL, :], axis=0, keepdims=True))
        x_flat = jnp.concatenate(rows, axis=0)                 # (S*B, E)

        # ---- fused-gate GRU direction (PyTorch gate order r, z, n) ----------
        def gru_dir(gx, wh, bn, reverse):
            # gx: (S*B, 3H) precomputed input projection (+ input-side biases)
            h = jnp.zeros((B, H), f32)
            outs = [None] * S
            steps = range(S - 1, -1, -1) if reverse else range(S)
            for t in steps:                                    # S static -> fully unrolled
                gh = jnp.dot(h.astype(mxdt), wh, preferred_element_type=f32)  # (B, 3H)
                gxt = gx[t * B:(t + 1) * B, :]                 # (B, 3H)
                r = jax.nn.sigmoid(gxt[:, 0:H] + gh[:, 0:H])
                z = jax.nn.sigmoid(gxt[:, H:2 * H] + gh[:, H:2 * H])
                n = jnp.tanh(gxt[:, 2 * H:] + r * (gh[:, 2 * H:] + bn))
                h = (1.0 - z) * n + z * h
                outs[t] = h
            return outs, h

        # ---- GRU layer 0 (input size E) --------------------------------------
        xb = x_flat.astype(mxdt)
        gx0f = jnp.dot(xb, wi0f_ref[...], preferred_element_type=f32) + bi0f_ref[...]
        gx0b = jnp.dot(xb, wi0b_ref[...], preferred_element_type=f32) + bi0b_ref[...]
        of0, h0f = gru_dir(gx0f, wh0f_ref[...], bn0f_ref[...], reverse=False)
        ob0, _ = gru_dir(gx0b, wh0b_ref[...], bn0b_ref[...], reverse=True)

        # ---- GRU layer 1 (input = [fwd | bwd] of layer 0 via split matmuls) ---
        ff = jnp.concatenate(of0, axis=0).astype(mxdt)         # (S*B, H) time-major
        bb = jnp.concatenate(ob0, axis=0).astype(mxdt)
        gx1f = (jnp.dot(ff, wi1ff_ref[...], preferred_element_type=f32)
                + jnp.dot(bb, wi1fb_ref[...], preferred_element_type=f32)
                + bi1f_ref[...])
        gx1b = (jnp.dot(ff, wi1bf_ref[...], preferred_element_type=f32)
                + jnp.dot(bb, wi1bb_ref[...], preferred_element_type=f32)
                + bi1b_ref[...])
        of1, _ = gru_dir(gx1f, wh1f_ref[...], bn1f_ref[...], reverse=False)
        ob1, _ = gru_dir(gx1b, wh1b_ref[...], bn1b_ref[...], reverse=True)

        # ---- 'dot' attention (query = encoder_hidden[0] = layer-0 fwd final h)
        # enc_outputs = outputs[..., :H] + outputs[..., H:] of the last layer.
        enc = [of1[t] + ob1[t] for t in range(S)]              # (B, H) per time step
        sc = [jnp.sum(enc[t] * h0f, axis=-1, keepdims=True) for t in range(S)]  # (B, 1)
        m = sc[0]
        for t in range(1, S):
            m = jnp.maximum(m, sc[t])
        ex = [jnp.exp(sc[t] - m) for t in range(S)]
        den = ex[0]
        for t in range(1, S):
            den = den + ex[t]
        inv = 1.0 / den                                        # (B, 1)

        col = jax.lax.broadcasted_iota(jnp.int32, (B, S), 1)
        attn = jnp.zeros((B, S), f32)
        ctx = jnp.zeros((B, H), f32)
        for t in range(S):
            a_t = ex[t] * inv                                  # (B, 1) softmax weight
            attn = attn + jnp.where(col == t, a_t, 0.0)        # place column t
            ctx = ctx + a_t * enc[t]

        attn_ref[...] = attn
        pred_ref[...] = (jnp.dot(ctx, wo_ref[...], preferred_element_type=f32)
                         + bo_ref[...])                        # Linear(H -> 1)

    return kernel


# ----------------------------------------------------------------------------
# Wrapper: im2col layout plumbing (XLA) + single fused pallas_call
# ----------------------------------------------------------------------------
PARAM_ORDER = ('wc', 'bc',
               'wi0f', 'wh0f', 'bi0f', 'bn0f',
               'wi0b', 'wh0b', 'bi0b', 'bn0b',
               'wi1ff', 'wi1fb', 'wh1f', 'bi1f', 'bn1f',
               'wi1bf', 'wi1bb', 'wh1b', 'bi1b', 'bn1b',
               'wo', 'bo')


def ip_forward(kp, x1, x2):
    # x1, x2: (B, 4, L) one-hot DNA (NCL, like the torch Conv1d input)
    B, C, L = x1.shape
    KC, E = kp['wc'].shape
    K = KC // C
    H = kp['wh0f'].shape[0]
    Lout = L - K + 1
    T = (Lout - POOL) // POOL + 1
    S = 2 * T

    # im2col patches for both inputs and both batch rows (layout plumbing only):
    # row (i*B + b)*Lout + l, columns ordered k*C + c.
    x = jnp.concatenate([x1, x2], axis=0).astype(jnp.float32)      # (2B, C, L)
    x = jnp.transpose(x, (0, 2, 1))                                # (2B, L, C)
    pat = jnp.concatenate([x[:, k:k + Lout, :] for k in range(K)], axis=-1)
    pat = pat.reshape(2 * B * Lout, K * C)

    pred, attn = pl.pallas_call(
        _ip_kernel(B, Lout, T, H, E),
        out_shape=(jax.ShapeDtypeStruct((B, 1), jnp.float32),
                   jax.ShapeDtypeStruct((B, S), jnp.float32)),
    )(pat, *[kp[name] for name in PARAM_ORDER])
    return pred, attn.reshape(B, 1, S)


# ----------------------------------------------------------------------------
# Parameters: torch-layout init + one-time conversion to kernel-ready layout
# ----------------------------------------------------------------------------
def init_params(key, E, K, H, n_layers=2, scale=0.1):
    """Deterministic parameters in torch layout (Conv1d / nn.GRU / nn.Linear)."""
    keys = iter(jax.random.split(key, 2 + 4 * 2 * n_layers + 2))
    p = {
        'conv_w': scale * jax.random.normal(next(keys), (E, 4, K), jnp.float32),
        'conv_b': scale * jax.random.normal(next(keys), (E,), jnp.float32),
        'gru': [],
    }
    d_in = E
    for _ in range(n_layers):
        layer = {}
        for dname in ('fwd', 'bwd'):
            layer[dname] = {
                'W_ih': scale * jax.random.normal(next(keys), (3 * H, d_in), jnp.float32),
                'W_hh': scale * jax.random.normal(next(keys), (3 * H, H), jnp.float32),
                'b_ih': scale * jax.random.normal(next(keys), (3 * H,), jnp.float32),
                'b_hh': scale * jax.random.normal(next(keys), (3 * H,), jnp.float32),
            }
        p['gru'].append(layer)
        d_in = 2 * H
    p['out_w'] = scale * jax.random.normal(next(keys), (1, H), jnp.float32)
    p['out_b'] = scale * jax.random.normal(next(keys), (1,), jnp.float32)
    return p


def prepare_params(p, mxu_dtype=MXU_DTYPE):
    """One-time conversion to kernel layout: transposed / gate-fused / bf16 weights."""
    E, C, K = p['conv_w'].shape
    H = p['out_w'].shape[1]
    f32 = jnp.float32
    kp = {
        # conv weight flattened so that w[k*C + c, e] matches the im2col column order
        'wc': jnp.transpose(p['conv_w'], (2, 1, 0)).reshape(K * C, E).astype(mxu_dtype),
        'bc': p['conv_b'].reshape(1, E).astype(f32),
        'wo': p['out_w'].T.astype(f32),                     # (H, 1)
        'bo': p['out_b'].reshape(1, 1).astype(f32),
    }

    def gru_dir_params(g):
        wi = g['W_ih'].T.astype(mxu_dtype)                  # (Din, 3H), columns [r|z|n]
        wh = g['W_hh'].T.astype(mxu_dtype)                  # (H, 3H)
        # fold hidden-side bias into input-side bias for r and z; keep b_hn separate
        bi = jnp.concatenate([g['b_ih'][:2 * H] + g['b_hh'][:2 * H],
                              g['b_ih'][2 * H:]]).reshape(1, 3 * H).astype(f32)
        bn = g['b_hh'][2 * H:].reshape(1, H).astype(f32)
        return wi, wh, bi, bn

    for (l, d), tag in (((0, 'fwd'), '0f'), ((0, 'bwd'), '0b'),
                        ((1, 'fwd'), '1f'), ((1, 'bwd'), '1b')):
        wi, wh, bi, bn = gru_dir_params(p['gru'][l][d])
        if l == 0:
            kp['wi' + tag] = wi
        else:
            kp['wi' + tag + 'f'] = wi[:H]    # multiplies layer-0 forward outputs
            kp['wi' + tag + 'b'] = wi[H:]    # multiplies layer-0 backward outputs
        kp['wh' + tag] = wh
        kp['bi' + tag] = bi
        kp['bn' + tag] = bn
    return kp


if __name__ == "__main__":
    B, C, L = 2, 4, 100      # small one-hot DNA sequences (4 channels)
    E, K, H = 16, 10, 32     # embed_size, conv kernel_size (== 'stride' arg), hidden_size

    key = jax.random.PRNGKey(0)
    kx1, kx2, kparams = jax.random.split(key, 3)
    x1 = jax.random.normal(kx1, (B, C, L), jnp.float32)
    x2 = jax.random.normal(kx2, (B, C, L), jnp.float32)

    params = prepare_params(init_params(kparams, E, K, H))

    fwd = jax.jit(ip_forward)
    pred_out, attn_w = fwd(params, x1, x2)
    jax.block_until_ready((pred_out, attn_w))

    T = ((L - K + 1) - POOL) // POOL + 1
    assert pred_out.shape == (B, 1)
    assert attn_w.shape == (B, 1, 2 * T)
    assert bool(jnp.all(jnp.isfinite(pred_out))) and bool(jnp.all(jnp.isfinite(attn_w)))
    print("KERNEL_OK")
</pallas_src>

<mosaic_0001>
module attributes {stable_mosaic.version = 11 : i64} {
  func.func @kernel(%arg0: memref<364x40xf32, #tpu.memory_space<vmem>>, %arg1: memref<40x16xbf16, #tpu.memory_space<vmem>>, %arg2: memref<1x16xf32, #tpu.memory_space<vmem>>, %arg3: memref<16x96xbf16, #tpu.memory_space<vmem>>, %arg4: memref<32x96xbf16, #tpu.memory_space<vmem>>, %arg5: memref<1x96xf32, #tpu.memory_space<vmem>>, %arg6: memref<1x32xf32, #tpu.memory_space<vmem>>, %arg7: memref<16x96xbf16, #tpu.memory_space<vmem>>, %arg8: memref<32x96xbf16, #tpu.memory_space<vmem>>, %arg9: memref<1x96xf32, #tpu.memory_space<vmem>>, %arg10: memref<1x32xf32, #tpu.memory_space<vmem>>, %arg11: memref<32x96xbf16, #tpu.memory_space<vmem>>, %arg12: memref<32x96xbf16, #tpu.memory_space<vmem>>, %arg13: memref<32x96xbf16, #tpu.memory_space<vmem>>, %arg14: memref<1x96xf32, #tpu.memory_space<vmem>>, %arg15: memref<1x32xf32, #tpu.memory_space<vmem>>, %arg16: memref<32x96xbf16, #tpu.memory_space<vmem>>, %arg17: memref<32x96xbf16, #tpu.memory_space<vmem>>, %arg18: memref<32x96xbf16, #tpu.memory_space<vmem>>, %arg19: memref<1x96xf32, #tpu.memory_space<vmem>>, %arg20: memref<1x32xf32, #tpu.memory_space<vmem>>, %arg21: memref<32x1xf32, #tpu.memory_space<vmem>>, %arg22: memref<1x1xf32, #tpu.memory_space<vmem>>, %arg23: memref<2x1xf32, #tpu.memory_space<vmem>>, %arg24: memref<2x8xf32, #tpu.memory_space<vmem>>) attributes {dimension_semantics = [], scalar_prefetch = 0 : i64, scratch_operands = 0 : i64, tpu.core_type = #tpu.core_type<tc>} {
    %c0 = arith.constant 0 : index
    %c0_0 = arith.constant 0 : index
    %0 = vector.load %arg0[%c0, %c0_0] : memref<364x40xf32, #tpu.memory_space<vmem>>, vector<364x40xf32>
    %1 = arith.truncf %0 : vector<364x40xf32> to vector<364x40xbf16>
    %c0_1 = arith.constant 0 : index
    %c0_2 = arith.constant 0 : index
    %2 = vector.load %arg1[%c0_1, %c0_2] : memref<40x16xbf16, #tpu.memory_space<vmem>>, vector<40x16xbf16>
    %cst = arith.constant dense<0.000000e+00> : vector<364x16xf32>
    %3 = tpu.matmul %1, %2, %cst {dimension_numbers = #tpu.dot_dimension_numbers<[1], [0], [0], [1], [0, 0, 1, 1], [], []>} : vector<364x40xbf16>, vector<40x16xbf16>, vector<364x16xf32> -> vector<364x16xf32>
    %c0_3 = arith.constant 0 : index
    %c0_4 = arith.constant 0 : index
    %4 = vector.load %arg2[%c0_3, %c0_4] : memref<1x16xf32, #tpu.memory_space<vmem>>, vector<1x16xf32>
    %5 = vector.broadcast %4 : vector<1x16xf32> to vector<364x16xf32>
    %6 = arith.addf %3, %5 : vector<364x16xf32>
    %cst_5 = arith.constant 0.000000e+00 : f32
    %7 = vector.broadcast %cst_5 : f32 to vector<364x16xf32>
    %8 = arith.maximumf %6, %7 : vector<364x16xf32>
    %9 = vector.extract_strided_slice %8 {offsets = [0, 0], sizes = [20, 16], strides = [1, 1]} : vector<364x16xf32> to vector<20x16xf32>
    %cst_6 = arith.constant dense<0xFF800000> : vector<16xf32>
    %10 = vector.multi_reduction <maximumf>, %9, %cst_6 [0] : vector<20x16xf32> to vector<16xf32>
    %11 = vector.shape_cast %10 : vector<16xf32> to vector<1x16xf32>
    %12 = vector.extract_strided_slice %8 {offsets = [91, 0], sizes = [20, 16], strides = [1, 1]} : vector<364x16xf32> to vector<20x16xf32>
    %cst_7 = arith.constant dense<0xFF800000> : vector<16xf32>
    %13 = vector.multi_reduction <maximumf>, %12, %cst_7 [0] : vector<20x16xf32> to vector<16xf32>
    %14 = vector.shape_cast %13 : vector<16xf32> to vector<1x16xf32>
    %15 = vector.extract_strided_slice %8 {offsets = [20, 0], sizes = [20, 16], strides = [1, 1]} : vector<364x16xf32> to vector<20x16xf32>
    %cst_8 = arith.constant dense<0xFF800000> : vector<16xf32>
    %16 = vector.multi_reduction <maximumf>, %15, %cst_8 [0] : vector<20x16xf32> to vector<16xf32>
    %17 = vector.shape_cast %16 : vector<16xf32> to vector<1x16xf32>
    %18 = vector.extract_strided_slice %8 {offsets = [111, 0], sizes = [20, 16], strides = [1, 1]} : vector<364x16xf32> to vector<20x16xf32>
    %cst_9 = arith.constant dense<0xFF800000> : vector<16xf32>
    %19 = vector.multi_reduction <maximumf>, %18, %cst_9 [0] : vector<20x16xf32> to vector<16xf32>
    %20 = vector.shape_cast %19 : vector<16xf32> to vector<1x16xf32>
    %21 = vector.extract_strided_slice %8 {offsets = [40, 0], sizes = [20, 16], strides = [1, 1]} : vector<364x16xf32> to vector<20x16xf32>
    %cst_10 = arith.constant dense<0xFF800000> : vector<16xf32>
    %22 = vector.multi_reduction <maximumf>, %21, %cst_10 [0] : vector<20x16xf32> to vector<16xf32>
    %23 = vector.shape_cast %22 : vector<16xf32> to vector<1x16xf32>
    %24 = vector.extract_strided_slice %8 {offsets = [131, 0], sizes = [20, 16], strides = [1, 1]} : vector<364x16xf32> to vector<20x16xf32>
    %cst_11 = arith.constant dense<0xFF800000> : vector<16xf32>
    %25 = vector.multi_reduction <maximumf>, %24, %cst_11 [0] : vector<20x16xf32> to vector<16xf32>
    %26 = vector.shape_cast %25 : vector<16xf32> to vector<1x16xf32>
    %27 = vector.extract_strided_slice %8 {offsets = [60, 0], sizes = [20, 16], strides = [1, 1]} : vector<364x16xf32> to vector<20x16xf32>
    %cst_12 = arith.constant dense<0xFF800000> : vector<16xf32>
    %28 = vector.multi_reduction <maximumf>, %27, %cst_12 [0] : vector<20x16xf32> to vector<16xf32>
    %29 = vector.shape_cast %28 : vector<16xf32> to vector<1x16xf32>
    %30 = vector.extract_strided_slice %8 {offsets = [151, 0], sizes = [20, 16], strides = [1, 1]} : vector<364x16xf32> to vector<20x16xf32>
    %cst_13 = arith.constant dense<0xFF800000> : vector<16xf32>
    %31 = vector.multi_reduction <maximumf>, %30, %cst_13 [0] : vector<20x16xf32> to vector<16xf32>
    %32 = vector.shape_cast %31 : vector<16xf32> to vector<1x16xf32>
    %33 = vector.extract_strided_slice %8 {offsets = [182, 0], sizes = [20, 16], strides = [1, 1]} : vector<364x16xf32> to vector<20x16xf32>
    %cst_14 = arith.constant dense<0xFF800000> : vector<16xf32>
    %34 = vector.multi_reduction <maximumf>, %33, %cst_14 [0] : vector<20x16xf32> to vector<16xf32>
    %35 = vector.shape_cast %34 : vector<16xf32> to vector<1x16xf32>
    %36 = vector.extract_strided_slice %8 {offsets = [273, 0], sizes = [20, 16], strides = [1, 1]} : vector<364x16xf32> to vector<20x16xf32>
    %cst_15 = arith.constant dense<0xFF800000> : vector<16xf32>
    %37 = vector.multi_reduction <maximumf>, %36, %cst_15 [0] : vector<20x16xf32> to vector<16xf32>
    %38 = vector.shape_cast %37 : vector<16xf32> to vector<1x16xf32>
    %39 = vector.extract_strided_slice %8 {offsets = [202, 0], sizes = [20, 16], strides = [1, 1]} : vector<364x16xf32> to vector<20x16xf32>
    %cst_16 = arith.constant dense<0xFF800000> : vector<16xf32>
    %40 = vector.multi_reduction <maximumf>, %39, %cst_16 [0] : vector<20x16xf32> to vector<16xf32>
    %41 = vector.shape_cast %40 : vector<16xf32> to vector<1x16xf32>
    %42 = vector.extract_strided_slice %8 {offsets = [293, 0], sizes = [20, 16], strides = [1, 1]} : vector<364x16xf32> to vector<20x16xf32>
    %cst_17 = arith.constant dense<0xFF800000> : vector<16xf32>
    %43 = vector.multi_reduction <maximumf>, %42, %cst_17 [0] : vector<20x16xf32> to vector<16xf32>
    %44 = vector.shape_cast %43 : vector<16xf32> to vector<1x16xf32>
    %45 = vector.extract_strided_slice %8 {offsets = [222, 0], sizes = [20, 16], strides = [1, 1]} : vector<364x16xf32> to vector<20x16xf32>
    %cst_18 = arith.constant dense<0xFF800000> : vector<16xf32>
    %46 = vector.multi_reduction <maximumf>, %45, %cst_18 [0] : vector<20x16xf32> to vector<16xf32>
    %47 = vector.shape_cast %46 : vector<16xf32> to vector<1x16xf32>
    %48 = vector.extract_strided_slice %8 {offsets = [313, 0], sizes = [20, 16], strides = [1, 1]} : vector<364x16xf32> to vector<20x16xf32>
    %cst_19 = arith.constant dense<0xFF800000> : vector<16xf32>
    %49 = vector.multi_reduction <maximumf>, %48, %cst_19 [0] : vector<20x16xf32> to vector<16xf32>
    %50 = vector.shape_cast %49 : vector<16xf32> to vector<1x16xf32>
    %51 = vector.extract_strided_slice %8 {offsets = [242, 0], sizes = [20, 16], strides = [1, 1]} : vector<364x16xf32> to vector<20x16xf32>
    %cst_20 = arith.constant dense<0xFF800000> : vector<16xf32>
    %52 = vector.multi_reduction <maximumf>, %51, %cst_20 [0] : vector<20x16xf32> to vector<16xf32>
    %53 = vector.shape_cast %52 : vector<16xf32> to vector<1x16xf32>
    %54 = vector.extract_strided_slice %8 {offsets = [333, 0], sizes = [20, 16], strides = [1, 1]} : vector<364x16xf32> to vector<20x16xf32>
    %cst_21 = arith.constant dense<0xFF800000> : vector<16xf32>
    %55 = vector.multi_reduction <maximumf>, %54, %cst_21 [0] : vector<20x16xf32> to vector<16xf32>
    %56 = vector.shape_cast %55 : vector<16xf32> to vector<1x16xf32>
    %57 = tpu.concatenate %11, %14, %17, %20, %23, %26, %29, %32, %35, %38, %41, %44, %47, %50, %53, %56 in 0 : vector<1x16xf32>, vector<1x16xf32>, vector<1x16xf32>, vector<1x16xf32>, vector<1x16xf32>, vector<1x16xf32>, vector<1x16xf32>, vector<1x16xf32>, vector<1x16xf32>, vector<1x16xf32>, vector<1x16xf32>, vector<1x16xf32>, vector<1x16xf32>, vector<1x16xf32>, vector<1x16xf32>, vector<1x16xf32> -> vector<16x16xf32>
    %58 = arith.truncf %57 : vector<16x16xf32> to vector<16x16xbf16>
    %c0_22 = arith.constant 0 : index
    %c0_23 = arith.constant 0 : index
    %59 = vector.load %arg3[%c0_22, %c0_23] : memref<16x96xbf16, #tpu.memory_space<vmem>>, vector<16x96xbf16>
    %cst_24 = arith.constant dense<0.000000e+00> : vector<16x96xf32>
    %60 = tpu.matmul %58, %59, %cst_24 {dimension_numbers = #tpu.dot_dimension_numbers<[1], [0], [0], [1], [0, 0, 1, 1], [], []>} : vector<16x16xbf16>, vector<16x96xbf16>, vector<16x96xf32> -> vector<16x96xf32>
    %c0_25 = arith.constant 0 : index
    %c0_26 = arith.constant 0 : index
    %61 = vector.load %arg5[%c0_25, %c0_26] : memref<1x96xf32, #tpu.memory_space<vmem>>, vector<1x96xf32>
    %62 = vector.broadcast %61 : vector<1x96xf32> to vector<16x96xf32>
    %63 = arith.addf %60, %62 : vector<16x96xf32>
    %c0_27 = arith.constant 0 : index
    %c0_28 = arith.constant 0 : index
    %64 = vector.load %arg7[%c0_27, %c0_28] : memref<16x96xbf16, #tpu.memory_space<vmem>>, vector<16x96xbf16>
    %cst_29 = arith.constant dense<0.000000e+00> : vector<16x96xf32>
    %65 = tpu.matmul %58, %64, %cst_29 {dimension_numbers = #tpu.dot_dimension_numbers<[1], [0], [0], [1], [0, 0, 1, 1], [], []>} : vector<16x16xbf16>, vector<16x96xbf16>, vector<16x96xf32> -> vector<16x96xf32>
    %c0_30 = arith.constant 0 : index
    %c0_31 = arith.constant 0 : index
    %66 = vector.load %arg9[%c0_30, %c0_31] : memref<1x96xf32, #tpu.memory_space<vmem>>, vector<1x96xf32>
    %67 = vector.broadcast %66 : vector<1x96xf32> to vector<16x96xf32>
    %68 = arith.addf %65, %67 : vector<16x96xf32>
    %c0_32 = arith.constant 0 : index
    %c0_33 = arith.constant 0 : index
    %69 = vector.load %arg4[%c0_32, %c0_33] : memref<32x96xbf16, #tpu.memory_space<vmem>>, vector<32x96xbf16>
    %c0_34 = arith.constant 0 : index
    %c0_35 = arith.constant 0 : index
    %70 = vector.load %arg6[%c0_34, %c0_35] : memref<1x32xf32, #tpu.memory_space<vmem>>, vector<1x32xf32>
    %cst_36 = arith.constant 0.000000e+00 : f32
    %71 = vector.broadcast %cst_36 : f32 to vector<2x32xf32>
    %72 = arith.truncf %71 : vector<2x32xf32> to vector<2x32xbf16>
    %cst_37 = arith.constant dense<0.000000e+00> : vector<2x96xf32>
    %73 = tpu.matmul %72, %69, %cst_37 {dimension_numbers = #tpu.dot_dimension_numbers<[1], [0], [0], [1], [0, 0, 1, 1], [], []>} : vector<2x32xbf16>, vector<32x96xbf16>, vector<2x96xf32> -> vector<2x96xf32>
    %74 = vector.extract_strided_slice %63 {offsets = [0, 0], sizes = [2, 96], strides = [1, 1]} : vector<16x96xf32> to vector<2x96xf32>
    %75 = vector.extract_strided_slice %74 {offsets = [0, 0], sizes = [2, 32], strides = [1, 1]} : vector<2x96xf32> to vector<2x32xf32>
    %76 = vector.extract_strided_slice %73 {offsets = [0, 0], sizes = [2, 32], strides = [1, 1]} : vector<2x96xf32> to vector<2x32xf32>
    %77 = arith.addf %75, %76 : vector<2x32xf32>
    %78 = arith.negf %77 : vector<2x32xf32>
    %79 = math.exp %78 : vector<2x32xf32>
    %cst_38 = arith.constant 1.000000e+00 : f32
    %80 = vector.broadcast %cst_38 : f32 to vector<2x32xf32>
    %81 = arith.addf %80, %79 : vector<2x32xf32>
    %82 = arith.divf %80, %81 : vector<2x32xf32>
    %83 = vector.extract_strided_slice %74 {offsets = [0, 32], sizes = [2, 32], strides = [1, 1]} : vector<2x96xf32> to vector<2x32xf32>
    %84 = vector.extract_strided_slice %73 {offsets = [0, 32], sizes = [2, 32], strides = [1, 1]} : vector<2x96xf32> to vector<2x32xf32>
    %85 = arith.addf %83, %84 : vector<2x32xf32>
    %86 = arith.negf %85 : vector<2x32xf32>
    %87 = math.exp %86 : vector<2x32xf32>
    %cst_39 = arith.constant 1.000000e+00 : f32
    %88 = vector.broadcast %cst_39 : f32 to vector<2x32xf32>
    %89 = arith.addf %88, %87 : vector<2x32xf32>
    %90 = arith.divf %88, %89 : vector<2x32xf32>
    %91 = vector.extract_strided_slice %74 {offsets = [0, 64], sizes = [2, 32], strides = [1, 1]} : vector<2x96xf32> to vector<2x32xf32>
    %92 = vector.extract_strided_slice %73 {offsets = [0, 64], sizes = [2, 32], strides = [1, 1]} : vector<2x96xf32> to vector<2x32xf32>
    %93 = vector.broadcast %70 : vector<1x32xf32> to vector<2x32xf32>
    %94 = arith.addf %92, %93 : vector<2x32xf32>
    %95 = arith.mulf %82, %94 : vector<2x32xf32>
    %96 = arith.addf %91, %95 : vector<2x32xf32>
    %97 = math.tanh %96 : vector<2x32xf32>
    %cst_40 = arith.constant 1.000000e+00 : f32
    %98 = vector.broadcast %cst_40 : f32 to vector<2x32xf32>
    %99 = arith.subf %98, %90 : vector<2x32xf32>
    %100 = arith.mulf %99, %97 : vector<2x32xf32>
    %101 = arith.mulf %90, %71 : vector<2x32xf32>
    %102 = arith.addf %100, %101 : vector<2x32xf32>
    %103 = arith.truncf %102 : vector<2x32xf32> to vector<2x32xbf16>
    %cst_41 = arith.constant dense<0.000000e+00> : vector<2x96xf32>
    %104 = tpu.matmul %103, %69, %cst_41 {dimension_numbers = #tpu.dot_dimension_numbers<[1], [0], [0], [1], [0, 0, 1, 1], [], []>} : vector<2x32xbf16>, vector<32x96xbf16>, vector<2x96xf32> -> vector<2x96xf32>
    %105 = vector.extract_strided_slice %63 {offsets = [2, 0], sizes = [2, 96], strides = [1, 1]} : vector<16x96xf32> to vector<2x96xf32>
    %106 = vector.extract_strided_slice %105 {offsets = [0, 0], sizes = [2, 32], strides = [1, 1]} : vector<2x96xf32> to vector<2x32xf32>
    %107 = vector.extract_strided_slice %104 {offsets = [0, 0], sizes = [2, 32], strides = [1, 1]} : vector<2x96xf32> to vector<2x32xf32>
    %108 = arith.addf %106, %107 : vector<2x32xf32>
    %109 = arith.negf %108 : vector<2x32xf32>
    %110 = math.exp %109 : vector<2x32xf32>
    %cst_42 = arith.constant 1.000000e+00 : f32
    %111 = vector.broadcast %cst_42 : f32 to vector<2x32xf32>
    %112 = arith.addf %111, %110 : vector<2x32xf32>
    %113 = arith.divf %111, %112 : vector<2x32xf32>
    %114 = vector.extract_strided_slice %105 {offsets = [0, 32], sizes = [2, 32], strides = [1, 1]} : vector<2x96xf32> to vector<2x32xf32>
    %115 = vector.extract_strided_slice %104 {offsets = [0, 32], sizes = [2, 32], strides = [1, 1]} : vector<2x96xf32> to vector<2x32xf32>
    %116 = arith.addf %114, %115 : vector<2x32xf32>
    %117 = arith.negf %116 : vector<2x32xf32>
    %118 = math.exp %117 : vector<2x32xf32>
    %cst_43 = arith.constant 1.000000e+00 : f32
    %119 = vector.broadcast %cst_43 : f32 to vector<2x32xf32>
    %120 = arith.addf %119, %118 : vector<2x32xf32>
    %121 = arith.divf %119, %120 : vector<2x32xf32>
    %122 = vector.extract_strided_slice %105 {offsets = [0, 64], sizes = [2, 32], strides = [1, 1]} : vector<2x96xf32> to vector<2x32xf32>
    %123 = vector.extract_strided_slice %104 {offsets = [0, 64], sizes = [2, 32], strides = [1, 1]} : vector<2x96xf32> to vector<2x32xf32>
    %124 = vector.broadcast %70 : vector<1x32xf32> to vector<2x32xf32>
    %125 = arith.addf %123, %124 : vector<2x32xf32>
    %126 = arith.mulf %113, %125 : vector<2x32xf32>
    %127 = arith.addf %122, %126 : vector<2x32xf32>
    %128 = math.tanh %127 : vector<2x32xf32>
    %cst_44 = arith.constant 1.000000e+00 : f32
    %129 = vector.broadcast %cst_44 : f32 to vector<2x32xf32>
    %130 = arith.subf %129, %121 : vector<2x32xf32>
    %131 = arith.mulf %130, %128 : vector<2x32xf32>
    %132 = arith.mulf %121, %102 : vector<2x32xf32>
    %133 = arith.addf %131, %132 : vector<2x32xf32>
    %134 = arith.truncf %133 : vector<2x32xf32> to vector<2x32xbf16>
    %cst_45 = arith.constant dense<0.000000e+00> : vector<2x96xf32>
    %135 = tpu.matmul %134, %69, %cst_45 {dimension_numbers = #tpu.dot_dimension_numbers<[1], [0], [0], [1], [0, 0, 1, 1], [], []>} : vector<2x32xbf16>, vector<32x96xbf16>, vector<2x96xf32> -> vector<2x96xf32>
    %136 = vector.extract_strided_slice %63 {offsets = [4, 0], sizes = [2, 96], strides = [1, 1]} : vector<16x96xf32> to vector<2x96xf32>
    %137 = vector.extract_strided_slice %136 {offsets = [0, 0], sizes = [2, 32], strides = [1, 1]} : vector<2x96xf32> to vector<2x32xf32>
    %138 = vector.extract_strided_slice %135 {offsets = [0, 0], sizes = [2, 32], strides = [1, 1]} : vector<2x96xf32> to vector<2x32xf32>
    %139 = arith.addf %137, %138 : vector<2x32xf32>
    %140 = arith.negf %139 : vector<2x32xf32>
    %141 = math.exp %140 : vector<2x32xf32>
    %cst_46 = arith.constant 1.000000e+00 : f32
    %142 = vector.broadcast %cst_46 : f32 to vector<2x32xf32>
    %143 = arith.addf %142, %141 : vector<2x32xf32>
    %144 = arith.divf %142, %143 : vector<2x32xf32>
    %145 = vector.extract_strided_slice %136 {offsets = [0, 32], sizes = [2, 32], strides = [1, 1]} : vector<2x96xf32> to vector<2x32xf32>
    %146 = vector.extract_strided_slice %135 {offsets = [0, 32], sizes = [2, 32], strides = [1, 1]} : vector<2x96xf32> to vector<2x32xf32>
    %147 = arith.addf %145, %146 : vector<2x32xf32>
    %148 = arith.negf %147 : vector<2x32xf32>
    %149 = math.exp %148 : vector<2x32xf32>
    %cst_47 = arith.constant 1.000000e+00 : f32
    %150 = vector.broadcast %cst_47 : f32 to vector<2x32xf32>
    %151 = arith.addf %150, %149 : vector<2x32xf32>
    %152 = arith.divf %150, %151 : vector<2x32xf32>
    %153 = vector.extract_strided_slice %136 {offsets = [0, 64], sizes = [2, 32], strides = [1, 1]} : vector<2x96xf32> to vector<2x32xf32>
    %154 = vector.extract_strided_slice %135 {offsets = [0, 64], sizes = [2, 32], strides = [1, 1]} : vector<2x96xf32> to vector<2x32xf32>
    %155 = vector.broadcast %70 : vector<1x32xf32> to vector<2x32xf32>
    %156 = arith.addf %154, %155 : vector<2x32xf32>
    %157 = arith.mulf %144, %156 : vector<2x32xf32>
    %158 = arith.addf %153, %157 : vector<2x32xf32>
    %159 = math.tanh %158 : vector<2x32xf32>
    %cst_48 = arith.constant 1.000000e+00 : f32
    %160 = vector.broadcast %cst_48 : f32 to vector<2x32xf32>
    %161 = arith.subf %160, %152 : vector<2x32xf32>
    %162 = arith.mulf %161, %159 : vector<2x32xf32>
    %163 = arith.mulf %152, %133 : vector<2x32xf32>
    %164 = arith.addf %162, %163 : vector<2x32xf32>
    %165 = arith.truncf %164 : vector<2x32xf32> to vector<2x32xbf16>
    %cst_49 = arith.constant dense<0.000000e+00> : vector<2x96xf32>
    %166 = tpu.matmul %165, %69, %cst_49 {dimension_numbers = #tpu.dot_dimension_numbers<[1], [0], [0], [1], [0, 0, 1, 1], [], []>} : vector<2x32xbf16>, vector<32x96xbf16>, vector<2x96xf32> -> vector<2x96xf32>
    %167 = vector.extract_strided_slice %63 {offsets = [6, 0], sizes = [2, 96], strides = [1, 1]} : vector<16x96xf32> to vector<2x96xf32>
    %168 = vector.extract_strided_slice %167 {offsets = [0, 0], sizes = [2, 32], strides = [1, 1]} : vector<2x96xf32> to vector<2x32xf32>
    %169 = vector.extract_strided_slice %166 {offsets = [0, 0], sizes = [2, 32], strides = [1, 1]} : vector<2x96xf32> to vector<2x32xf32>
    %170 = arith.addf %168, %169 : vector<2x32xf32>
    %171 = arith.negf %170 : vector<2x32xf32>
    %172 = math.exp %171 : vector<2x32xf32>
    %cst_50 = arith.constant 1.000000e+00 : f32
    %173 = vector.broadcast %cst_50 : f32 to vector<2x32xf32>
    %174 = arith.addf %173, %172 : vector<2x32xf32>
    %175 = arith.divf %173, %174 : vector<2x32xf32>
    %176 = vector.extract_strided_slice %167 {offsets = [0, 32], sizes = [2, 32], strides = [1, 1]} : vector<2x96xf32> to vector<2x32xf32>
    %177 = vector.extract_strided_slice %166 {offsets = [0, 32], sizes = [2, 32], strides = [1, 1]} : vector<2x96xf32> to vector<2x32xf32>
    %178 = arith.addf %176, %177 : vector<2x32xf32>
    %179 = arith.negf %178 : vector<2x32xf32>
    %180 = math.exp %179 : vector<2x32xf32>
    %cst_51 = arith.constant 1.000000e+00 : f32
    %181 = vector.broadcast %cst_51 : f32 to vector<2x32xf32>
    %182 = arith.addf %181, %180 : vector<2x32xf32>
    %183 = arith.divf %181, %182 : vector<2x32xf32>
    %184 = vector.extract_strided_slice %167 {offsets = [0, 64], sizes = [2, 32], strides = [1, 1]} : vector<2x96xf32> to vector<2x32xf32>
    %185 = vector.extract_strided_slice %166 {offsets = [0, 64], sizes = [2, 32], strides = [1, 1]} : vector<2x96xf32> to vector<2x32xf32>
    %186 = vector.broadcast %70 : vector<1x32xf32> to vector<2x32xf32>
    %187 = arith.addf %185, %186 : vector<2x32xf32>
    %188 = arith.mulf %175, %187 : vector<2x32xf32>
    %189 = arith.addf %184, %188 : vector<2x32xf32>
    %190 = math.tanh %189 : vector<2x32xf32>
    %cst_52 = arith.constant 1.000000e+00 : f32
    %191 = vector.broadcast %cst_52 : f32 to vector<2x32xf32>
    %192 = arith.subf %191, %183 : vector<2x32xf32>
    %193 = arith.mulf %192, %190 : vector<2x32xf32>
    %194 = arith.mulf %183, %164 : vector<2x32xf32>
    %195 = arith.addf %193, %194 : vector<2x32xf32>
    %196 = arith.truncf %195 : vector<2x32xf32> to vector<2x32xbf16>
    %cst_53 = arith.constant dense<0.000000e+00> : vector<2x96xf32>
    %197 = tpu.matmul %196, %69, %cst_53 {dimension_numbers = #tpu.dot_dimension_numbers<[1], [0], [0], [1], [0, 0, 1, 1], [], []>} : vector<2x32xbf16>, vector<32x96xbf16>, vector<2x96xf32> -> vector<2x96xf32>
    %198 = vector.extract_strided_slice %63 {offsets = [8, 0], sizes = [2, 96], strides = [1, 1]} : vector<16x96xf32> to vector<2x96xf32>
    %199 = vector.extract_strided_slice %198 {offsets = [0, 0], sizes = [2, 32], strides = [1, 1]} : vector<2x96xf32> to vector<2x32xf32>
    %200 = vector.extract_strided_slice %197 {offsets = [0, 0], sizes = [2, 32], strides = [1, 1]} : vector<2x96xf32> to vector<2x32xf32>
    %201 = arith.addf %199, %200 : vector<2x32xf32>
    %202 = arith.negf %201 : vector<2x32xf32>
    %203 = math.exp %202 : vector<2x32xf32>
    %cst_54 = arith.constant 1.000000e+00 : f32
    %204 = vector.broadcast %cst_54 : f32 to vector<2x32xf32>
    %205 = arith.addf %204, %203 : vector<2x32xf32>
    %206 = arith.divf %204, %205 : vector<2x32xf32>
    %207 = vector.extract_strided_slice %198 {offsets = [0, 32], sizes = [2, 32], strides = [1, 1]} : vector<2x96xf32> to vector<2x32xf32>
    %208 = vector.extract_strided_slice %197 {offsets = [0, 32], sizes = [2, 32], strides = [1, 1]} : vector<2x96xf32> to vector<2x32xf32>
    %209 = arith.addf %207, %208 : vector<2x32xf32>
    %210 = arith.negf %209 : vector<2x32xf32>
    %211 = math.exp %210 : vector<2x32xf32>
    %cst_55 = arith.constant 1.000000e+00 : f32
    %212 = vector.broadcast %cst_55 : f32 to vector<2x32xf32>
    %213 = arith.addf %212, %211 : vector<2x32xf32>
    %214 = arith.divf %212, %213 : vector<2x32xf32>
    %215 = vector.extract_strided_slice %198 {offsets = [0, 64], sizes = [2, 32], strides = [1, 1]} : vector<2x96xf32> to vector<2x32xf32>
    %216 = vector.extract_strided_slice %197 {offsets = [0, 64], sizes = [2, 32], strides = [1, 1]} : vector<2x96xf32> to vector<2x32xf32>
    %217 = vector.broadcast %70 : vector<1x32xf32> to vector<2x32xf32>
    %218 = arith.addf %216, %217 : vector<2x32xf32>
    %219 = arith.mulf %206, %218 : vector<2x32xf32>
    %220 = arith.addf %215, %219 : vector<2x32xf32>
    %221 = math.tanh %220 : vector<2x32xf32>
    %cst_56 = arith.constant 1.000000e+00 : f32
    %222 = vector.broadcast %cst_56 : f32 to vector<2x32xf32>
    %223 = arith.subf %222, %214 : vector<2x32xf32>
    %224 = arith.mulf %223, %221 : vector<2x32xf32>
    %225 = arith.mulf %214, %195 : vector<2x32xf32>
    %226 = arith.addf %224, %225 : vector<2x32xf32>
    %227 = arith.truncf %226 : vector<2x32xf32> to vector<2x32xbf16>
    %cst_57 = arith.constant dense<0.000000e+00> : vector<2x96xf32>
    %228 = tpu.matmul %227, %69, %cst_57 {dimension_numbers = #tpu.dot_dimension_numbers<[1], [0], [0], [1], [0, 0, 1, 1], [], []>} : vector<2x32xbf16>, vector<32x96xbf16>, vector<2x96xf32> -> vector<2x96xf32>
    %229 = vector.extract_strided_slice %63 {offsets = [10, 0], sizes = [2, 96], strides = [1, 1]} : vector<16x96xf32> to vector<2x96xf32>
    %230 = vector.extract_strided_slice %229 {offsets = [0, 0], sizes = [2, 32], strides = [1, 1]} : vector<2x96xf32> to vector<2x32xf32>
    %231 = vector.extract_strided_slice %228 {offsets = [0, 0], sizes = [2, 32], strides = [1, 1]} : vector<2x96xf32> to vector<2x32xf32>
    %232 = arith.addf %230, %231 : vector<2x32xf32>
    %233 = arith.negf %232 : vector<2x32xf32>
    %234 = math.exp %233 : vector<2x32xf32>
    %cst_58 = arith.constant 1.000000e+00 : f32
    %235 = vector.broadcast %cst_58 : f32 to vector<2x32xf32>
    %236 = arith.addf %235, %234 : vector<2x32xf32>
    %237 = arith.divf %235, %236 : vector<2x32xf32>
    %238 = vector.extract_strided_slice %229 {offsets = [0, 32], sizes = [2, 32], strides = [1, 1]} : vector<2x96xf32> to vector<2x32xf32>
    %239 = vector.extract_strided_slice %228 {offsets = [0, 32], sizes = [2, 32], strides = [1, 1]} : vector<2x96xf32> to vector<2x32xf32>
    %240 = arith.addf %238, %239 : vector<2x32xf32>
    %241 = arith.negf %240 : vector<2x32xf32>
    %242 = math.exp %241 : vector<2x32xf32>
    %cst_59 = arith.constant 1.000000e+00 : f32
    %243 = vector.broadcast %cst_59 : f32 to vector<2x32xf32>
    %244 = arith.addf %243, %242 : vector<2x32xf32>
    %245 = arith.divf %243, %244 : vector<2x32xf32>
    %246 = vector.extract_strided_slice %229 {offsets = [0, 64], sizes = [2, 32], strides = [1, 1]} : vector<2x96xf32> to vector<2x32xf32>
    %247 = vector.extract_strided_slice %228 {offsets = [0, 64], sizes = [2, 32], strides = [1, 1]} : vector<2x96xf32> to vector<2x32xf32>
    %248 = vector.broadcast %70 : vector<1x32xf32> to vector<2x32xf32>
    %249 = arith.addf %247, %248 : vector<2x32xf32>
    %250 = arith.mulf %237, %249 : vector<2x32xf32>
    %251 = arith.addf %246, %250 : vector<2x32xf32>
    %252 = math.tanh %251 : vector<2x32xf32>
    %cst_60 = arith.constant 1.000000e+00 : f32
    %253 = vector.broadcast %cst_60 : f32 to vector<2x32xf32>
    %254 = arith.subf %253, %245 : vector<2x32xf32>
    %255 = arith.mulf %254, %252 : vector<2x32xf32>
    %256 = arith.mulf %245, %226 : vector<2x32xf32>
    %257 = arith.addf %255, %256 : vector<2x32xf32>
    %258 = arith.truncf %257 : vector<2x32xf32> to vector<2x32xbf16>
    %cst_61 = arith.constant dense<0.000000e+00> : vector<2x96xf32>
    %259 = tpu.matmul %258, %69, %cst_61 {dimension_numbers = #tpu.dot_dimension_numbers<[1], [0], [0], [1], [0, 0, 1, 1], [], []>} : vector<2x32xbf16>, vector<32x96xbf16>, vector<2x96xf32> -> vector<2x96xf32>
    %260 = vector.extract_strided_slice %63 {offsets = [12, 0], sizes = [2, 96], strides = [1, 1]} : vector<16x96xf32> to vector<2x96xf32>
    %261 = vector.extract_strided_slice %260 {offsets = [0, 0], sizes = [2, 32], strides = [1, 1]} : vector<2x96xf32> to vector<2x32xf32>
    %262 = vector.extract_strided_slice %259 {offsets = [0, 0], sizes = [2, 32], strides = [1, 1]} : vector<2x96xf32> to vector<2x32xf32>
    %263 = arith.addf %261, %262 : vector<2x32xf32>
    %264 = arith.negf %263 : vector<2x32xf32>
    %265 = math.exp %264 : vector<2x32xf32>
    %cst_62 = arith.constant 1.000000e+00 : f32
    %266 = vector.broadcast %cst_62 : f32 to vector<2x32xf32>
    %267 = arith.addf %266, %265 : vector<2x32xf32>
    %268 = arith.divf %266, %267 : vector<2x32xf32>
    %269 = vector.extract_strided_slice %260 {offsets = [0, 32], sizes = [2, 32], strides = [1, 1]} : vector<2x96xf32> to vector<2x32xf32>
    %270 = vector.extract_strided_slice %259 {offsets = [0, 32], sizes = [2, 32], strides = [1, 1]} : vector<2x96xf32> to vector<2x32xf32>
    %271 = arith.addf %269, %270 : vector<2x32xf32>
    %272 = arith.negf %271 : vector<2x32xf32>
    %273 = math.exp %272 : vector<2x32xf32>
    %cst_63 = arith.constant 1.000000e+00 : f32
    %274 = vector.broadcast %cst_63 : f32 to vector<2x32xf32>
    %275 = arith.addf %274, %273 : vector<2x32xf32>
    %276 = arith.divf %274, %275 : vector<2x32xf32>
    %277 = vector.extract_strided_slice %260 {offsets = [0, 64], sizes = [2, 32], strides = [1, 1]} : vector<2x96xf32> to vector<2x32xf32>
    %278 = vector.extract_strided_slice %259 {offsets = [0, 64], sizes = [2, 32], strides = [1, 1]} : vector<2x96xf32> to vector<2x32xf32>
    %279 = vector.broadcast %70 : vector<1x32xf32> to vector<2x32xf32>
    %280 = arith.addf %278, %279 : vector<2x32xf32>
    %281 = arith.mulf %268, %280 : vector<2x32xf32>
    %282 = arith.addf %277, %281 : vector<2x32xf32>
    %283 = math.tanh %282 : vector<2x32xf32>
    %cst_64 = arith.constant 1.000000e+00 : f32
    %284 = vector.broadcast %cst_64 : f32 to vector<2x32xf32>
    %285 = arith.subf %284, %276 : vector<2x32xf32>
    %286 = arith.mulf %285, %283 : vector<2x32xf32>
    %287 = arith.mulf %276, %257 : vector<2x32xf32>
    %288 = arith.addf %286, %287 : vector<2x32xf32>
    %289 = arith.truncf %288 : vector<2x32xf32> to vector<2x32xbf16>
    %cst_65 = arith.constant dense<0.000000e+00> : vector<2x96xf32>
    %290 = tpu.matmul %289, %69, %cst_65 {dimension_numbers = #tpu.dot_dimension_numbers<[1], [0], [0], [1], [0, 0, 1, 1], [], []>} : vector<2x32xbf16>, vector<32x96xbf16>, vector<2x96xf32> -> vector<2x96xf32>
    %291 = vector.extract_strided_slice %63 {offsets = [14, 0], sizes = [2, 96], strides = [1, 1]} : vector<16x96xf32> to vector<2x96xf32>
    %292 = vector.extract_strided_slice %291 {offsets = [0, 0], sizes = [2, 32], strides = [1, 1]} : vector<2x96xf32> to vector<2x32xf32>
    %293 = vector.extract_strided_slice %290 {offsets = [0, 0], sizes = [2, 32], strides = [1, 1]} : vector<2x96xf32> to vector<2x32xf32>
    %294 = arith.addf %292, %293 : vector<2x32xf32>
    %295 = arith.negf %294 : vector<2x32xf32>
    %296 = math.exp %295 : vector<2x32xf32>
    %cst_66 = arith.constant 1.000000e+00 : f32
    %297 = vector.broadcast %cst_66 : f32 to vector<2x32xf32>
    %298 = arith.addf %297, %296 : vector<2x32xf32>
    %299 = arith.divf %297, %298 : vector<2x32xf32>
    %300 = vector.extract_strided_slice %291 {offsets = [0, 32], sizes = [2, 32], strides = [1, 1]} : vector<2x96xf32> to vector<2x32xf32>
    %301 = vector.extract_strided_slice %290 {offsets = [0, 32], sizes = [2, 32], strides = [1, 1]} : vector<2x96xf32> to vector<2x32xf32>
    %302 = arith.addf %300, %301 : vector<2x32xf32>
    %303 = arith.negf %302 : vector<2x32xf32>
    %304 = math.exp %303 : vector<2x32xf32>
    %cst_67 = arith.constant 1.000000e+00 : f32
    %305 = vector.broadcast %cst_67 : f32 to vector<2x32xf32>
    %306 = arith.addf %305, %304 : vector<2x32xf32>
    %307 = arith.divf %305, %306 : vector<2x32xf32>
    %308 = vector.extract_strided_slice %291 {offsets = [0, 64], sizes = [2, 32], strides = [1, 1]} : vector<2x96xf32> to vector<2x32xf32>
    %309 = vector.extract_strided_slice %290 {offsets = [0, 64], sizes = [2, 32], strides = [1, 1]} : vector<2x96xf32> to vector<2x32xf32>
    %310 = vector.broadcast %70 : vector<1x32xf32> to vector<2x32xf32>
    %311 = arith.addf %309, %310 : vector<2x32xf32>
    %312 = arith.mulf %299, %311 : vector<2x32xf32>
    %313 = arith.addf %308, %312 : vector<2x32xf32>
    %314 = math.tanh %313 : vector<2x32xf32>
    %cst_68 = arith.constant 1.000000e+00 : f32
    %315 = vector.broadcast %cst_68 : f32 to vector<2x32xf32>
    %316 = arith.subf %315, %307 : vector<2x32xf32>
    %317 = arith.mulf %316, %314 : vector<2x32xf32>
    %318 = arith.mulf %307, %288 : vector<2x32xf32>
    %319 = arith.addf %317, %318 : vector<2x32xf32>
    %c0_69 = arith.constant 0 : index
    %c0_70 = arith.constant 0 : index
    %320 = vector.load %arg8[%c0_69, %c0_70] : memref<32x96xbf16, #tpu.memory_space<vmem>>, vector<32x96xbf16>
    %c0_71 = arith.constant 0 : index
    %c0_72 = arith.constant 0 : index
    %321 = vector.load %arg10[%c0_71, %c0_72] : memref<1x32xf32, #tpu.memory_space<vmem>>, vector<1x32xf32>
    %cst_73 = arith.constant 0.000000e+00 : f32
    %322 = vector.broadcast %cst_73 : f32 to vector<2x32xf32>
    %323 = arith.truncf %322 : vector<2x32xf32> to vector<2x32xbf16>
    %cst_74 = arith.constant dense<0.000000e+00> : vector<2x96xf32>
    %324 = tpu.matmul %323, %320, %cst_74 {dimension_numbers = #tpu.dot_dimension_numbers<[1], [0], [0], [1], [0, 0, 1, 1], [], []>} : vector<2x32xbf16>, vector<32x96xbf16>, vector<2x96xf32> -> vector<2x96xf32>
    %325 = vector.extract_strided_slice %68 {offsets = [14, 0], sizes = [2, 96], strides = [1, 1]} : vector<16x96xf32> to vector<2x96xf32>
    %326 = vector.extract_strided_slice %325 {offsets = [0, 0], sizes = [2, 32], strides = [1, 1]} : vector<2x96xf32> to vector<2x32xf32>
    %327 = vector.extract_strided_slice %324 {offsets = [0, 0], sizes = [2, 32], strides = [1, 1]} : vector<2x96xf32> to vector<2x32xf32>
    %328 = arith.addf %326, %327 : vector<2x32xf32>
    %329 = arith.negf %328 : vector<2x32xf32>
    %330 = math.exp %329 : vector<2x32xf32>
    %cst_75 = arith.constant 1.000000e+00 : f32
    %331 = vector.broadcast %cst_75 : f32 to vector<2x32xf32>
    %332 = arith.addf %331, %330 : vector<2x32xf32>
    %333 = arith.divf %331, %332 : vector<2x32xf32>
    %334 = vector.extract_strided_slice %325 {offsets = [0, 32], sizes = [2, 32], strides = [1, 1]} : vector<2x96xf32> to vector<2x32xf32>
    %335 = vector.extract_strided_slice %324 {offsets = [0, 32], sizes = [2, 32], strides = [1, 1]} : vector<2x96xf32> to vector<2x32xf32>
    %336 = arith.addf %334, %335 : vector<2x32xf32>
    %337 = arith.negf %336 : vector<2x32xf32>
    %338 = math.exp %337 : vector<2x32xf32>
    %cst_76 = arith.constant 1.000000e+00 : f32
    %339 = vector.broadcast %cst_76 : f32 to vector<2x32xf32>
    %340 = arith.addf %339, %338 : vector<2x32xf32>
    %341 = arith.divf %339, %340 : vector<2x32xf32>
    %342 = vector.extract_strided_slice %325 {offsets = [0, 64], sizes = [2, 32], strides = [1, 1]} : vector<2x96xf32> to vector<2x32xf32>
    %343 = vector.extract_strided_slice %324 {offsets = [0, 64], sizes = [2, 32], strides = [1, 1]} : vector<2x96xf32> to vector<2x32xf32>
    %344 = vector.broadcast %321 : vector<1x32xf32> to vector<2x32xf32>
    %345 = arith.addf %343, %344 : vector<2x32xf32>
    %346 = arith.mulf %333, %345 : vector<2x32xf32>
    %347 = arith.addf %342, %346 : vector<2x32xf32>
    %348 = math.tanh %347 : vector<2x32xf32>
    %cst_77 = arith.constant 1.000000e+00 : f32
    %349 = vector.broadcast %cst_77 : f32 to vector<2x32xf32>
    %350 = arith.subf %349, %341 : vector<2x32xf32>
    %351 = arith.mulf %350, %348 : vector<2x32xf32>
    %352 = arith.mulf %341, %322 : vector<2x32xf32>
    %353 = arith.addf %351, %352 : vector<2x32xf32>
    %354 = arith.truncf %353 : vector<2x32xf32> to vector<2x32xbf16>
    %cst_78 = arith.constant dense<0.000000e+00> : vector<2x96xf32>
    %355 = tpu.matmul %354, %320, %cst_78 {dimension_numbers = #tpu.dot_dimension_numbers<[1], [0], [0], [1], [0, 0, 1, 1], [], []>} : vector<2x32xbf16>, vector<32x96xbf16>, vector<2x96xf32> -> vector<2x96xf32>
    %356 = vector.extract_strided_slice %68 {offsets = [12, 0], sizes = [2, 96], strides = [1, 1]} : vector<16x96xf32> to vector<2x96xf32>
    %357 = vector.extract_strided_slice %356 {offsets = [0, 0], sizes = [2, 32], strides = [1, 1]} : vector<2x96xf32> to vector<2x32xf32>
    %358 = vector.extract_strided_slice %355 {offsets = [0, 0], sizes = [2, 32], strides = [1, 1]} : vector<2x96xf32> to vector<2x32xf32>
    %359 = arith.addf %357, %358 : vector<2x32xf32>
    %360 = arith.negf %359 : vector<2x32xf32>
    %361 = math.exp %360 : vector<2x32xf32>
    %cst_79 = arith.constant 1.000000e+00 : f32
    %362 = vector.broadcast %cst_79 : f32 to vector<2x32xf32>
    %363 = arith.addf %362, %361 : vector<2x32xf32>
    %364 = arith.divf %362, %363 : vector<2x32xf32>
    %365 = vector.extract_strided_slice %356 {offsets = [0, 32], sizes = [2, 32], strides = [1, 1]} : vector<2x96xf32> to vector<2x32xf32>
    %366 = vector.extract_strided_slice %355 {offsets = [0, 32], sizes = [2, 32], strides = [1, 1]} : vector<2x96xf32> to vector<2x32xf32>
    %367 = arith.addf %365, %366 : vector<2x32xf32>
    %368 = arith.negf %367 : vector<2x32xf32>
    %369 = math.exp %368 : vector<2x32xf32>
    %cst_80 = arith.constant 1.000000e+00 : f32
    %370 = vector.broadcast %cst_80 : f32 to vector<2x32xf32>
    %371 = arith.addf %370, %369 : vector<2x32xf32>
    %372 = arith.divf %370, %371 : vector<2x32xf32>
    %373 = vector.extract_strided_slice %356 {offsets = [0, 64], sizes = [2, 32], strides = [1, 1]} : vector<2x96xf32> to vector<2x32xf32>
    %374 = vector.extract_strided_slice %355 {offsets = [0, 64], sizes = [2, 32], strides = [1, 1]} : vector<2x96xf32> to vector<2x32xf32>
    %375 = vector.broadcast %321 : vector<1x32xf32> to vector<2x32xf32>
    %376 = arith.addf %374, %375 : vector<2x32xf32>
    %377 = arith.mulf %364, %376 : vector<2x32xf32>
    %378 = arith.addf %373, %377 : vector<2x32xf32>
    %379 = math.tanh %378 : vector<2x32xf32>
    %cst_81 = arith.constant 1.000000e+00 : f32
    %380 = vector.broadcast %cst_81 : f32 to vector<2x32xf32>
    %381 = arith.subf %380, %372 : vector<2x32xf32>
    %382 = arith.mulf %381, %379 : vector<2x32xf32>
    %383 = arith.mulf %372, %353 : vector<2x32xf32>
    %384 = arith.addf %382, %383 : vector<2x32xf32>
    %385 = arith.truncf %384 : vector<2x32xf32> to vector<2x32xbf16>
    %cst_82 = arith.constant dense<0.000000e+00> : vector<2x96xf32>
    %386 = tpu.matmul %385, %320, %cst_82 {dimension_numbers = #tpu.dot_dimension_numbers<[1], [0], [0], [1], [0, 0, 1, 1], [], []>} : vector<2x32xbf16>, vector<32x96xbf16>, vector<2x96xf32> -> vector<2x96xf32>
    %387 = vector.extract_strided_slice %68 {offsets = [10, 0], sizes = [2, 96], strides = [1, 1]} : vector<16x96xf32> to vector<2x96xf32>
    %388 = vector.extract_strided_slice %387 {offsets = [0, 0], sizes = [2, 32], strides = [1, 1]} : vector<2x96xf32> to vector<2x32xf32>
    %389 = vector.extract_strided_slice %386 {offsets = [0, 0], sizes = [2, 32], strides = [1, 1]} : vector<2x96xf32> to vector<2x32xf32>
    %390 = arith.addf %388, %389 : vector<2x32xf32>
    %391 = arith.negf %390 : vector<2x32xf32>
    %392 = math.exp %391 : vector<2x32xf32>
    %cst_83 = arith.constant 1.000000e+00 : f32
    %393 = vector.broadcast %cst_83 : f32 to vector<2x32xf32>
    %394 = arith.addf %393, %392 : vector<2x32xf32>
    %395 = arith.divf %393, %394 : vector<2x32xf32>
    %396 = vector.extract_strided_slice %387 {offsets = [0, 32], sizes = [2, 32], strides = [1, 1]} : vector<2x96xf32> to vector<2x32xf32>
    %397 = vector.extract_strided_slice %386 {offsets = [0, 32], sizes = [2, 32], strides = [1, 1]} : vector<2x96xf32> to vector<2x32xf32>
    %398 = arith.addf %396, %397 : vector<2x32xf32>
    %399 = arith.negf %398 : vector<2x32xf32>
    %400 = math.exp %399 : vector<2x32xf32>
    %cst_84 = arith.constant 1.000000e+00 : f32
    %401 = vector.broadcast %cst_84 : f32 to vector<2x32xf32>
    %402 = arith.addf %401, %400 : vector<2x32xf32>
    %403 = arith.divf %401, %402 : vector<2x32xf32>
    %404 = vector.extract_strided_slice %387 {offsets = [0, 64], sizes = [2, 32], strides = [1, 1]} : vector<2x96xf32> to vector<2x32xf32>
    %405 = vector.extract_strided_slice %386 {offsets = [0, 64], sizes = [2, 32], strides = [1, 1]} : vector<2x96xf32> to vector<2x32xf32>
    %406 = vector.broadcast %321 : vector<1x32xf32> to vector<2x32xf32>
    %407 = arith.addf %405, %406 : vector<2x32xf32>
    %408 = arith.mulf %395, %407 : vector<2x32xf32>
    %409 = arith.addf %404, %408 : vector<2x32xf32>
    %410 = math.tanh %409 : vector<2x32xf32>
    %cst_85 = arith.constant 1.000000e+00 : f32
    %411 = vector.broadcast %cst_85 : f32 to vector<2x32xf32>
    %412 = arith.subf %411, %403 : vector<2x32xf32>
    %413 = arith.mulf %412, %410 : vector<2x32xf32>
    %414 = arith.mulf %403, %384 : vector<2x32xf32>
    %415 = arith.addf %413, %414 : vector<2x32xf32>
    %416 = arith.truncf %415 : vector<2x32xf32> to vector<2x32xbf16>
    %cst_86 = arith.constant dense<0.000000e+00> : vector<2x96xf32>
    %417 = tpu.matmul %416, %320, %cst_86 {dimension_numbers = #tpu.dot_dimension_numbers<[1], [0], [0], [1], [0, 0, 1, 1], [], []>} : vector<2x32xbf16>, vector<32x96xbf16>, vector<2x96xf32> -> vector<2x96xf32>
    %418 = vector.extract_strided_slice %68 {offsets = [8, 0], sizes = [2, 96], strides = [1, 1]} : vector<16x96xf32> to vector<2x96xf32>
    %419 = vector.extract_strided_slice %418 {offsets = [0, 0], sizes = [2, 32], strides = [1, 1]} : vector<2x96xf32> to vector<2x32xf32>
    %420 = vector.extract_strided_slice %417 {offsets = [0, 0], sizes = [2, 32], strides = [1, 1]} : vector<2x96xf32> to vector<2x32xf32>
    %421 = arith.addf %419, %420 : vector<2x32xf32>
    %422 = arith.negf %421 : vector<2x32xf32>
    %423 = math.exp %422 : vector<2x32xf32>
    %cst_87 = arith.constant 1.000000e+00 : f32
    %424 = vector.broadcast %cst_87 : f32 to vector<2x32xf32>
    %425 = arith.addf %424, %423 : vector<2x32xf32>
    %426 = arith.divf %424, %425 : vector<2x32xf32>
    %427 = vector.extract_strided_slice %418 {offsets = [0, 32], sizes = [2, 32], strides = [1, 1]} : vector<2x96xf32> to vector<2x32xf32>
    %428 = vector.extract_strided_slice %417 {offsets = [0, 32], sizes = [2, 32], strides = [1, 1]} : vector<2x96xf32> to vector<2x32xf32>
    %429 = arith.addf %427, %428 : vector<2x32xf32>
    %430 = arith.negf %429 : vector<2x32xf32>
    %431 = math.exp %430 : vector<2x32xf32>
    %cst_88 = arith.constant 1.000000e+00 : f32
    %432 = vector.broadcast %cst_88 : f32 to vector<2x32xf32>
    %433 = arith.addf %432, %431 : vector<2x32xf32>
    %434 = arith.divf %432, %433 : vector<2x32xf32>
    %435 = vector.extract_strided_slice %418 {offsets = [0, 64], sizes = [2, 32], strides = [1, 1]} : vector<2x96xf32> to vector<2x32xf32>
    %436 = vector.extract_strided_slice %417 {offsets = [0, 64], sizes = [2, 32], strides = [1, 1]} : vector<2x96xf32> to vector<2x32xf32>
    %437 = vector.broadcast %321 : vector<1x32xf32> to vector<2x32xf32>
    %438 = arith.addf %436, %437 : vector<2x32xf32>
    %439 = arith.mulf %426, %438 : vector<2x32xf32>
    %440 = arith.addf %435, %439 : vector<2x32xf32>
    %441 = math.tanh %440 : vector<2x32xf32>
    %cst_89 = arith.constant 1.000000e+00 : f32
    %442 = vector.broadcast %cst_89 : f32 to vector<2x32xf32>
    %443 = arith.subf %442, %434 : vector<2x32xf32>
    %444 = arith.mulf %443, %441 : vector<2x32xf32>
    %445 = arith.mulf %434, %415 : vector<2x32xf32>
    %446 = arith.addf %444, %445 : vector<2x32xf32>
    %447 = arith.truncf %446 : vector<2x32xf32> to vector<2x32xbf16>
    %cst_90 = arith.constant dense<0.000000e+00> : vector<2x96xf32>
    %448 = tpu.matmul %447, %320, %cst_90 {dimension_numbers = #tpu.dot_dimension_numbers<[1], [0], [0], [1], [0, 0, 1, 1], [], []>} : vector<2x32xbf16>, vector<32x96xbf16>, vector<2x96xf32> -> vector<2x96xf32>
    %449 = vector.extract_strided_slice %68 {offsets = [6, 0], sizes = [2, 96], strides = [1, 1]} : vector<16x96xf32> to vector<2x96xf32>
    %450 = vector.extract_strided_slice %449 {offsets = [0, 0], sizes = [2, 32], strides = [1, 1]} : vector<2x96xf32> to vector<2x32xf32>
    %451 = vector.extract_strided_slice %448 {offsets = [0, 0], sizes = [2, 32], strides = [1, 1]} : vector<2x96xf32> to vector<2x32xf32>
    %452 = arith.addf %450, %451 : vector<2x32xf32>
    %453 = arith.negf %452 : vector<2x32xf32>
    %454 = math.exp %453 : vector<2x32xf32>
    %cst_91 = arith.constant 1.000000e+00 : f32
    %455 = vector.broadcast %cst_91 : f32 to vector<2x32xf32>
    %456 = arith.addf %455, %454 : vector<2x32xf32>
    %457 = arith.divf %455, %456 : vector<2x32xf32>
    %458 = vector.extract_strided_slice %449 {offsets = [0, 32], sizes = [2, 32], strides = [1, 1]} : vector<2x96xf32> to vector<2x32xf32>
    %459 = vector.extract_strided_slice %448 {offsets = [0, 32], sizes = [2, 32], strides = [1, 1]} : vector<2x96xf32> to vector<2x32xf32>
    %460 = arith.addf %458, %459 : vector<2x32xf32>
    %461 = arith.negf %460 : vector<2x32xf32>
    %462 = math.exp %461 : vector<2x32xf32>
    %cst_92 = arith.constant 1.000000e+00 : f32
    %463 = vector.broadcast %cst_92 : f32 to vector<2x32xf32>
    %464 = arith.addf %463, %462 : vector<2x32xf32>
    %465 = arith.divf %463, %464 : vector<2x32xf32>
    %466 = vector.extract_strided_slice %449 {offsets = [0, 64], sizes = [2, 32], strides = [1, 1]} : vector<2x96xf32> to vector<2x32xf32>
    %467 = vector.extract_strided_slice %448 {offsets = [0, 64], sizes = [2, 32], strides = [1, 1]} : vector<2x96xf32> to vector<2x32xf32>
    %468 = vector.broadcast %321 : vector<1x32xf32> to vector<2x32xf32>
    %469 = arith.addf %467, %468 : vector<2x32xf32>
    %470 = arith.mulf %457, %469 : vector<2x32xf32>
    %471 = arith.addf %466, %470 : vector<2x32xf32>
    %472 = math.tanh %471 : vector<2x32xf32>
    %cst_93 = arith.constant 1.000000e+00 : f32
    %473 = vector.broadcast %cst_93 : f32 to vector<2x32xf32>
    %474 = arith.subf %473, %465 : vector<2x32xf32>
    %475 = arith.mulf %474, %472 : vector<2x32xf32>
    %476 = arith.mulf %465, %446 : vector<2x32xf32>
    %477 = arith.addf %475, %476 : vector<2x32xf32>
    %478 = arith.truncf %477 : vector<2x32xf32> to vector<2x32xbf16>
    %cst_94 = arith.constant dense<0.000000e+00> : vector<2x96xf32>
    %479 = tpu.matmul %478, %320, %cst_94 {dimension_numbers = #tpu.dot_dimension_numbers<[1], [0], [0], [1], [0, 0, 1, 1], [], []>} : vector<2x32xbf16>, vector<32x96xbf16>, vector<2x96xf32> -> vector<2x96xf32>
    %480 = vector.extract_strided_slice %68 {offsets = [4, 0], sizes = [2, 96], strides = [1, 1]} : vector<16x96xf32> to vector<2x96xf32>
    %481 = vector.extract_strided_slice %480 {offsets = [0, 0], sizes = [2, 32], strides = [1, 1]} : vector<2x96xf32> to vector<2x32xf32>
    %482 = vector.extract_strided_slice %479 {offsets = [0, 0], sizes = [2, 32], strides = [1, 1]} : vector<2x96xf32> to vector<2x32xf32>
    %483 = arith.addf %481, %482 : vector<2x32xf32>
    %484 = arith.negf %483 : vector<2x32xf32>
    %485 = math.exp %484 : vector<2x32xf32>
    %cst_95 = arith.constant 1.000000e+00 : f32
    %486 = vector.broadcast %cst_95 : f32 to vector<2x32xf32>
    %487 = arith.addf %486, %485 : vector<2x32xf32>
    %488 = arith.divf %486, %487 : vector<2x32xf32>
    %489 = vector.extract_strided_slice %480 {offsets = [0, 32], sizes = [2, 32], strides = [1, 1]} : vector<2x96xf32> to vector<2x32xf32>
    %490 = vector.extract_strided_slice %479 {offsets = [0, 32], sizes = [2, 32], strides = [1, 1]} : vector<2x96xf32> to vector<2x32xf32>
    %491 = arith.addf %489, %490 : vector<2x32xf32>
    %492 = arith.negf %491 : vector<2x32xf32>
    %493 = math.exp %492 : vector<2x32xf32>
    %cst_96 = arith.constant 1.000000e+00 : f32
    %494 = vector.broadcast %cst_96 : f32 to vector<2x32xf32>
    %495 = arith.addf %494, %493 : vector<2x32xf32>
    %496 = arith.divf %494, %495 : vector<2x32xf32>
    %497 = vector.extract_strided_slice %480 {offsets = [0, 64], sizes = [2, 32], strides = [1, 1]} : vector<2x96xf32> to vector<2x32xf32>
    %498 = vector.extract_strided_slice %479 {offsets = [0, 64], sizes = [2, 32], strides = [1, 1]} : vector<2x96xf32> to vector<2x32xf32>
    %499 = vector.broadcast %321 : vector<1x32xf32> to vector<2x32xf32>
    %500 = arith.addf %498, %499 : vector<2x32xf32>
    %501 = arith.mulf %488, %500 : vector<2x32xf32>
    %502 = arith.addf %497, %501 : vector<2x32xf32>
    %503 = math.tanh %502 : vector<2x32xf32>
    %cst_97 = arith.constant 1.000000e+00 : f32
    %504 = vector.broadcast %cst_97 : f32 to vector<2x32xf32>
    %505 = arith.subf %504, %496 : vector<2x32xf32>
    %506 = arith.mulf %505, %503 : vector<2x32xf32>
    %507 = arith.mulf %496, %477 : vector<2x32xf32>
    %508 = arith.addf %506, %507 : vector<2x32xf32>
    %509 = arith.truncf %508 : vector<2x32xf32> to vector<2x32xbf16>
    %cst_98 = arith.constant dense<0.000000e+00> : vector<2x96xf32>
    %510 = tpu.matmul %509, %320, %cst_98 {dimension_numbers = #tpu.dot_dimension_numbers<[1], [0], [0], [1], [0, 0, 1, 1], [], []>} : vector<2x32xbf16>, vector<32x96xbf16>, vector<2x96xf32> -> vector<2x96xf32>
    %511 = vector.extract_strided_slice %68 {offsets = [2, 0], sizes = [2, 96], strides = [1, 1]} : vector<16x96xf32> to vector<2x96xf32>
    %512 = vector.extract_strided_slice %511 {offsets = [0, 0], sizes = [2, 32], strides = [1, 1]} : vector<2x96xf32> to vector<2x32xf32>
    %513 = vector.extract_strided_slice %510 {offsets = [0, 0], sizes = [2, 32], strides = [1, 1]} : vector<2x96xf32> to vector<2x32xf32>
    %514 = arith.addf %512, %513 : vector<2x32xf32>
    %515 = arith.negf %514 : vector<2x32xf32>
    %516 = math.exp %515 : vector<2x32xf32>
    %cst_99 = arith.constant 1.000000e+00 : f32
    %517 = vector.broadcast %cst_99 : f32 to vector<2x32xf32>
    %518 = arith.addf %517, %516 : vector<2x32xf32>
    %519 = arith.divf %517, %518 : vector<2x32xf32>
    %520 = vector.extract_strided_slice %511 {offsets = [0, 32], sizes = [2, 32], strides = [1, 1]} : vector<2x96xf32> to vector<2x32xf32>
    %521 = vector.extract_strided_slice %510 {offsets = [0, 32], sizes = [2, 32], strides = [1, 1]} : vector<2x96xf32> to vector<2x32xf32>
    %522 = arith.addf %520, %521 : vector<2x32xf32>
    %523 = arith.negf %522 : vector<2x32xf32>
    %524 = math.exp %523 : vector<2x32xf32>
    %cst_100 = arith.constant 1.000000e+00 : f32
    %525 = vector.broadcast %cst_100 : f32 to vector<2x32xf32>
    %526 = arith.addf %525, %524 : vector<2x32xf32>
    %527 = arith.divf %525, %526 : vector<2x32xf32>
    %528 = vector.extract_strided_slice %511 {offsets = [0, 64], sizes = [2, 32], strides = [1, 1]} : vector<2x96xf32> to vector<2x32xf32>
    %529 = vector.extract_strided_slice %510 {offsets = [0, 64], sizes = [2, 32], strides = [1, 1]} : vector<2x96xf32> to vector<2x32xf32>
    %530 = vector.broadcast %321 : vector<1x32xf32> to vector<2x32xf32>
    %531 = arith.addf %529, %530 : vector<2x32xf32>
    %532 = arith.mulf %519, %531 : vector<2x32xf32>
    %533 = arith.addf %528, %532 : vector<2x32xf32>
    %534 = math.tanh %533 : vector<2x32xf32>
    %cst_101 = arith.constant 1.000000e+00 : f32
    %535 = vector.broadcast %cst_101 : f32 to vector<2x32xf32>
    %536 = arith.subf %535, %527 : vector<2x32xf32>
    %537 = arith.mulf %536, %534 : vector<2x32xf32>
    %538 = arith.mulf %527, %508 : vector<2x32xf32>
    %539 = arith.addf %537, %538 : vector<2x32xf32>
    %540 = arith.truncf %539 : vector<2x32xf32> to vector<2x32xbf16>
    %cst_102 = arith.constant dense<0.000000e+00> : vector<2x96xf32>
    %541 = tpu.matmul %540, %320, %cst_102 {dimension_numbers = #tpu.dot_dimension_numbers<[1], [0], [0], [1], [0, 0, 1, 1], [], []>} : vector<2x32xbf16>, vector<32x96xbf16>, vector<2x96xf32> -> vector<2x96xf32>
    %542 = vector.extract_strided_slice %68 {offsets = [0, 0], sizes = [2, 96], strides = [1, 1]} : vector<16x96xf32> to vector<2x96xf32>
    %543 = vector.extract_strided_slice %542 {offsets = [0, 0], sizes = [2, 32], strides = [1, 1]} : vector<2x96xf32> to vector<2x32xf32>
    %544 = vector.extract_strided_slice %541 {offsets = [0, 0], sizes = [2, 32], strides = [1, 1]} : vector<2x96xf32> to vector<2x32xf32>
    %545 = arith.addf %543, %544 : vector<2x32xf32>
    %546 = arith.negf %545 : vector<2x32xf32>
    %547 = math.exp %546 : vector<2x32xf32>
    %cst_103 = arith.constant 1.000000e+00 : f32
    %548 = vector.broadcast %cst_103 : f32 to vector<2x32xf32>
    %549 = arith.addf %548, %547 : vector<2x32xf32>
    %550 = arith.divf %548, %549 : vector<2x32xf32>
    %551 = vector.extract_strided_slice %542 {offsets = [0, 32], sizes = [2, 32], strides = [1, 1]} : vector<2x96xf32> to vector<2x32xf32>
    %552 = vector.extract_strided_slice %541 {offsets = [0, 32], sizes = [2, 32], strides = [1, 1]} : vector<2x96xf32> to vector<2x32xf32>
    %553 = arith.addf %551, %552 : vector<2x32xf32>
    %554 = arith.negf %553 : vector<2x32xf32>
    %555 = math.exp %554 : vector<2x32xf32>
    %cst_104 = arith.constant 1.000000e+00 : f32
    %556 = vector.broadcast %cst_104 : f32 to vector<2x32xf32>
    %557 = arith.addf %556, %555 : vector<2x32xf32>
    %558 = arith.divf %556, %557 : vector<2x32xf32>
    %559 = vector.extract_strided_slice %542 {offsets = [0, 64], sizes = [2, 32], strides = [1, 1]} : vector<2x96xf32> to vector<2x32xf32>
    %560 = vector.extract_strided_slice %541 {offsets = [0, 64], sizes = [2, 32], strides = [1, 1]} : vector<2x96xf32> to vector<2x32xf32>
    %561 = vector.broadcast %321 : vector<1x32xf32> to vector<2x32xf32>
    %562 = arith.addf %560, %561 : vector<2x32xf32>
    %563 = arith.mulf %550, %562 : vector<2x32xf32>
    %564 = arith.addf %559, %563 : vector<2x32xf32>
    %565 = math.tanh %564 : vector<2x32xf32>
    %cst_105 = arith.constant 1.000000e+00 : f32
    %566 = vector.broadcast %cst_105 : f32 to vector<2x32xf32>
    %567 = arith.subf %566, %558 : vector<2x32xf32>
    %568 = arith.mulf %567, %565 : vector<2x32xf32>
    %569 = arith.mulf %558, %539 : vector<2x32xf32>
    %570 = arith.addf %568, %569 : vector<2x32xf32>
    %571 = tpu.concatenate %102, %133, %164, %195, %226, %257, %288, %319 in 0 : vector<2x32xf32>, vector<2x32xf32>, vector<2x32xf32>, vector<2x32xf32>, vector<2x32xf32>, vector<2x32xf32>, vector<2x32xf32>, vector<2x32xf32> -> vector<16x32xf32>
    %572 = arith.truncf %571 : vector<16x32xf32> to vector<16x32xbf16>
    %573 = tpu.concatenate %570, %539, %508, %477, %446, %415, %384, %353 in 0 : vector<2x32xf32>, vector<2x32xf32>, vector<2x32xf32>, vector<2x32xf32>, vector<2x32xf32>, vector<2x32xf32>, vector<2x32xf32>, vector<2x32xf32> -> vector<16x32xf32>
    %574 = arith.truncf %573 : vector<16x32xf32> to vector<16x32xbf16>
    %c0_106 = arith.constant 0 : index
    %c0_107 = arith.constant 0 : index
    %575 = vector.load %arg11[%c0_106, %c0_107] : memref<32x96xbf16, #tpu.memory_space<vmem>>, vector<32x96xbf16>
    %cst_108 = arith.constant dense<0.000000e+00> : vector<16x96xf32>
    %576 = tpu.matmul %572, %575, %cst_108 {dimension_numbers = #tpu.dot_dimension_numbers<[1], [0], [0], [1], [0, 0, 1, 1], [], []>} : vector<16x32xbf16>, vector<32x96xbf16>, vector<16x96xf32> -> vector<16x96xf32>
    %c0_109 = arith.constant 0 : index
    %c0_110 = arith.constant 0 : index
    %577 = vector.load %arg12[%c0_109, %c0_110] : memref<32x96xbf16, #tpu.memory_space<vmem>>, vector<32x96xbf16>
    %cst_111 = arith.constant dense<0.000000e+00> : vector<16x96xf32>
    %578 = tpu.matmul %574, %577, %cst_111 {dimension_numbers = #tpu.dot_dimension_numbers<[1], [0], [0], [1], [0, 0, 1, 1], [], []>} : vector<16x32xbf16>, vector<32x96xbf16>, vector<16x96xf32> -> vector<16x96xf32>
    %579 = arith.addf %576, %578 : vector<16x96xf32>
    %c0_112 = arith.constant 0 : index
    %c0_113 = arith.constant 0 : index
    %580 = vector.load %arg14[%c0_112, %c0_113] : memref<1x96xf32, #tpu.memory_space<vmem>>, vector<1x96xf32>
    %581 = vector.broadcast %580 : vector<1x96xf32> to vector<16x96xf32>
    %582 = arith.addf %579, %581 : vector<16x96xf32>
    %c0_114 = arith.constant 0 : index
    %c0_115 = arith.constant 0 : index
    %583 = vector.load %arg16[%c0_114, %c0_115] : memref<32x96xbf16, #tpu.memory_space<vmem>>, vector<32x96xbf16>
    %cst_116 = arith.constant dense<0.000000e+00> : vector<16x96xf32>
    %584 = tpu.matmul %572, %583, %cst_116 {dimension_numbers = #tpu.dot_dimension_numbers<[1], [0], [0], [1], [0, 0, 1, 1], [], []>} : vector<16x32xbf16>, vector<32x96xbf16>, vector<16x96xf32> -> vector<16x96xf32>
    %c0_117 = arith.constant 0 : index
    %c0_118 = arith.constant 0 : index
    %585 = vector.load %arg17[%c0_117, %c0_118] : memref<32x96xbf16, #tpu.memory_space<vmem>>, vector<32x96xbf16>
    %cst_119 = arith.constant dense<0.000000e+00> : vector<16x96xf32>
    %586 = tpu.matmul %574, %585, %cst_119 {dimension_numbers = #tpu.dot_dimension_numbers<[1], [0], [0], [1], [0, 0, 1, 1], [], []>} : vector<16x32xbf16>, vector<32x96xbf16>, vector<16x96xf32> -> vector<16x96xf32>
    %587 = arith.addf %584, %586 : vector<16x96xf32>
    %c0_120 = arith.constant 0 : index
    %c0_121 = arith.constant 0 : index
    %588 = vector.load %arg19[%c0_120, %c0_121] : memref<1x96xf32, #tpu.memory_space<vmem>>, vector<1x96xf32>
    %589 = vector.broadcast %588 : vector<1x96xf32> to vector<16x96xf32>
    %590 = arith.addf %587, %589 : vector<16x96xf32>
    %c0_122 = arith.constant 0 : index
    %c0_123 = arith.constant 0 : index
    %591 = vector.load %arg13[%c0_122, %c0_123] : memref<32x96xbf16, #tpu.memory_space<vmem>>, vector<32x96xbf16>
    %c0_124 = arith.constant 0 : index
    %c0_125 = arith.constant 0 : index
    %592 = vector.load %arg15[%c0_124, %c0_125] : memref<1x32xf32, #tpu.memory_space<vmem>>, vector<1x32xf32>
    %cst_126 = arith.constant 0.000000e+00 : f32
    %593 = vector.broadcast %cst_126 : f32 to vector<2x32xf32>
    %594 = arith.truncf %593 : vector<2x32xf32> to vector<2x32xbf16>
    %cst_127 = arith.constant dense<0.000000e+00> : vector<2x96xf32>
    %595 = tpu.matmul %594, %591, %cst_127 {dimension_numbers = #tpu.dot_dimension_numbers<[1], [0], [0], [1], [0, 0, 1, 1], [], []>} : vector<2x32xbf16>, vector<32x96xbf16>, vector<2x96xf32> -> vector<2x96xf32>
    %596 = vector.extract_strided_slice %582 {offsets = [0, 0], sizes = [2, 96], strides = [1, 1]} : vector<16x96xf32> to vector<2x96xf32>
    %597 = vector.extract_strided_slice %596 {offsets = [0, 0], sizes = [2, 32], strides = [1, 1]} : vector<2x96xf32> to vector<2x32xf32>
    %598 = vector.extract_strided_slice %595 {offsets = [0, 0], sizes = [2, 32], strides = [1, 1]} : vector<2x96xf32> to vector<2x32xf32>
    %599 = arith.addf %597, %598 : vector<2x32xf32>
    %600 = arith.negf %599 : vector<2x32xf32>
    %601 = math.exp %600 : vector<2x32xf32>
    %cst_128 = arith.constant 1.000000e+00 : f32
    %602 = vector.broadcast %cst_128 : f32 to vector<2x32xf32>
    %603 = arith.addf %602, %601 : vector<2x32xf32>
    %604 = arith.divf %602, %603 : vector<2x32xf32>
    %605 = vector.extract_strided_slice %596 {offsets = [0, 32], sizes = [2, 32], strides = [1, 1]} : vector<2x96xf32> to vector<2x32xf32>
    %606 = vector.extract_strided_slice %595 {offsets = [0, 32], sizes = [2, 32], strides = [1, 1]} : vector<2x96xf32> to vector<2x32xf32>
    %607 = arith.addf %605, %606 : vector<2x32xf32>
    %608 = arith.negf %607 : vector<2x32xf32>
    %609 = math.exp %608 : vector<2x32xf32>
    %cst_129 = arith.constant 1.000000e+00 : f32
    %610 = vector.broadcast %cst_129 : f32 to vector<2x32xf32>
    %611 = arith.addf %610, %609 : vector<2x32xf32>
    %612 = arith.divf %610, %611 : vector<2x32xf32>
    %613 = vector.extract_strided_slice %596 {offsets = [0, 64], sizes = [2, 32], strides = [1, 1]} : vector<2x96xf32> to vector<2x32xf32>
    %614 = vector.extract_strided_slice %595 {offsets = [0, 64], sizes = [2, 32], strides = [1, 1]} : vector<2x96xf32> to vector<2x32xf32>
    %615 = vector.broadcast %592 : vector<1x32xf32> to vector<2x32xf32>
    %616 = arith.addf %614, %615 : vector<2x32xf32>
    %617 = arith.mulf %604, %616 : vector<2x32xf32>
    %618 = arith.addf %613, %617 : vector<2x32xf32>
    %619 = math.tanh %618 : vector<2x32xf32>
    %cst_130 = arith.constant 1.000000e+00 : f32
    %620 = vector.broadcast %cst_130 : f32 to vector<2x32xf32>
    %621 = arith.subf %620, %612 : vector<2x32xf32>
    %622 = arith.mulf %621, %619 : vector<2x32xf32>
    %623 = arith.mulf %612, %593 : vector<2x32xf32>
    %624 = arith.addf %622, %623 : vector<2x32xf32>
    %625 = arith.truncf %624 : vector<2x32xf32> to vector<2x32xbf16>
    %cst_131 = arith.constant dense<0.000000e+00> : vector<2x96xf32>
    %626 = tpu.matmul %625, %591, %cst_131 {dimension_numbers = #tpu.dot_dimension_numbers<[1], [0], [0], [1], [0, 0, 1, 1], [], []>} : vector<2x32xbf16>, vector<32x96xbf16>, vector<2x96xf32> -> vector<2x96xf32>
    %627 = vector.extract_strided_slice %582 {offsets = [2, 0], sizes = [2, 96], strides = [1, 1]} : vector<16x96xf32> to vector<2x96xf32>
    %628 = vector.extract_strided_slice %627 {offsets = [0, 0], sizes = [2, 32], strides = [1, 1]} : vector<2x96xf32> to vector<2x32xf32>
    %629 = vector.extract_strided_slice %626 {offsets = [0, 0], sizes = [2, 32], strides = [1, 1]} : vector<2x96xf32> to vector<2x32xf32>
    %630 = arith.addf %628, %629 : vector<2x32xf32>
    %631 = arith.negf %630 : vector<2x32xf32>
    %632 = math.exp %631 : vector<2x32xf32>
    %cst_132 = arith.constant 1.000000e+00 : f32
    %633 = vector.broadcast %cst_132 : f32 to vector<2x32xf32>
    %634 = arith.addf %633, %632 : vector<2x32xf32>
    %635 = arith.divf %633, %634 : vector<2x32xf32>
    %636 = vector.extract_strided_slice %627 {offsets = [0, 32], sizes = [2, 32], strides = [1, 1]} : vector<2x96xf32> to vector<2x32xf32>
    %637 = vector.extract_strided_slice %626 {offsets = [0, 32], sizes = [2, 32], strides = [1, 1]} : vector<2x96xf32> to vector<2x32xf32>
    %638 = arith.addf %636, %637 : vector<2x32xf32>
    %639 = arith.negf %638 : vector<2x32xf32>
    %640 = math.exp %639 : vector<2x32xf32>
    %cst_133 = arith.constant 1.000000e+00 : f32
    %641 = vector.broadcast %cst_133 : f32 to vector<2x32xf32>
    %642 = arith.addf %641, %640 : vector<2x32xf32>
    %643 = arith.divf %641, %642 : vector<2x32xf32>
    %644 = vector.extract_strided_slice %627 {offsets = [0, 64], sizes = [2, 32], strides = [1, 1]} : vector<2x96xf32> to vector<2x32xf32>
    %645 = vector.extract_strided_slice %626 {offsets = [0, 64], sizes = [2, 32], strides = [1, 1]} : vector<2x96xf32> to vector<2x32xf32>
    %646 = vector.broadcast %592 : vector<1x32xf32> to vector<2x32xf32>
    %647 = arith.addf %645, %646 : vector<2x32xf32>
    %648 = arith.mulf %635, %647 : vector<2x32xf32>
    %649 = arith.addf %644, %648 : vector<2x32xf32>
    %650 = math.tanh %649 : vector<2x32xf32>
    %cst_134 = arith.constant 1.000000e+00 : f32
    %651 = vector.broadcast %cst_134 : f32 to vector<2x32xf32>
    %652 = arith.subf %651, %643 : vector<2x32xf32>
    %653 = arith.mulf %652, %650 : vector<2x32xf32>
    %654 = arith.mulf %643, %624 : vector<2x32xf32>
    %655 = arith.addf %653, %654 : vector<2x32xf32>
    %656 = arith.truncf %655 : vector<2x32xf32> to vector<2x32xbf16>
    %cst_135 = arith.constant dense<0.000000e+00> : vector<2x96xf32>
    %657 = tpu.matmul %656, %591, %cst_135 {dimension_numbers = #tpu.dot_dimension_numbers<[1], [0], [0], [1], [0, 0, 1, 1], [], []>} : vector<2x32xbf16>, vector<32x96xbf16>, vector<2x96xf32> -> vector<2x96xf32>
    %658 = vector.extract_strided_slice %582 {offsets = [4, 0], sizes = [2, 96], strides = [1, 1]} : vector<16x96xf32> to vector<2x96xf32>
    %659 = vector.extract_strided_slice %658 {offsets = [0, 0], sizes = [2, 32], strides = [1, 1]} : vector<2x96xf32> to vector<2x32xf32>
    %660 = vector.extract_strided_slice %657 {offsets = [0, 0], sizes = [2, 32], strides = [1, 1]} : vector<2x96xf32> to vector<2x32xf32>
    %661 = arith.addf %659, %660 : vector<2x32xf32>
    %662 = arith.negf %661 : vector<2x32xf32>
    %663 = math.exp %662 : vector<2x32xf32>
    %cst_136 = arith.constant 1.000000e+00 : f32
    %664 = vector.broadcast %cst_136 : f32 to vector<2x32xf32>
    %665 = arith.addf %664, %663 : vector<2x32xf32>
    %666 = arith.divf %664, %665 : vector<2x32xf32>
    %667 = vector.extract_strided_slice %658 {offsets = [0, 32], sizes = [2, 32], strides = [1, 1]} : vector<2x96xf32> to vector<2x32xf32>
    %668 = vector.extract_strided_slice %657 {offsets = [0, 32], sizes = [2, 32], strides = [1, 1]} : vector<2x96xf32> to vector<2x32xf32>
    %669 = arith.addf %667, %668 : vector<2x32xf32>
    %670 = arith.negf %669 : vector<2x32xf32>
    %671 = math.exp %670 : vector<2x32xf32>
    %cst_137 = arith.constant 1.000000e+00 : f32
    %672 = vector.broadcast %cst_137 : f32 to vector<2x32xf32>
    %673 = arith.addf %672, %671 : vector<2x32xf32>
    %674 = arith.divf %672, %673 : vector<2x32xf32>
    %675 = vector.extract_strided_slice %658 {offsets = [0, 64], sizes = [2, 32], strides = [1, 1]} : vector<2x96xf32> to vector<2x32xf32>
    %676 = vector.extract_strided_slice %657 {offsets = [0, 64], sizes = [2, 32], strides = [1, 1]} : vector<2x96xf32> to vector<2x32xf32>
    %677 = vector.broadcast %592 : vector<1x32xf32> to vector<2x32xf32>
    %678 = arith.addf %676, %677 : vector<2x32xf32>
    %679 = arith.mulf %666, %678 : vector<2x32xf32>
    %680 = arith.addf %675, %679 : vector<2x32xf32>
    %681 = math.tanh %680 : vector<2x32xf32>
    %cst_138 = arith.constant 1.000000e+00 : f32
    %682 = vector.broadcast %cst_138 : f32 to vector<2x32xf32>
    %683 = arith.subf %682, %674 : vector<2x32xf32>
    %684 = arith.mulf %683, %681 : vector<2x32xf32>
    %685 = arith.mulf %674, %655 : vector<2x32xf32>
    %686 = arith.addf %684, %685 : vector<2x32xf32>
    %687 = arith.truncf %686 : vector<2x32xf32> to vector<2x32xbf16>
    %cst_139 = arith.constant dense<0.000000e+00> : vector<2x96xf32>
    %688 = tpu.matmul %687, %591, %cst_139 {dimension_numbers = #tpu.dot_dimension_numbers<[1], [0], [0], [1], [0, 0, 1, 1], [], []>} : vector<2x32xbf16>, vector<32x96xbf16>, vector<2x96xf32> -> vector<2x96xf32>
    %689 = vector.extract_strided_slice %582 {offsets = [6, 0], sizes = [2, 96], strides = [1, 1]} : vector<16x96xf32> to vector<2x96xf32>
    %690 = vector.extract_strided_slice %689 {offsets = [0, 0], sizes = [2, 32], strides = [1, 1]} : vector<2x96xf32> to vector<2x32xf32>
    %691 = vector.extract_strided_slice %688 {offsets = [0, 0], sizes = [2, 32], strides = [1, 1]} : vector<2x96xf32> to vector<2x32xf32>
    %692 = arith.addf %690, %691 : vector<2x32xf32>
    %693 = arith.negf %692 : vector<2x32xf32>
    %694 = math.exp %693 : vector<2x32xf32>
    %cst_140 = arith.constant 1.000000e+00 : f32
    %695 = vector.broadcast %cst_140 : f32 to vector<2x32xf32>
    %696 = arith.addf %695, %694 : vector<2x32xf32>
    %697 = arith.divf %695, %696 : vector<2x32xf32>
    %698 = vector.extract_strided_slice %689 {offsets = [0, 32], sizes = [2, 32], strides = [1, 1]} : vector<2x96xf32> to vector<2x32xf32>
    %699 = vector.extract_strided_slice %688 {offsets = [0, 32], sizes = [2, 32], strides = [1, 1]} : vector<2x96xf32> to vector<2x32xf32>
    %700 = arith.addf %698, %699 : vector<2x32xf32>
    %701 = arith.negf %700 : vector<2x32xf32>
    %702 = math.exp %701 : vector<2x32xf32>
    %cst_141 = arith.constant 1.000000e+00 : f32
    %703 = vector.broadcast %cst_141 : f32 to vector<2x32xf32>
    %704 = arith.addf %703, %702 : vector<2x32xf32>
    %705 = arith.divf %703, %704 : vector<2x32xf32>
    %706 = vector.extract_strided_slice %689 {offsets = [0, 64], sizes = [2, 32], strides = [1, 1]} : vector<2x96xf32> to vector<2x32xf32>
    %707 = vector.extract_strided_slice %688 {offsets = [0, 64], sizes = [2, 32], strides = [1, 1]} : vector<2x96xf32> to vector<2x32xf32>
    %708 = vector.broadcast %592 : vector<1x32xf32> to vector<2x32xf32>
    %709 = arith.addf %707, %708 : vector<2x32xf32>
    %710 = arith.mulf %697, %709 : vector<2x32xf32>
    %711 = arith.addf %706, %710 : vector<2x32xf32>
    %712 = math.tanh %711 : vector<2x32xf32>
    %cst_142 = arith.constant 1.000000e+00 : f32
    %713 = vector.broadcast %cst_142 : f32 to vector<2x32xf32>
    %714 = arith.subf %713, %705 : vector<2x32xf32>
    %715 = arith.mulf %714, %712 : vector<2x32xf32>
    %716 = arith.mulf %705, %686 : vector<2x32xf32>
    %717 = arith.addf %715, %716 : vector<2x32xf32>
    %718 = arith.truncf %717 : vector<2x32xf32> to vector<2x32xbf16>
    %cst_143 = arith.constant dense<0.000000e+00> : vector<2x96xf32>
    %719 = tpu.matmul %718, %591, %cst_143 {dimension_numbers = #tpu.dot_dimension_numbers<[1], [0], [0], [1], [0, 0, 1, 1], [], []>} : vector<2x32xbf16>, vector<32x96xbf16>, vector<2x96xf32> -> vector<2x96xf32>
    %720 = vector.extract_strided_slice %582 {offsets = [8, 0], sizes = [2, 96], strides = [1, 1]} : vector<16x96xf32> to vector<2x96xf32>
    %721 = vector.extract_strided_slice %720 {offsets = [0, 0], sizes = [2, 32], strides = [1, 1]} : vector<2x96xf32> to vector<2x32xf32>
    %722 = vector.extract_strided_slice %719 {offsets = [0, 0], sizes = [2, 32], strides = [1, 1]} : vector<2x96xf32> to vector<2x32xf32>
    %723 = arith.addf %721, %722 : vector<2x32xf32>
    %724 = arith.negf %723 : vector<2x32xf32>
    %725 = math.exp %724 : vector<2x32xf32>
    %cst_144 = arith.constant 1.000000e+00 : f32
    %726 = vector.broadcast %cst_144 : f32 to vector<2x32xf32>
    %727 = arith.addf %726, %725 : vector<2x32xf32>
    %728 = arith.divf %726, %727 : vector<2x32xf32>
    %729 = vector.extract_strided_slice %720 {offsets = [0, 32], sizes = [2, 32], strides = [1, 1]} : vector<2x96xf32> to vector<2x32xf32>
    %730 = vector.extract_strided_slice %719 {offsets = [0, 32], sizes = [2, 32], strides = [1, 1]} : vector<2x96xf32> to vector<2x32xf32>
    %731 = arith.addf %729, %730 : vector<2x32xf32>
    %732 = arith.negf %731 : vector<2x32xf32>
    %733 = math.exp %732 : vector<2x32xf32>
    %cst_145 = arith.constant 1.000000e+00 : f32
    %734 = vector.broadcast %cst_145 : f32 to vector<2x32xf32>
    %735 = arith.addf %734, %733 : vector<2x32xf32>
    %736 = arith.divf %734, %735 : vector<2x32xf32>
    %737 = vector.extract_strided_slice %720 {offsets = [0, 64], sizes = [2, 32], strides = [1, 1]} : vector<2x96xf32> to vector<2x32xf32>
    %738 = vector.extract_strided_slice %719 {offsets = [0, 64], sizes = [2, 32], strides = [1, 1]} : vector<2x96xf32> to vector<2x32xf32>
    %739 = vector.broadcast %592 : vector<1x32xf32> to vector<2x32xf32>
    %740 = arith.addf %738, %739 : vector<2x32xf32>
    %741 = arith.mulf %728, %740 : vector<2x32xf32>
    %742 = arith.addf %737, %741 : vector<2x32xf32>
    %743 = math.tanh %742 : vector<2x32xf32>
    %cst_146 = arith.constant 1.000000e+00 : f32
    %744 = vector.broadcast %cst_146 : f32 to vector<2x32xf32>
    %745 = arith.subf %744, %736 : vector<2x32xf32>
    %746 = arith.mulf %745, %743 : vector<2x32xf32>
    %747 = arith.mulf %736, %717 : vector<2x32xf32>
    %748 = arith.addf %746, %747 : vector<2x32xf32>
    %749 = arith.truncf %748 : vector<2x32xf32> to vector<2x32xbf16>
    %cst_147 = arith.constant dense<0.000000e+00> : vector<2x96xf32>
    %750 = tpu.matmul %749, %591, %cst_147 {dimension_numbers = #tpu.dot_dimension_numbers<[1], [0], [0], [1], [0, 0, 1, 1], [], []>} : vector<2x32xbf16>, vector<32x96xbf16>, vector<2x96xf32> -> vector<2x96xf32>
    %751 = vector.extract_strided_slice %582 {offsets = [10, 0], sizes = [2, 96], strides = [1, 1]} : vector<16x96xf32> to vector<2x96xf32>
    %752 = vector.extract_strided_slice %751 {offsets = [0, 0], sizes = [2, 32], strides = [1, 1]} : vector<2x96xf32> to vector<2x32xf32>
    %753 = vector.extract_strided_slice %750 {offsets = [0, 0], sizes = [2, 32], strides = [1, 1]} : vector<2x96xf32> to vector<2x32xf32>
    %754 = arith.addf %752, %753 : vector<2x32xf32>
    %755 = arith.negf %754 : vector<2x32xf32>
    %756 = math.exp %755 : vector<2x32xf32>
    %cst_148 = arith.constant 1.000000e+00 : f32
    %757 = vector.broadcast %cst_148 : f32 to vector<2x32xf32>
    %758 = arith.addf %757, %756 : vector<2x32xf32>
    %759 = arith.divf %757, %758 : vector<2x32xf32>
    %760 = vector.extract_strided_slice %751 {offsets = [0, 32], sizes = [2, 32], strides = [1, 1]} : vector<2x96xf32> to vector<2x32xf32>
    %761 = vector.extract_strided_slice %750 {offsets = [0, 32], sizes = [2, 32], strides = [1, 1]} : vector<2x96xf32> to vector<2x32xf32>
    %762 = arith.addf %760, %761 : vector<2x32xf32>
    %763 = arith.negf %762 : vector<2x32xf32>
    %764 = math.exp %763 : vector<2x32xf32>
    %cst_149 = arith.constant 1.000000e+00 : f32
    %765 = vector.broadcast %cst_149 : f32 to vector<2x32xf32>
    %766 = arith.addf %765, %764 : vector<2x32xf32>
    %767 = arith.divf %765, %766 : vector<2x32xf32>
    %768 = vector.extract_strided_slice %751 {offsets = [0, 64], sizes = [2, 32], strides = [1, 1]} : vector<2x96xf32> to vector<2x32xf32>
    %769 = vector.extract_strided_slice %750 {offsets = [0, 64], sizes = [2, 32], strides = [1, 1]} : vector<2x96xf32> to vector<2x32xf32>
    %770 = vector.broadcast %592 : vector<1x32xf32> to vector<2x32xf32>
    %771 = arith.addf %769, %770 : vector<2x32xf32>
    %772 = arith.mulf %759, %771 : vector<2x32xf32>
    %773 = arith.addf %768, %772 : vector<2x32xf32>
    %774 = math.tanh %773 : vector<2x32xf32>
    %cst_150 = arith.constant 1.000000e+00 : f32
    %775 = vector.broadcast %cst_150 : f32 to vector<2x32xf32>
    %776 = arith.subf %775, %767 : vector<2x32xf32>
    %777 = arith.mulf %776, %774 : vector<2x32xf32>
    %778 = arith.mulf %767, %748 : vector<2x32xf32>
    %779 = arith.addf %777, %778 : vector<2x32xf32>
    %780 = arith.truncf %779 : vector<2x32xf32> to vector<2x32xbf16>
    %cst_151 = arith.constant dense<0.000000e+00> : vector<2x96xf32>
    %781 = tpu.matmul %780, %591, %cst_151 {dimension_numbers = #tpu.dot_dimension_numbers<[1], [0], [0], [1], [0, 0, 1, 1], [], []>} : vector<2x32xbf16>, vector<32x96xbf16>, vector<2x96xf32> -> vector<2x96xf32>
    %782 = vector.extract_strided_slice %582 {offsets = [12, 0], sizes = [2, 96], strides = [1, 1]} : vector<16x96xf32> to vector<2x96xf32>
    %783 = vector.extract_strided_slice %782 {offsets = [0, 0], sizes = [2, 32], strides = [1, 1]} : vector<2x96xf32> to vector<2x32xf32>
    %784 = vector.extract_strided_slice %781 {offsets = [0, 0], sizes = [2, 32], strides = [1, 1]} : vector<2x96xf32> to vector<2x32xf32>
    %785 = arith.addf %783, %784 : vector<2x32xf32>
    %786 = arith.negf %785 : vector<2x32xf32>
    %787 = math.exp %786 : vector<2x32xf32>
    %cst_152 = arith.constant 1.000000e+00 : f32
    %788 = vector.broadcast %cst_152 : f32 to vector<2x32xf32>
    %789 = arith.addf %788, %787 : vector<2x32xf32>
    %790 = arith.divf %788, %789 : vector<2x32xf32>
    %791 = vector.extract_strided_slice %782 {offsets = [0, 32], sizes = [2, 32], strides = [1, 1]} : vector<2x96xf32> to vector<2x32xf32>
    %792 = vector.extract_strided_slice %781 {offsets = [0, 32], sizes = [2, 32], strides = [1, 1]} : vector<2x96xf32> to vector<2x32xf32>
    %793 = arith.addf %791, %792 : vector<2x32xf32>
    %794 = arith.negf %793 : vector<2x32xf32>
    %795 = math.exp %794 : vector<2x32xf32>
    %cst_153 = arith.constant 1.000000e+00 : f32
    %796 = vector.broadcast %cst_153 : f32 to vector<2x32xf32>
    %797 = arith.addf %796, %795 : vector<2x32xf32>
    %798 = arith.divf %796, %797 : vector<2x32xf32>
    %799 = vector.extract_strided_slice %782 {offsets = [0, 64], sizes = [2, 32], strides = [1, 1]} : vector<2x96xf32> to vector<2x32xf32>
    %800 = vector.extract_strided_slice %781 {offsets = [0, 64], sizes = [2, 32], strides = [1, 1]} : vector<2x96xf32> to vector<2x32xf32>
    %801 = vector.broadcast %592 : vector<1x32xf32> to vector<2x32xf32>
    %802 = arith.addf %800, %801 : vector<2x32xf32>
    %803 = arith.mulf %790, %802 : vector<2x32xf32>
    %804 = arith.addf %799, %803 : vector<2x32xf32>
    %805 = math.tanh %804 : vector<2x32xf32>
    %cst_154 = arith.constant 1.000000e+00 : f32
    %806 = vector.broadcast %cst_154 : f32 to vector<2x32xf32>
    %807 = arith.subf %806, %798 : vector<2x32xf32>
    %808 = arith.mulf %807, %805 : vector<2x32xf32>
    %809 = arith.mulf %798, %779 : vector<2x32xf32>
    %810 = arith.addf %808, %809 : vector<2x32xf32>
    %811 = arith.truncf %810 : vector<2x32xf32> to vector<2x32xbf16>
    %cst_155 = arith.constant dense<0.000000e+00> : vector<2x96xf32>
    %812 = tpu.matmul %811, %591, %cst_155 {dimension_numbers = #tpu.dot_dimension_numbers<[1], [0], [0], [1], [0, 0, 1, 1], [], []>} : vector<2x32xbf16>, vector<32x96xbf16>, vector<2x96xf32> -> vector<2x96xf32>
    %813 = vector.extract_strided_slice %582 {offsets = [14, 0], sizes = [2, 96], strides = [1, 1]} : vector<16x96xf32> to vector<2x96xf32>
    %814 = vector.extract_strided_slice %813 {offsets = [0, 0], sizes = [2, 32], strides = [1, 1]} : vector<2x96xf32> to vector<2x32xf32>
    %815 = vector.extract_strided_slice %812 {offsets = [0, 0], sizes = [2, 32], strides = [1, 1]} : vector<2x96xf32> to vector<2x32xf32>
    %816 = arith.addf %814, %815 : vector<2x32xf32>
    %817 = arith.negf %816 : vector<2x32xf32>
    %818 = math.exp %817 : vector<2x32xf32>
    %cst_156 = arith.constant 1.000000e+00 : f32
    %819 = vector.broadcast %cst_156 : f32 to vector<2x32xf32>
    %820 = arith.addf %819, %818 : vector<2x32xf32>
    %821 = arith.divf %819, %820 : vector<2x32xf32>
    %822 = vector.extract_strided_slice %813 {offsets = [0, 32], sizes = [2, 32], strides = [1, 1]} : vector<2x96xf32> to vector<2x32xf32>
    %823 = vector.extract_strided_slice %812 {offsets = [0, 32], sizes = [2, 32], strides = [1, 1]} : vector<2x96xf32> to vector<2x32xf32>
    %824 = arith.addf %822, %823 : vector<2x32xf32>
    %825 = arith.negf %824 : vector<2x32xf32>
    %826 = math.exp %825 : vector<2x32xf32>
    %cst_157 = arith.constant 1.000000e+00 : f32
    %827 = vector.broadcast %cst_157 : f32 to vector<2x32xf32>
    %828 = arith.addf %827, %826 : vector<2x32xf32>
    %829 = arith.divf %827, %828 : vector<2x32xf32>
    %830 = vector.extract_strided_slice %813 {offsets = [0, 64], sizes = [2, 32], strides = [1, 1]} : vector<2x96xf32> to vector<2x32xf32>
    %831 = vector.extract_strided_slice %812 {offsets = [0, 64], sizes = [2, 32], strides = [1, 1]} : vector<2x96xf32> to vector<2x32xf32>
    %832 = vector.broadcast %592 : vector<1x32xf32> to vector<2x32xf32>
    %833 = arith.addf %831, %832 : vector<2x32xf32>
    %834 = arith.mulf %821, %833 : vector<2x32xf32>
    %835 = arith.addf %830, %834 : vector<2x32xf32>
    %836 = math.tanh %835 : vector<2x32xf32>
    %cst_158 = arith.constant 1.000000e+00 : f32
    %837 = vector.broadcast %cst_158 : f32 to vector<2x32xf32>
    %838 = arith.subf %837, %829 : vector<2x32xf32>
    %839 = arith.mulf %838, %836 : vector<2x32xf32>
    %840 = arith.mulf %829, %810 : vector<2x32xf32>
    %841 = arith.addf %839, %840 : vector<2x32xf32>
    %c0_159 = arith.constant 0 : index
    %c0_160 = arith.constant 0 : index
    %842 = vector.load %arg18[%c0_159, %c0_160] : memref<32x96xbf16, #tpu.memory_space<vmem>>, vector<32x96xbf16>
    %c0_161 = arith.constant 0 : index
    %c0_162 = arith.constant 0 : index
    %843 = vector.load %arg20[%c0_161, %c0_162] : memref<1x32xf32, #tpu.memory_space<vmem>>, vector<1x32xf32>
    %cst_163 = arith.constant 0.000000e+00 : f32
    %844 = vector.broadcast %cst_163 : f32 to vector<2x32xf32>
    %845 = arith.truncf %844 : vector<2x32xf32> to vector<2x32xbf16>
    %cst_164 = arith.constant dense<0.000000e+00> : vector<2x96xf32>
    %846 = tpu.matmul %845, %842, %cst_164 {dimension_numbers = #tpu.dot_dimension_numbers<[1], [0], [0], [1], [0, 0, 1, 1], [], []>} : vector<2x32xbf16>, vector<32x96xbf16>, vector<2x96xf32> -> vector<2x96xf32>
    %847 = vector.extract_strided_slice %590 {offsets = [14, 0], sizes = [2, 96], strides = [1, 1]} : vector<16x96xf32> to vector<2x96xf32>
    %848 = vector.extract_strided_slice %847 {offsets = [0, 0], sizes = [2, 32], strides = [1, 1]} : vector<2x96xf32> to vector<2x32xf32>
    %849 = vector.extract_strided_slice %846 {offsets = [0, 0], sizes = [2, 32], strides = [1, 1]} : vector<2x96xf32> to vector<2x32xf32>
    %850 = arith.addf %848, %849 : vector<2x32xf32>
    %851 = arith.negf %850 : vector<2x32xf32>
    %852 = math.exp %851 : vector<2x32xf32>
    %cst_165 = arith.constant 1.000000e+00 : f32
    %853 = vector.broadcast %cst_165 : f32 to vector<2x32xf32>
    %854 = arith.addf %853, %852 : vector<2x32xf32>
    %855 = arith.divf %853, %854 : vector<2x32xf32>
    %856 = vector.extract_strided_slice %847 {offsets = [0, 32], sizes = [2, 32], strides = [1, 1]} : vector<2x96xf32> to vector<2x32xf32>
    %857 = vector.extract_strided_slice %846 {offsets = [0, 32], sizes = [2, 32], strides = [1, 1]} : vector<2x96xf32> to vector<2x32xf32>
    %858 = arith.addf %856, %857 : vector<2x32xf32>
    %859 = arith.negf %858 : vector<2x32xf32>
    %860 = math.exp %859 : vector<2x32xf32>
    %cst_166 = arith.constant 1.000000e+00 : f32
    %861 = vector.broadcast %cst_166 : f32 to vector<2x32xf32>
    %862 = arith.addf %861, %860 : vector<2x32xf32>
    %863 = arith.divf %861, %862 : vector<2x32xf32>
    %864 = vector.extract_strided_slice %847 {offsets = [0, 64], sizes = [2, 32], strides = [1, 1]} : vector<2x96xf32> to vector<2x32xf32>
    %865 = vector.extract_strided_slice %846 {offsets = [0, 64], sizes = [2, 32], strides = [1, 1]} : vector<2x96xf32> to vector<2x32xf32>
    %866 = vector.broadcast %843 : vector<1x32xf32> to vector<2x32xf32>
    %867 = arith.addf %865, %866 : vector<2x32xf32>
    %868 = arith.mulf %855, %867 : vector<2x32xf32>
    %869 = arith.addf %864, %868 : vector<2x32xf32>
    %870 = math.tanh %869 : vector<2x32xf32>
    %cst_167 = arith.constant 1.000000e+00 : f32
    %871 = vector.broadcast %cst_167 : f32 to vector<2x32xf32>
    %872 = arith.subf %871, %863 : vector<2x32xf32>
    %873 = arith.mulf %872, %870 : vector<2x32xf32>
    %874 = arith.mulf %863, %844 : vector<2x32xf32>
    %875 = arith.addf %873, %874 : vector<2x32xf32>
    %876 = arith.truncf %875 : vector<2x32xf32> to vector<2x32xbf16>
    %cst_168 = arith.constant dense<0.000000e+00> : vector<2x96xf32>
    %877 = tpu.matmul %876, %842, %cst_168 {dimension_numbers = #tpu.dot_dimension_numbers<[1], [0], [0], [1], [0, 0, 1, 1], [], []>} : vector<2x32xbf16>, vector<32x96xbf16>, vector<2x96xf32> -> vector<2x96xf32>
    %878 = vector.extract_strided_slice %590 {offsets = [12, 0], sizes = [2, 96], strides = [1, 1]} : vector<16x96xf32> to vector<2x96xf32>
    %879 = vector.extract_strided_slice %878 {offsets = [0, 0], sizes = [2, 32], strides = [1, 1]} : vector<2x96xf32> to vector<2x32xf32>
    %880 = vector.extract_strided_slice %877 {offsets = [0, 0], sizes = [2, 32], strides = [1, 1]} : vector<2x96xf32> to vector<2x32xf32>
    %881 = arith.addf %879, %880 : vector<2x32xf32>
    %882 = arith.negf %881 : vector<2x32xf32>
    %883 = math.exp %882 : vector<2x32xf32>
    %cst_169 = arith.constant 1.000000e+00 : f32
    %884 = vector.broadcast %cst_169 : f32 to vector<2x32xf32>
    %885 = arith.addf %884, %883 : vector<2x32xf32>
    %886 = arith.divf %884, %885 : vector<2x32xf32>
    %887 = vector.extract_strided_slice %878 {offsets = [0, 32], sizes = [2, 32], strides = [1, 1]} : vector<2x96xf32> to vector<2x32xf32>
    %888 = vector.extract_strided_slice %877 {offsets = [0, 32], sizes = [2, 32], strides = [1, 1]} : vector<2x96xf32> to vector<2x32xf32>
    %889 = arith.addf %887, %888 : vector<2x32xf32>
    %890 = arith.negf %889 : vector<2x32xf32>
    %891 = math.exp %890 : vector<2x32xf32>
    %cst_170 = arith.constant 1.000000e+00 : f32
    %892 = vector.broadcast %cst_170 : f32 to vector<2x32xf32>
    %893 = arith.addf %892, %891 : vector<2x32xf32>
    %894 = arith.divf %892, %893 : vector<2x32xf32>
    %895 = vector.extract_strided_slice %878 {offsets = [0, 64], sizes = [2, 32], strides = [1, 1]} : vector<2x96xf32> to vector<2x32xf32>
    %896 = vector.extract_strided_slice %877 {offsets = [0, 64], sizes = [2, 32], strides = [1, 1]} : vector<2x96xf32> to vector<2x32xf32>
    %897 = vector.broadcast %843 : vector<1x32xf32> to vector<2x32xf32>
    %898 = arith.addf %896, %897 : vector<2x32xf32>
    %899 = arith.mulf %886, %898 : vector<2x32xf32>
    %900 = arith.addf %895, %899 : vector<2x32xf32>
    %901 = math.tanh %900 : vector<2x32xf32>
    %cst_171 = arith.constant 1.000000e+00 : f32
    %902 = vector.broadcast %cst_171 : f32 to vector<2x32xf32>
    %903 = arith.subf %902, %894 : vector<2x32xf32>
    %904 = arith.mulf %903, %901 : vector<2x32xf32>
    %905 = arith.mulf %894, %875 : vector<2x32xf32>
    %906 = arith.addf %904, %905 : vector<2x32xf32>
    %907 = arith.truncf %906 : vector<2x32xf32> to vector<2x32xbf16>
    %cst_172 = arith.constant dense<0.000000e+00> : vector<2x96xf32>
    %908 = tpu.matmul %907, %842, %cst_172 {dimension_numbers = #tpu.dot_dimension_numbers<[1], [0], [0], [1], [0, 0, 1, 1], [], []>} : vector<2x32xbf16>, vector<32x96xbf16>, vector<2x96xf32> -> vector<2x96xf32>
    %909 = vector.extract_strided_slice %590 {offsets = [10, 0], sizes = [2, 96], strides = [1, 1]} : vector<16x96xf32> to vector<2x96xf32>
    %910 = vector.extract_strided_slice %909 {offsets = [0, 0], sizes = [2, 32], strides = [1, 1]} : vector<2x96xf32> to vector<2x32xf32>
    %911 = vector.extract_strided_slice %908 {offsets = [0, 0], sizes = [2, 32], strides = [1, 1]} : vector<2x96xf32> to vector<2x32xf32>
    %912 = arith.addf %910, %911 : vector<2x32xf32>
    %913 = arith.negf %912 : vector<2x32xf32>
    %914 = math.exp %913 : vector<2x32xf32>
    %cst_173 = arith.constant 1.000000e+00 : f32
    %915 = vector.broadcast %cst_173 : f32 to vector<2x32xf32>
    %916 = arith.addf %915, %914 : vector<2x32xf32>
    %917 = arith.divf %915, %916 : vector<2x32xf32>
    %918 = vector.extract_strided_slice %909 {offsets = [0, 32], sizes = [2, 32], strides = [1, 1]} : vector<2x96xf32> to vector<2x32xf32>
    %919 = vector.extract_strided_slice %908 {offsets = [0, 32], sizes = [2, 32], strides = [1, 1]} : vector<2x96xf32> to vector<2x32xf32>
    %920 = arith.addf %918, %919 : vector<2x32xf32>
    %921 = arith.negf %920 : vector<2x32xf32>
    %922 = math.exp %921 : vector<2x32xf32>
    %cst_174 = arith.constant 1.000000e+00 : f32
    %923 = vector.broadcast %cst_174 : f32 to vector<2x32xf32>
    %924 = arith.addf %923, %922 : vector<2x32xf32>
    %925 = arith.divf %923, %924 : vector<2x32xf32>
    %926 = vector.extract_strided_slice %909 {offsets = [0, 64], sizes = [2, 32], strides = [1, 1]} : vector<2x96xf32> to vector<2x32xf32>
    %927 = vector.extract_strided_slice %908 {offsets = [0, 64], sizes = [2, 32], strides = [1, 1]} : vector<2x96xf32> to vector<2x32xf32>
    %928 = vector.broadcast %843 : vector<1x32xf32> to vector<2x32xf32>
    %929 = arith.addf %927, %928 : vector<2x32xf32>
    %930 = arith.mulf %917, %929 : vector<2x32xf32>
    %931 = arith.addf %926, %930 : vector<2x32xf32>
    %932 = math.tanh %931 : vector<2x32xf32>
    %cst_175 = arith.constant 1.000000e+00 : f32
    %933 = vector.broadcast %cst_175 : f32 to vector<2x32xf32>
    %934 = arith.subf %933, %925 : vector<2x32xf32>
    %935 = arith.mulf %934, %932 : vector<2x32xf32>
    %936 = arith.mulf %925, %906 : vector<2x32xf32>
    %937 = arith.addf %935, %936 : vector<2x32xf32>
    %938 = arith.truncf %937 : vector<2x32xf32> to vector<2x32xbf16>
    %cst_176 = arith.constant dense<0.000000e+00> : vector<2x96xf32>
    %939 = tpu.matmul %938, %842, %cst_176 {dimension_numbers = #tpu.dot_dimension_numbers<[1], [0], [0], [1], [0, 0, 1, 1], [], []>} : vector<2x32xbf16>, vector<32x96xbf16>, vector<2x96xf32> -> vector<2x96xf32>
    %940 = vector.extract_strided_slice %590 {offsets = [8, 0], sizes = [2, 96], strides = [1, 1]} : vector<16x96xf32> to vector<2x96xf32>
    %941 = vector.extract_strided_slice %940 {offsets = [0, 0], sizes = [2, 32], strides = [1, 1]} : vector<2x96xf32> to vector<2x32xf32>
    %942 = vector.extract_strided_slice %939 {offsets = [0, 0], sizes = [2, 32], strides = [1, 1]} : vector<2x96xf32> to vector<2x32xf32>
    %943 = arith.addf %941, %942 : vector<2x32xf32>
    %944 = arith.negf %943 : vector<2x32xf32>
    %945 = math.exp %944 : vector<2x32xf32>
    %cst_177 = arith.constant 1.000000e+00 : f32
    %946 = vector.broadcast %cst_177 : f32 to vector<2x32xf32>
    %947 = arith.addf %946, %945 : vector<2x32xf32>
    %948 = arith.divf %946, %947 : vector<2x32xf32>
    %949 = vector.extract_strided_slice %940 {offsets = [0, 32], sizes = [2, 32], strides = [1, 1]} : vector<2x96xf32> to vector<2x32xf32>
    %950 = vector.extract_strided_slice %939 {offsets = [0, 32], sizes = [2, 32], strides = [1, 1]} : vector<2x96xf32> to vector<2x32xf32>
    %951 = arith.addf %949, %950 : vector<2x32xf32>
    %952 = arith.negf %951 : vector<2x32xf32>
    %953 = math.exp %952 : vector<2x32xf32>
    %cst_178 = arith.constant 1.000000e+00 : f32
    %954 = vector.broadcast %cst_178 : f32 to vector<2x32xf32>
    %955 = arith.addf %954, %953 : vector<2x32xf32>
    %956 = arith.divf %954, %955 : vector<2x32xf32>
    %957 = vector.extract_strided_slice %940 {offsets = [0, 64], sizes = [2, 32], strides = [1, 1]} : vector<2x96xf32> to vector<2x32xf32>
    %958 = vector.extract_strided_slice %939 {offsets = [0, 64], sizes = [2, 32], strides = [1, 1]} : vector<2x96xf32> to vector<2x32xf32>
    %959 = vector.broadcast %843 : vector<1x32xf32> to vector<2x32xf32>
    %960 = arith.addf %958, %959 : vector<2x32xf32>
    %961 = arith.mulf %948, %960 : vector<2x32xf32>
    %962 = arith.addf %957, %961 : vector<2x32xf32>
    %963 = math.tanh %962 : vector<2x32xf32>
    %cst_179 = arith.constant 1.000000e+00 : f32
    %964 = vector.broadcast %cst_179 : f32 to vector<2x32xf32>
    %965 = arith.subf %964, %956 : vector<2x32xf32>
    %966 = arith.mulf %965, %963 : vector<2x32xf32>
    %967 = arith.mulf %956, %937 : vector<2x32xf32>
    %968 = arith.addf %966, %967 : vector<2x32xf32>
    %969 = arith.truncf %968 : vector<2x32xf32> to vector<2x32xbf16>
    %cst_180 = arith.constant dense<0.000000e+00> : vector<2x96xf32>
    %970 = tpu.matmul %969, %842, %cst_180 {dimension_numbers = #tpu.dot_dimension_numbers<[1], [0], [0], [1], [0, 0, 1, 1], [], []>} : vector<2x32xbf16>, vector<32x96xbf16>, vector<2x96xf32> -> vector<2x96xf32>
    %971 = vector.extract_strided_slice %590 {offsets = [6, 0], sizes = [2, 96], strides = [1, 1]} : vector<16x96xf32> to vector<2x96xf32>
    %972 = vector.extract_strided_slice %971 {offsets = [0, 0], sizes = [2, 32], strides = [1, 1]} : vector<2x96xf32> to vector<2x32xf32>
    %973 = vector.extract_strided_slice %970 {offsets = [0, 0], sizes = [2, 32], strides = [1, 1]} : vector<2x96xf32> to vector<2x32xf32>
    %974 = arith.addf %972, %973 : vector<2x32xf32>
    %975 = arith.negf %974 : vector<2x32xf32>
    %976 = math.exp %975 : vector<2x32xf32>
    %cst_181 = arith.constant 1.000000e+00 : f32
    %977 = vector.broadcast %cst_181 : f32 to vector<2x32xf32>
    %978 = arith.addf %977, %976 : vector<2x32xf32>
    %979 = arith.divf %977, %978 : vector<2x32xf32>
    %980 = vector.extract_strided_slice %971 {offsets = [0, 32], sizes = [2, 32], strides = [1, 1]} : vector<2x96xf32> to vector<2x32xf32>
    %981 = vector.extract_strided_slice %970 {offsets = [0, 32], sizes = [2, 32], strides = [1, 1]} : vector<2x96xf32> to vector<2x32xf32>
    %982 = arith.addf %980, %981 : vector<2x32xf32>
    %983 = arith.negf %982 : vector<2x32xf32>
    %984 = math.exp %983 : vector<2x32xf32>
    %cst_182 = arith.constant 1.000000e+00 : f32
    %985 = vector.broadcast %cst_182 : f32 to vector<2x32xf32>
    %986 = arith.addf %985, %984 : vector<2x32xf32>
    %987 = arith.divf %985, %986 : vector<2x32xf32>
    %988 = vector.extract_strided_slice %971 {offsets = [0, 64], sizes = [2, 32], strides = [1, 1]} : vector<2x96xf32> to vector<2x32xf32>
    %989 = vector.extract_strided_slice %970 {offsets = [0, 64], sizes = [2, 32], strides = [1, 1]} : vector<2x96xf32> to vector<2x32xf32>
    %990 = vector.broadcast %843 : vector<1x32xf32> to vector<2x32xf32>
    %991 = arith.addf %989, %990 : vector<2x32xf32>
    %992 = arith.mulf %979, %991 : vector<2x32xf32>
    %993 = arith.addf %988, %992 : vector<2x32xf32>
    %994 = math.tanh %993 : vector<2x32xf32>
    %cst_183 = arith.constant 1.000000e+00 : f32
    %995 = vector.broadcast %cst_183 : f32 to vector<2x32xf32>
    %996 = arith.subf %995, %987 : vector<2x32xf32>
    %997 = arith.mulf %996, %994 : vector<2x32xf32>
    %998 = arith.mulf %987, %968 : vector<2x32xf32>
    %999 = arith.addf %997, %998 : vector<2x32xf32>
    %1000 = arith.truncf %999 : vector<2x32xf32> to vector<2x32xbf16>
    %cst_184 = arith.constant dense<0.000000e+00> : vector<2x96xf32>
    %1001 = tpu.matmul %1000, %842, %cst_184 {dimension_numbers = #tpu.dot_dimension_numbers<[1], [0], [0], [1], [0, 0, 1, 1], [], []>} : vector<2x32xbf16>, vector<32x96xbf16>, vector<2x96xf32> -> vector<2x96xf32>
    %1002 = vector.extract_strided_slice %590 {offsets = [4, 0], sizes = [2, 96], strides = [1, 1]} : vector<16x96xf32> to vector<2x96xf32>
    %1003 = vector.extract_strided_slice %1002 {offsets = [0, 0], sizes = [2, 32], strides = [1, 1]} : vector<2x96xf32> to vector<2x32xf32>
    %1004 = vector.extract_strided_slice %1001 {offsets = [0, 0], sizes = [2, 32], strides = [1, 1]} : vector<2x96xf32> to vector<2x32xf32>
    %1005 = arith.addf %1003, %1004 : vector<2x32xf32>
    %1006 = arith.negf %1005 : vector<2x32xf32>
    %1007 = math.exp %1006 : vector<2x32xf32>
    %cst_185 = arith.constant 1.000000e+00 : f32
    %1008 = vector.broadcast %cst_185 : f32 to vector<2x32xf32>
    %1009 = arith.addf %1008, %1007 : vector<2x32xf32>
    %1010 = arith.divf %1008, %1009 : vector<2x32xf32>
    %1011 = vector.extract_strided_slice %1002 {offsets = [0, 32], sizes = [2, 32], strides = [1, 1]} : vector<2x96xf32> to vector<2x32xf32>
    %1012 = vector.extract_strided_slice %1001 {offsets = [0, 32], sizes = [2, 32], strides = [1, 1]} : vector<2x96xf32> to vector<2x32xf32>
    %1013 = arith.addf %1011, %1012 : vector<2x32xf32>
    %1014 = arith.negf %1013 : vector<2x32xf32>
    %1015 = math.exp %1014 : vector<2x32xf32>
    %cst_186 = arith.constant 1.000000e+00 : f32
    %1016 = vector.broadcast %cst_186 : f32 to vector<2x32xf32>
    %1017 = arith.addf %1016, %1015 : vector<2x32xf32>
    %1018 = arith.divf %1016, %1017 : vector<2x32xf32>
    %1019 = vector.extract_strided_slice %1002 {offsets = [0, 64], sizes = [2, 32], strides = [1, 1]} : vector<2x96xf32> to vector<2x32xf32>
    %1020 = vector.extract_strided_slice %1001 {offsets = [0, 64], sizes = [2, 32], strides = [1, 1]} : vector<2x96xf32> to vector<2x32xf32>
    %1021 = vector.broadcast %843 : vector<1x32xf32> to vector<2x32xf32>
    %1022 = arith.addf %1020, %1021 : vector<2x32xf32>
    %1023 = arith.mulf %1010, %1022 : vector<2x32xf32>
    %1024 = arith.addf %1019, %1023 : vector<2x32xf32>
    %1025 = math.tanh %1024 : vector<2x32xf32>
    %cst_187 = arith.constant 1.000000e+00 : f32
    %1026 = vector.broadcast %cst_187 : f32 to vector<2x32xf32>
    %1027 = arith.subf %1026, %1018 : vector<2x32xf32>
    %1028 = arith.mulf %1027, %1025 : vector<2x32xf32>
    %1029 = arith.mulf %1018, %999 : vector<2x32xf32>
    %1030 = arith.addf %1028, %1029 : vector<2x32xf32>
    %1031 = arith.truncf %1030 : vector<2x32xf32> to vector<2x32xbf16>
    %cst_188 = arith.constant dense<0.000000e+00> : vector<2x96xf32>
    %1032 = tpu.matmul %1031, %842, %cst_188 {dimension_numbers = #tpu.dot_dimension_numbers<[1], [0], [0], [1], [0, 0, 1, 1], [], []>} : vector<2x32xbf16>, vector<32x96xbf16>, vector<2x96xf32> -> vector<2x96xf32>
    %1033 = vector.extract_strided_slice %590 {offsets = [2, 0], sizes = [2, 96], strides = [1, 1]} : vector<16x96xf32> to vector<2x96xf32>
    %1034 = vector.extract_strided_slice %1033 {offsets = [0, 0], sizes = [2, 32], strides = [1, 1]} : vector<2x96xf32> to vector<2x32xf32>
    %1035 = vector.extract_strided_slice %1032 {offsets = [0, 0], sizes = [2, 32], strides = [1, 1]} : vector<2x96xf32> to vector<2x32xf32>
    %1036 = arith.addf %1034, %1035 : vector<2x32xf32>
    %1037 = arith.negf %1036 : vector<2x32xf32>
    %1038 = math.exp %1037 : vector<2x32xf32>
    %cst_189 = arith.constant 1.000000e+00 : f32
    %1039 = vector.broadcast %cst_189 : f32 to vector<2x32xf32>
    %1040 = arith.addf %1039, %1038 : vector<2x32xf32>
    %1041 = arith.divf %1039, %1040 : vector<2x32xf32>
    %1042 = vector.extract_strided_slice %1033 {offsets = [0, 32], sizes = [2, 32], strides = [1, 1]} : vector<2x96xf32> to vector<2x32xf32>
    %1043 = vector.extract_strided_slice %1032 {offsets = [0, 32], sizes = [2, 32], strides = [1, 1]} : vector<2x96xf32> to vector<2x32xf32>
    %1044 = arith.addf %1042, %1043 : vector<2x32xf32>
    %1045 = arith.negf %1044 : vector<2x32xf32>
    %1046 = math.exp %1045 : vector<2x32xf32>
    %cst_190 = arith.constant 1.000000e+00 : f32
    %1047 = vector.broadcast %cst_190 : f32 to vector<2x32xf32>
    %1048 = arith.addf %1047, %1046 : vector<2x32xf32>
    %1049 = arith.divf %1047, %1048 : vector<2x32xf32>
    %1050 = vector.extract_strided_slice %1033 {offsets = [0, 64], sizes = [2, 32], strides = [1, 1]} : vector<2x96xf32> to vector<2x32xf32>
    %1051 = vector.extract_strided_slice %1032 {offsets = [0, 64], sizes = [2, 32], strides = [1, 1]} : vector<2x96xf32> to vector<2x32xf32>
    %1052 = vector.broadcast %843 : vector<1x32xf32> to vector<2x32xf32>
    %1053 = arith.addf %1051, %1052 : vector<2x32xf32>
    %1054 = arith.mulf %1041, %1053 : vector<2x32xf32>
    %1055 = arith.addf %1050, %1054 : vector<2x32xf32>
    %1056 = math.tanh %1055 : vector<2x32xf32>
    %cst_191 = arith.constant 1.000000e+00 : f32
    %1057 = vector.broadcast %cst_191 : f32 to vector<2x32xf32>
    %1058 = arith.subf %1057, %1049 : vector<2x32xf32>
    %1059 = arith.mulf %1058, %1056 : vector<2x32xf32>
    %1060 = arith.mulf %1049, %1030 : vector<2x32xf32>
    %1061 = arith.addf %1059, %1060 : vector<2x32xf32>
    %1062 = arith.truncf %1061 : vector<2x32xf32> to vector<2x32xbf16>
    %cst_192 = arith.constant dense<0.000000e+00> : vector<2x96xf32>
    %1063 = tpu.matmul %1062, %842, %cst_192 {dimension_numbers = #tpu.dot_dimension_numbers<[1], [0], [0], [1], [0, 0, 1, 1], [], []>} : vector<2x32xbf16>, vector<32x96xbf16>, vector<2x96xf32> -> vector<2x96xf32>
    %1064 = vector.extract_strided_slice %590 {offsets = [0, 0], sizes = [2, 96], strides = [1, 1]} : vector<16x96xf32> to vector<2x96xf32>
    %1065 = vector.extract_strided_slice %1064 {offsets = [0, 0], sizes = [2, 32], strides = [1, 1]} : vector<2x96xf32> to vector<2x32xf32>
    %1066 = vector.extract_strided_slice %1063 {offsets = [0, 0], sizes = [2, 32], strides = [1, 1]} : vector<2x96xf32> to vector<2x32xf32>
    %1067 = arith.addf %1065, %1066 : vector<2x32xf32>
    %1068 = arith.negf %1067 : vector<2x32xf32>
    %1069 = math.exp %1068 : vector<2x32xf32>
    %cst_193 = arith.constant 1.000000e+00 : f32
    %1070 = vector.broadcast %cst_193 : f32 to vector<2x32xf32>
    %1071 = arith.addf %1070, %1069 : vector<2x32xf32>
    %1072 = arith.divf %1070, %1071 : vector<2x32xf32>
    %1073 = vector.extract_strided_slice %1064 {offsets = [0, 32], sizes = [2, 32], strides = [1, 1]} : vector<2x96xf32> to vector<2x32xf32>
    %1074 = vector.extract_strided_slice %1063 {offsets = [0, 32], sizes = [2, 32], strides = [1, 1]} : vector<2x96xf32> to vector<2x32xf32>
    %1075 = arith.addf %1073, %1074 : vector<2x32xf32>
    %1076 = arith.negf %1075 : vector<2x32xf32>
    %1077 = math.exp %1076 : vector<2x32xf32>
    %cst_194 = arith.constant 1.000000e+00 : f32
    %1078 = vector.broadcast %cst_194 : f32 to vector<2x32xf32>
    %1079 = arith.addf %1078, %1077 : vector<2x32xf32>
    %1080 = arith.divf %1078, %1079 : vector<2x32xf32>
    %1081 = vector.extract_strided_slice %1064 {offsets = [0, 64], sizes = [2, 32], strides = [1, 1]} : vector<2x96xf32> to vector<2x32xf32>
    %1082 = vector.extract_strided_slice %1063 {offsets = [0, 64], sizes = [2, 32], strides = [1, 1]} : vector<2x96xf32> to vector<2x32xf32>
    %1083 = vector.broadcast %843 : vector<1x32xf32> to vector<2x32xf32>
    %1084 = arith.addf %1082, %1083 : vector<2x32xf32>
    %1085 = arith.mulf %1072, %1084 : vector<2x32xf32>
    %1086 = arith.addf %1081, %1085 : vector<2x32xf32>
    %1087 = math.tanh %1086 : vector<2x32xf32>
    %cst_195 = arith.constant 1.000000e+00 : f32
    %1088 = vector.broadcast %cst_195 : f32 to vector<2x32xf32>
    %1089 = arith.subf %1088, %1080 : vector<2x32xf32>
    %1090 = arith.mulf %1089, %1087 : vector<2x32xf32>
    %1091 = arith.mulf %1080, %1061 : vector<2x32xf32>
    %1092 = arith.addf %1090, %1091 : vector<2x32xf32>
    %1093 = arith.addf %624, %1092 : vector<2x32xf32>
    %1094 = arith.addf %655, %1061 : vector<2x32xf32>
    %1095 = arith.addf %686, %1030 : vector<2x32xf32>
    %1096 = arith.addf %717, %999 : vector<2x32xf32>
    %1097 = arith.addf %748, %968 : vector<2x32xf32>
    %1098 = arith.addf %779, %937 : vector<2x32xf32>
    %1099 = arith.addf %810, %906 : vector<2x32xf32>
    %1100 = arith.addf %841, %875 : vector<2x32xf32>
    %1101 = arith.mulf %1093, %319 : vector<2x32xf32>
    %cst_196 = arith.constant dense<0.000000e+00> : vector<2xf32>
    %1102 = vector.multi_reduction <add>, %1101, %cst_196 [1] : vector<2x32xf32> to vector<2xf32>
    %1103 = vector.shape_cast %1102 : vector<2xf32> to vector<2x1xf32>
    %1104 = arith.mulf %1094, %319 : vector<2x32xf32>
    %cst_197 = arith.constant dense<0.000000e+00> : vector<2xf32>
    %1105 = vector.multi_reduction <add>, %1104, %cst_197 [1] : vector<2x32xf32> to vector<2xf32>
    %1106 = vector.shape_cast %1105 : vector<2xf32> to vector<2x1xf32>
    %1107 = arith.mulf %1095, %319 : vector<2x32xf32>
    %cst_198 = arith.constant dense<0.000000e+00> : vector<2xf32>
    %1108 = vector.multi_reduction <add>, %1107, %cst_198 [1] : vector<2x32xf32> to vector<2xf32>
    %1109 = vector.shape_cast %1108 : vector<2xf32> to vector<2x1xf32>
    %1110 = arith.mulf %1096, %319 : vector<2x32xf32>
    %cst_199 = arith.constant dense<0.000000e+00> : vector<2xf32>
    %1111 = vector.multi_reduction <add>, %1110, %cst_199 [1] : vector<2x32xf32> to vector<2xf32>
    %1112 = vector.shape_cast %1111 : vector<2xf32> to vector<2x1xf32>
    %1113 = arith.mulf %1097, %319 : vector<2x32xf32>
    %cst_200 = arith.constant dense<0.000000e+00> : vector<2xf32>
    %1114 = vector.multi_reduction <add>, %1113, %cst_200 [1] : vector<2x32xf32> to vector<2xf32>
    %1115 = vector.shape_cast %1114 : vector<2xf32> to vector<2x1xf32>
    %1116 = arith.mulf %1098, %319 : vector<2x32xf32>
    %cst_201 = arith.constant dense<0.000000e+00> : vector<2xf32>
    %1117 = vector.multi_reduction <add>, %1116, %cst_201 [1] : vector<2x32xf32> to vector<2xf32>
    %1118 = vector.shape_cast %1117 : vector<2xf32> to vector<2x1xf32>
    %1119 = arith.mulf %1099, %319 : vector<2x32xf32>
    %cst_202 = arith.constant dense<0.000000e+00> : vector<2xf32>
    %1120 = vector.multi_reduction <add>, %1119, %cst_202 [1] : vector<2x32xf32> to vector<2xf32>
    %1121 = vector.shape_cast %1120 : vector<2xf32> to vector<2x1xf32>
    %1122 = arith.mulf %1100, %319 : vector<2x32xf32>
    %cst_203 = arith.constant dense<0.000000e+00> : vector<2xf32>
    %1123 = vector.multi_reduction <add>, %1122, %cst_203 [1] : vector<2x32xf32> to vector<2xf32>
    %1124 = vector.shape_cast %1123 : vector<2xf32> to vector<2x1xf32>
    %1125 = arith.maximumf %1103, %1106 : vector<2x1xf32>
    %1126 = arith.maximumf %1125, %1109 : vector<2x1xf32>
    %1127 = arith.maximumf %1126, %1112 : vector<2x1xf32>
    %1128 = arith.maximumf %1127, %1115 : vector<2x1xf32>
    %1129 = arith.maximumf %1128, %1118 : vector<2x1xf32>
    %1130 = arith.maximumf %1129, %1121 : vector<2x1xf32>
    %1131 = arith.maximumf %1130, %1124 : vector<2x1xf32>
    %1132 = arith.subf %1103, %1131 : vector<2x1xf32>
    %1133 = math.exp %1132 : vector<2x1xf32>
    %1134 = arith.subf %1106, %1131 : vector<2x1xf32>
    %1135 = math.exp %1134 : vector<2x1xf32>
    %1136 = arith.subf %1109, %1131 : vector<2x1xf32>
    %1137 = math.exp %1136 : vector<2x1xf32>
    %1138 = arith.subf %1112, %1131 : vector<2x1xf32>
    %1139 = math.exp %1138 : vector<2x1xf32>
    %1140 = arith.subf %1115, %1131 : vector<2x1xf32>
    %1141 = math.exp %1140 : vector<2x1xf32>
    %1142 = arith.subf %1118, %1131 : vector<2x1xf32>
    %1143 = math.exp %1142 : vector<2x1xf32>
    %1144 = arith.subf %1121, %1131 : vector<2x1xf32>
    %1145 = math.exp %1144 : vector<2x1xf32>
    %1146 = arith.subf %1124, %1131 : vector<2x1xf32>
    %1147 = math.exp %1146 : vector<2x1xf32>
    %1148 = arith.addf %1133, %1135 : vector<2x1xf32>
    %1149 = arith.addf %1148, %1137 : vector<2x1xf32>
    %1150 = arith.addf %1149, %1139 : vector<2x1xf32>
    %1151 = arith.addf %1150, %1141 : vector<2x1xf32>
    %1152 = arith.addf %1151, %1143 : vector<2x1xf32>
    %1153 = arith.addf %1152, %1145 : vector<2x1xf32>
    %1154 = arith.addf %1153, %1147 : vector<2x1xf32>
    %cst_204 = arith.constant 1.000000e+00 : f32
    %1155 = vector.broadcast %cst_204 : f32 to vector<2x1xf32>
    %1156 = arith.divf %1155, %1154 : vector<2x1xf32>
    %1157 = tpu.iota {dimensions = array<i32: 1>} : vector<2x8xi32>
    %cst_205 = arith.constant 0.000000e+00 : f32
    %1158 = vector.broadcast %cst_205 : f32 to vector<2x8xf32>
    %cst_206 = arith.constant 0.000000e+00 : f32
    %1159 = vector.broadcast %cst_206 : f32 to vector<2x32xf32>
    %1160 = arith.mulf %1133, %1156 : vector<2x1xf32>
    %c0_i32 = arith.constant 0 : i32
    %1161 = vector.broadcast %c0_i32 : i32 to vector<2x8xi32>
    %1162 = arith.cmpi eq, %1157, %1161 : vector<2x8xi32>
    %cst_207 = arith.constant 0.000000e+00 : f32
    %1163 = vector.shape_cast %1160 : vector<2x1xf32> to vector<2x1xf32>
    %1164 = vector.broadcast %1163 : vector<2x1xf32> to vector<2x8xf32>
    %1165 = vector.broadcast %cst_207 : f32 to vector<2x8xf32>
    %1166 = arith.select %1162, %1164, %1165 : vector<2x8xi1>, vector<2x8xf32>
    %1167 = arith.addf %1158, %1166 : vector<2x8xf32>
    %1168 = vector.broadcast %1160 : vector<2x1xf32> to vector<2x32xf32>
    %1169 = arith.mulf %1168, %1093 : vector<2x32xf32>
    %1170 = arith.addf %1159, %1169 : vector<2x32xf32>
    %1171 = arith.mulf %1135, %1156 : vector<2x1xf32>
    %c1_i32 = arith.constant 1 : i32
    %1172 = vector.broadcast %c1_i32 : i32 to vector<2x8xi32>
    %1173 = arith.cmpi eq, %1157, %1172 : vector<2x8xi32>
    %cst_208 = arith.constant 0.000000e+00 : f32
    %1174 = vector.shape_cast %1171 : vector<2x1xf32> to vector<2x1xf32>
    %1175 = vector.broadcast %1174 : vector<2x1xf32> to vector<2x8xf32>
    %1176 = vector.broadcast %cst_208 : f32 to vector<2x8xf32>
    %1177 = arith.select %1173, %1175, %1176 : vector<2x8xi1>, vector<2x8xf32>
    %1178 = arith.addf %1167, %1177 : vector<2x8xf32>
    %1179 = vector.broadcast %1171 : vector<2x1xf32> to vector<2x32xf32>
    %1180 = arith.mulf %1179, %1094 : vector<2x32xf32>
    %1181 = arith.addf %1170, %1180 : vector<2x32xf32>
    %1182 = arith.mulf %1137, %1156 : vector<2x1xf32>
    %c2_i32 = arith.constant 2 : i32
    %1183 = vector.broadcast %c2_i32 : i32 to vector<2x8xi32>
    %1184 = arith.cmpi eq, %1157, %1183 : vector<2x8xi32>
    %cst_209 = arith.constant 0.000000e+00 : f32
    %1185 = vector.shape_cast %1182 : vector<2x1xf32> to vector<2x1xf32>
    %1186 = vector.broadcast %1185 : vector<2x1xf32> to vector<2x8xf32>
    %1187 = vector.broadcast %cst_209 : f32 to vector<2x8xf32>
    %1188 = arith.select %1184, %1186, %1187 : vector<2x8xi1>, vector<2x8xf32>
    %1189 = arith.addf %1178, %1188 : vector<2x8xf32>
    %1190 = vector.broadcast %1182 : vector<2x1xf32> to vector<2x32xf32>
    %1191 = arith.mulf %1190, %1095 : vector<2x32xf32>
    %1192 = arith.addf %1181, %1191 : vector<2x32xf32>
    %1193 = arith.mulf %1139, %1156 : vector<2x1xf32>
    %c3_i32 = arith.constant 3 : i32
    %1194 = vector.broadcast %c3_i32 : i32 to vector<2x8xi32>
    %1195 = arith.cmpi eq, %1157, %1194 : vector<2x8xi32>
    %cst_210 = arith.constant 0.000000e+00 : f32
    %1196 = vector.shape_cast %1193 : vector<2x1xf32> to vector<2x1xf32>
    %1197 = vector.broadcast %1196 : vector<2x1xf32> to vector<2x8xf32>
    %1198 = vector.broadcast %cst_210 : f32 to vector<2x8xf32>
    %1199 = arith.select %1195, %1197, %1198 : vector<2x8xi1>, vector<2x8xf32>
    %1200 = arith.addf %1189, %1199 : vector<2x8xf32>
    %1201 = vector.broadcast %1193 : vector<2x1xf32> to vector<2x32xf32>
    %1202 = arith.mulf %1201, %1096 : vector<2x32xf32>
    %1203 = arith.addf %1192, %1202 : vector<2x32xf32>
    %1204 = arith.mulf %1141, %1156 : vector<2x1xf32>
    %c4_i32 = arith.constant 4 : i32
    %1205 = vector.broadcast %c4_i32 : i32 to vector<2x8xi32>
    %1206 = arith.cmpi eq, %1157, %1205 : vector<2x8xi32>
    %cst_211 = arith.constant 0.000000e+00 : f32
    %1207 = vector.shape_cast %1204 : vector<2x1xf32> to vector<2x1xf32>
    %1208 = vector.broadcast %1207 : vector<2x1xf32> to vector<2x8xf32>
    %1209 = vector.broadcast %cst_211 : f32 to vector<2x8xf32>
    %1210 = arith.select %1206, %1208, %1209 : vector<2x8xi1>, vector<2x8xf32>
    %1211 = arith.addf %1200, %1210 : vector<2x8xf32>
    %1212 = vector.broadcast %1204 : vector<2x1xf32> to vector<2x32xf32>
    %1213 = arith.mulf %1212, %1097 : vector<2x32xf32>
    %1214 = arith.addf %1203, %1213 : vector<2x32xf32>
    %1215 = arith.mulf %1143, %1156 : vector<2x1xf32>
    %c5_i32 = arith.constant 5 : i32
    %1216 = vector.broadcast %c5_i32 : i32 to vector<2x8xi32>
    %1217 = arith.cmpi eq, %1157, %1216 : vector<2x8xi32>
    %cst_212 = arith.constant 0.000000e+00 : f32
    %1218 = vector.shape_cast %1215 : vector<2x1xf32> to vector<2x1xf32>
    %1219 = vector.broadcast %1218 : vector<2x1xf32> to vector<2x8xf32>
    %1220 = vector.broadcast %cst_212 : f32 to vector<2x8xf32>
    %1221 = arith.select %1217, %1219, %1220 : vector<2x8xi1>, vector<2x8xf32>
    %1222 = arith.addf %1211, %1221 : vector<2x8xf32>
    %1223 = vector.broadcast %1215 : vector<2x1xf32> to vector<2x32xf32>
    %1224 = arith.mulf %1223, %1098 : vector<2x32xf32>
    %1225 = arith.addf %1214, %1224 : vector<2x32xf32>
    %1226 = arith.mulf %1145, %1156 : vector<2x1xf32>
    %c6_i32 = arith.constant 6 : i32
    %1227 = vector.broadcast %c6_i32 : i32 to vector<2x8xi32>
    %1228 = arith.cmpi eq, %1157, %1227 : vector<2x8xi32>
    %cst_213 = arith.constant 0.000000e+00 : f32
    %1229 = vector.shape_cast %1226 : vector<2x1xf32> to vector<2x1xf32>
    %1230 = vector.broadcast %1229 : vector<2x1xf32> to vector<2x8xf32>
    %1231 = vector.broadcast %cst_213 : f32 to vector<2x8xf32>
    %1232 = arith.select %1228, %1230, %1231 : vector<2x8xi1>, vector<2x8xf32>
    %1233 = arith.addf %1222, %1232 : vector<2x8xf32>
    %1234 = vector.broadcast %1226 : vector<2x1xf32> to vector<2x32xf32>
    %1235 = arith.mulf %1234, %1099 : vector<2x32xf32>
    %1236 = arith.addf %1225, %1235 : vector<2x32xf32>
    %1237 = arith.mulf %1147, %1156 : vector<2x1xf32>
    %c7_i32 = arith.constant 7 : i32
    %1238 = vector.broadcast %c7_i32 : i32 to vector<2x8xi32>
    %1239 = arith.cmpi eq, %1157, %1238 : vector<2x8xi32>
    %cst_214 = arith.constant 0.000000e+00 : f32
    %1240 = vector.shape_cast %1237 : vector<2x1xf32> to vector<2x1xf32>
    %1241 = vector.broadcast %1240 : vector<2x1xf32> to vector<2x8xf32>
    %1242 = vector.broadcast %cst_214 : f32 to vector<2x8xf32>
    %1243 = arith.select %1239, %1241, %1242 : vector<2x8xi1>, vector<2x8xf32>
    %1244 = arith.addf %1233, %1243 : vector<2x8xf32>
    %1245 = vector.broadcast %1237 : vector<2x1xf32> to vector<2x32xf32>
    %1246 = arith.mulf %1245, %1100 : vector<2x32xf32>
    %1247 = arith.addf %1236, %1246 : vector<2x32xf32>
    %c0_215 = arith.constant 0 : index
    %c0_216 = arith.constant 0 : index
    %1248 = vector.load %arg24[%c0_215, %c0_216] : memref<2x8xf32, #tpu.memory_space<vmem>>, vector<2x8xf32>
    tpu.vector_store %arg24[%c0_215, %c0_216], %1244 {strides = array<i32>} : memref<2x8xf32, #tpu.memory_space<vmem>>, vector<2x8xf32>,
    %c0_217 = arith.constant 0 : index
    %c0_218 = arith.constant 0 : index
    %1249 = vector.load %arg21[%c0_217, %c0_218] : memref<32x1xf32, #tpu.memory_space<vmem>>, vector<32x1xf32>
    %cst_219 = arith.constant dense<0.000000e+00> : vector<2x1xf32>
    %1250 = tpu.matmul %1247, %1249, %cst_219 {dimension_numbers = #tpu.dot_dimension_numbers<[1], [0], [0], [1], [0, 0, 1, 1], [], []>} : vector<2x32xf32>, vector<32x1xf32>, vector<2x1xf32> -> vector<2x1xf32>
    %c0_220 = arith.constant 0 : index
    %c0_221 = arith.constant 0 : index
    %1251 = vector.load %arg22[%c0_220, %c0_221] : memref<1x1xf32, #tpu.memory_space<vmem>>, vector<1x1xf32>
    %1252 = vector.broadcast %1251 : vector<1x1xf32> to vector<2x1xf32>
    %1253 = arith.addf %1250, %1252 : vector<2x1xf32>
    %c0_222 = arith.constant 0 : index
    %c0_223 = arith.constant 0 : index
    %1254 = vector.load %arg23[%c0_222, %c0_223] : memref<2x1xf32, #tpu.memory_space<vmem>>, vector<2x1xf32>
    tpu.vector_store %arg23[%c0_222, %c0_223], %1253 {strides = array<i32>} : memref<2x1xf32, #tpu.memory_space<vmem>>, vector<2x1xf32>,
    return
  }
}

</mosaic_0001>

<bundles_post_ra>
// kernel: ip_forward.1
= control target key start
LH: loop header
LB: loop body
LE: loop exit
PB: predicated region body
PF: predicated region fallthrough
CT: control target
= control target key end

     0   :  { %s6474_s0 = inlined_call_operand.vmem [shape: f32[364,40], index: 0, kind: input, shape index: {}]   ;;  %s6475_s1 = inlined_call_operand.vmem [shape: bf16[40,16], index: 1, kind: input, shape index: {}]   ;;  %s6476_s2 = inlined_call_operand.vmem [shape: f32[1,16], index: 2, kind: input, shape index: {}]   ;;  %s6477_s3 = inlined_call_operand.vmem [shape: bf16[16,96], index: 3, kind: input, shape index: {}]   ;;  %s6478_s4 = inlined_call_operand.vmem [shape: bf16[32,96], index: 4, kind: input, shape index: {}]   ;;  %s6479_s5 = inlined_call_operand.vmem [shape: f32[1,96], index: 5, kind: input, shape index: {}]   ;;  %s6480_s6 = inlined_call_operand.vmem [shape: f32[1,32], index: 6, kind: input, shape index: {}]   ;;  %s6481_s7 = inlined_call_operand.vmem [shape: bf16[16,96], index: 7, kind: input, shape index: {}]   ;;  %s6482_s8 = inlined_call_operand.vmem [shape: bf16[32,96], index: 8, kind: input, shape index: {}]   ;;  %s6483_s9 = inlined_call_operand.vmem [shape: f32[1,96], index: 9, kind: input, shape index: {}]   ;;  %s6484_s10 = inlined_call_operand.vmem [shape: f32[1,32], index: 10, kind: input, shape index: {}]   ;;  %s6485_s11 = inlined_call_operand.vmem [shape: bf16[32,96], index: 11, kind: input, shape index: {}]   ;;  %s6486_s12 = inlined_call_operand.vmem [shape: bf16[32,96], index: 12, kind: input, shape index: {}]   ;;  %s6487_s13 = inlined_call_operand.vmem [shape: bf16[32,96], index: 13, kind: input, shape index: {}]   ;;  %s6488_s14 = inlined_call_operand.vmem [shape: f32[1,96], index: 14, kind: input, shape index: {}]   ;;  %s6489_s15 = inlined_call_operand.vmem [shape: f32[1,32], index: 15, kind: input, shape index: {}]   ;;  %s6490_s16 = inlined_call_operand.vmem [shape: bf16[32,96], index: 16, kind: input, shape index: {}]   ;;  %s6491_s17 = inlined_call_operand.vmem [shape: bf16[32,96], index: 17, kind: input, shape index: {}]   ;;  %s6492_s18 = inlined_call_operand.vmem [shape: bf16[32,96], index: 18, kind: input, shape index: {}]   ;;  %s6493_s19 = inlined_call_operand.vmem [shape: f32[1,96], index: 19, kind: input, shape index: {}]   ;;  %s6494_s20 = inlined_call_operand.vmem [shape: f32[1,32], index: 20, kind: input, shape index: {}]   ;;  %s6495_s21 = inlined_call_operand.vmem [shape: f32[32,1], index: 21, kind: input, shape index: {}]   ;;  %s6496_s22 = inlined_call_operand.<no memory space> [shape: f32[1,1], index: 22, kind: input, shape index: {}]   ;;  %s6497_s23 = inlined_call_operand.vmem [shape: f32[2,1], index: 23, kind: output, shape index: {0}]   ;;  %s6498_s24 = inlined_call_operand.hbm [shape: f32[2,8], index: 24, kind: output, shape index: {1}]  }
   0x1   :  { %6503 = sst [smem:[#allocation6_spill]] %s6474_s0  ;;  %v30_v0 = vstv %s6496_s22 }
   0x2   :  { %6504 = sst [smem:[#allocation7_spill]] %s6475_s1  ;;  %31 = vst [vmem:[#allocation2] sm:$0x1] %v30_v0 }
   0x3   :  { %6505 = sst [smem:[#allocation8_spill]] %s6476_s2 }
   0x4   :  { %6506 = sst [smem:[#allocation9_spill]] %s6477_s3 }
   0x5   :  { %6507 = sst [smem:[#allocation10_spill]] %s6478_s4 }
   0x6   :  { %6508 = sst [smem:[#allocation11_spill]] %s6479_s5 }
   0x7   :  { %6509 = sst [smem:[#allocation12_spill]] %s6480_s6 }
   0x8   :  { %6510 = sst [smem:[#allocation13_spill]] %s6481_s7 }
   0x9   :  { %6511 = sst [smem:[#allocation14_spill]] %s6482_s8 }
   0xa   :  { %s6512_s6 = sld [smem:[#allocation7_spill]]  ;;  %v5114_v2 = vmov 0.0   ;;  %vm5115_vm0 = vmmov 0   ;;  %vm246_vm1 = vcmask 1043456   ;;  %s6513_s3 = sld [smem:[#allocation6_spill]]  ;;  %vm176_vm2 = vcmask 326656  }
   0xb   :  { %4435 = vmatprep.subr.bf16.mxu0 %v5114_v2  ;;  %4533 = vmatprep.subr.bf16.mxu1 %v5114_v2 }
   0xc   :  { %4441 = vmatprep.mubr.msk.bf16.mxu0 %vm5115_vm0, %v5114_v2  ;;  %4535 = vmatprep.mubr.msk.bf16.mxu1 %vm5115_vm0, %v5114_v2 }
  0x10   :  { %v4859_v1 = vld [vmem:[%s6512_s6] sm:$0xff]   ;;  %v4860_v3 = vld [vmem:[%s6512_s6 + $0x8] sm:$0xff]   ;;  %v4861_v4 = vld [vmem:[%s6512_s6 + $0x10] ss:$0 sps:$4 sm:$0xff]  }
  0x11   :  { %4436 = vmatpush3.bf16.msra.mxu0 %v4859_v1  ;;  %v80_v5 = vld [vmem:[%s6513_s3] sm:$0xff]  ;;  %v81_v6 = vld [vmem:[%s6513_s3 + $0x8] sm:$0xff]  ;;  %v248_v7 = vsel %vm246_vm1, %v4861_v4, 0  ;;  %v82_v9 = vld [vmem:[%s6513_s3 + $0x10] sm:$0xff] }
  0x12   :  { %4437 = vmatprep.subr.bf16.mxu0 %v5114_v2  ;;  %v126_v8 = vpack.c.bf16 %v81_v6, %v80_v5  ;;  %v83_v10 = vld [vmem:[%s6513_s3 + $0x18] sm:$0xff]  ;;  %v84_v12 = vld [vmem:[%s6513_s3 + $0x20] sm:$0xff]  ;;  %v85_v13 = vld [vmem:[%s6513_s3 + $0x28] sm:$0xff] }
  0x13   :  { %v127_v11 = vpack.c.bf16 %v83_v10, %v82_v9  ;;  %v128_v14 = vpack.c.bf16 %v85_v13, %v84_v12 }
  0x15   :  { %4438 = vmatpush3.bf16.msra.mxu0 %v4860_v3 }
  0x16   :  { %4439 = vmatprep.subr.bf16.mxu0 %v5114_v2 }
  0x19   :  { %4440 = vmatpush3.bf16.msra.mxu0 %v248_v7 }
  0x1a   :  { %4721 = vmatprep.subr.bf16.mxu0 %v5114_v2 }
  0x1c   :  { %4442 = vmatmul.mubr.msk.bf16.vlgmr.msra.gmra.mrb[0].mxu0 %vm176_vm2, %v126_v8 }
  0x1d   :  { %4445 = vmatprep.mubr.msk.bf16.mxu0 %vm5115_vm0, %v5114_v2 }
  0x24   :  { %4446 = vmatmul.mubr.msk.bf16.gmra.mrb[4].mxu0 %vm176_vm2, %v127_v11 }
  0x25   :  { %4449 = vmatprep.mubr.msk.bf16.mxu0 %vm5115_vm0, %v5114_v2 }
  0x26   :  { %32 = vsyncpa [#allocation4], 0  ;;  %v86_v15 = vld [vmem:[%s6513_s3 + $0x30] sm:$0xff]  ;;  %v87_v16 = vld [vmem:[%s6513_s3 + $0x38] sm:$0xff]  ;;  %s6514_s4 = sld [smem:[#allocation8_spill]]  ;;  %vm507_vm3 = vcmask 130048  }
  0x27   :  { %v129_v17 = vpack.c.bf16 %v87_v16, %v86_v15  ;;  %v88_v18 = vld [vmem:[%s6513_s3 + $0x40] sm:$0xff]  ;;  %v89_v19 = vld [vmem:[%s6513_s3 + $0x48] sm:$0xff]  ;;  %v90_v21 = vld [vmem:[%s6513_s3 + $0x50] sm:$0xff]  ;;  %vm510_vm4 = vcmask 125952   ;;  %vm533_vm5 = vcmask 130052   ;;  %vm520_vm6 = vcmask 130051  }
  0x28   :  { %v130_v20 = vpack.c.bf16 %v89_v19, %v88_v18  ;;  %v91_v22 = vld [vmem:[%s6513_s3 + $0x58] sm:$0xff]  ;;  %v92_v24 = vld [vmem:[%s6513_s3 + $0x60] sm:$0xff]  ;;  %v93_v25 = vld [vmem:[%s6513_s3 + $0x68] sm:$0xff]  ;;  %vm523_vm7 = vcmask 129024   ;;  %vm545_vm8 = vcmask 130055   ;;  %vm549_vm9 = vcmask 124928  }
  0x29   :  { %v131_v23 = vpack.c.bf16 %v91_v22, %v90_v21  ;;  %v132_v26 = vpack.c.bf16 %v93_v25, %v92_v24  ;;  %v94_v27 = vld [vmem:[%s6513_s3 + $0x70] sm:$0xff]  ;;  %v95_v28 = vld [vmem:[%s6513_s3 + $0x78] sm:$0xff]  ;;  %v96_v30 = vld [vmem:[%s6513_s3 + $0x80] sm:$0xff]  ;;  %vm710_vm10 = vcmask 1040384   ;;  %vm712_vm11 = vcmask 1041408   ;;  %s6515_s5 = sld [smem:[#allocation9_spill]] }
  0x2a   :  { %v133_v29 = vpack.c.bf16 %v95_v28, %v94_v27  ;;  %v97_v31 = vld [vmem:[%s6513_s3 + $0x88] sm:$0xff]  ;;  %v98_v33 = vld [vmem:[%s6513_s3 + $0x90] sm:$0xff]  ;;  %v99_v34 = vld [vmem:[%s6513_s3 + $0x98] sm:$0xff]  ;;  %vm714_vm12 = vcmask 1042432   ;;  %vm717_vm13 = vcmask 1044480   ;;  %s6516_s28 = sld [smem:[#allocation12_spill]] }
  0x2b   :  { %v134_v32 = vpack.c.bf16 %v97_v31, %v96_v30  ;;  %v135_v35 = vpack.c.bf16 %v99_v34, %v98_v33  ;;  %v100_v36 = vld [vmem:[%s6513_s3 + $0xa0] sm:$0xff]  ;;  %v101_v37 = vld [vmem:[%s6513_s3 + $0xa8] sm:$0xff]  ;;  %v102_v39 = vld [vmem:[%s6513_s3 + $0xb0] sm:$0xff]  ;;  %vm719_vm14 = vcmask 1045504   ;;  %s5117_s6 = smov 64   ;;  %vm606_vm15 = vcmask 130054  }
  0x2c   :  { %4450 = vmatmul.mubr.msk.bf16.gmra.mrb[8].mxu0 %vm176_vm2, %v128_v14  ;;  %v136_v38 = vpack.c.bf16 %v101_v37, %v100_v36  ;;  %v103_v40 = vld [vmem:[%s6513_s3 + $0xb8] sm:$0xff]  ;;  %v104_v42 = vld [vmem:[%s6513_s3 + $0xc0] sm:$0xff]  ;;  %v105_v43 = vld [vmem:[%s6513_s3 + $0xc8] sm:$0xff]  ;;  %s6517_s0 = sld [smem:[#allocation13_spill]]  ;;  %s6518_s30 = sld [smem:[#allocation10_spill]] }
  0x2d   :  { %4453 = vmatprep.mubr.msk.bf16.mxu0 %vm5115_vm0, %v5114_v2  ;;  %v137_v41 = vpack.c.bf16 %v103_v40, %v102_v39  ;;  %v138_v44 = vpack.c.bf16 %v105_v43, %v104_v42  ;;  %v106_v45 = vld [vmem:[%s6513_s3 + $0xd0] sm:$0xff]  ;;  %v107_v46 = vld [vmem:[%s6513_s3 + $0xd8] sm:$0xff]  ;;  %v108_v48 = vld [vmem:[%s6513_s3 + $0xe0] sm:$0xff]  ;;  %s6519_s1 = sld [smem:[#allocation11_spill]] }
  0x2e   :  { %v139_v47 = vpack.c.bf16 %v107_v46, %v106_v45  ;;  %v109_v49 = vld [vmem:[%s6513_s3 + $0xe8] sm:$0xff]  ;;  %v110_v51 = vld [vmem:[%s6513_s3 + $0xf0] sm:$0xff]  ;;  %v111_v52 = vld [vmem:[%s6513_s3 + $0xf8] sm:$0xff] }
  0x2f   :  { %v140_v50 = vpack.c.bf16 %v109_v49, %v108_v48  ;;  %v141_v53 = vpack.c.bf16 %v111_v52, %v110_v51  ;;  %v112_v54 = vld [vmem:[%s6513_s3 + $0x100] sm:$0xff]  ;;  %v113_v55 = vld [vmem:[%s6513_s3 + $0x108] sm:$0xff]  ;;  %v114_v57 = vld [vmem:[%s6513_s3 + $0x110] sm:$0xff] }
  0x30   :  { %v142_v56 = vpack.c.bf16 %v113_v55, %v112_v54  ;;  %v115_v58 = vld [vmem:[%s6513_s3 + $0x118] sm:$0xff]  ;;  %v116_v60 = vld [vmem:[%s6513_s3 + $0x120] sm:$0xff]  ;;  %v117_v61 = vld [vmem:[%s6513_s3 + $0x128] sm:$0xff] }
  0x31   :  { %v143_v59 = vpack.c.bf16 %v115_v58, %v114_v57  ;;  %v144_v62 = vpack.c.bf16 %v117_v61, %v116_v60  ;;  %v118_v63 = vld [vmem:[%s6513_s3 + $0x130] sm:$0xff]  ;;  %v119_v0 = vld [vmem:[%s6513_s3 + $0x138] sm:$0xff]  ;;  %v120_v3 = vld [vmem:[%s6513_s3 + $0x140] sm:$0xff] }
  0x32   :  { %v145_v1 = vpack.c.bf16 %v119_v0, %v118_v63  ;;  %v121_v4 = vld [vmem:[%s6513_s3 + $0x148] sm:$0xff]  ;;  %v122_v6 = vld [vmem:[%s6513_s3 + $0x150] sm:$0xff]  ;;  %v123_v7 = vld [vmem:[%s6513_s3 + $0x158] sm:$0xff] }
  0x33   :  { %v146_v5 = vpack.c.bf16 %v121_v4, %v120_v3  ;;  %v147_v8 = vpack.c.bf16 %v123_v7, %v122_v6  ;;  %v124_v9 = vld [vmem:[%s6513_s3 + $0x160] sm:$0xff]  ;;  %v125_v10 = vld [vmem:[%s6513_s3 + $0x168] sm:$0xf] }
  0x34   :  { %4454 = vmatmul.mubr.msk.bf16.gmra.mrb[12].mxu0 %vm176_vm2, %v129_v17  ;;  %v148_v11 = vpack.c.bf16 %v125_v10, %v124_v9  ;;  %v5478_v12 = vld [vmem:[%s6514_s4] ss:$0 sm:$0xff] }
  0x35   :  { %4457 = vmatprep.mubr.msk.bf16.mxu0 %vm5115_vm0, %v5114_v2 }
  0x3c   :  { %4458 = vmatmul.mubr.msk.bf16.gmra.mrb[16].mxu0 %vm176_vm2, %v130_v20 }
  0x3d   :  { %4461 = vmatprep.mubr.msk.bf16.mxu0 %vm5115_vm0, %v5114_v2 }
  0x44   :  { %4462 = vmatmul.mubr.msk.bf16.gmra.mrb[20].mxu0 %vm176_vm2, %v131_v23 }
  0x45   :  { %4465 = vmatprep.mubr.msk.bf16.mxu0 %vm5115_vm0, %v5114_v2 }
  0x4c   :  { %4466 = vmatmul.mubr.msk.bf16.gmra.mrb[24].mxu0 %vm176_vm2, %v132_v26 }
  0x4d   :  { %4469 = vmatprep.mubr.msk.bf16.mxu0 %vm5115_vm0, %v5114_v2 }
  0x54   :  { %4470 = vmatmul.mubr.msk.bf16.gmra.mrb[28].mxu0 %vm176_vm2, %v133_v29 }
  0x55   :  { %4473 = vmatprep.mubr.msk.bf16.mxu0 %vm5115_vm0, %v5114_v2 }
  0x5c   :  { %4474 = vmatmul.mubr.msk.bf16.gmra.mrb[32].mxu0 %vm176_vm2, %v134_v32 }
  0x5d   :  { %4477 = vmatprep.mubr.msk.bf16.mxu0 %vm5115_vm0, %v5114_v2 }
  0x64   :  { %4478 = vmatmul.mubr.msk.bf16.gmra.mrb[36].mxu0 %vm176_vm2, %v135_v35 }
  0x65   :  { %4481 = vmatprep.mubr.msk.bf16.mxu0 %vm5115_vm0, %v5114_v2 }
  0x6c   :  { %4482 = vmatmul.mubr.msk.bf16.gmra.mrb[40].mxu0 %vm176_vm2, %v136_v38 }
  0x6d   :  { %4485 = vmatprep.mubr.msk.bf16.mxu0 %vm5115_vm0, %v5114_v2 }
  0x74   :  { %4486 = vmatmul.mubr.msk.bf16.gmra.mrb[44].mxu0 %vm176_vm2, %v137_v41 }
  0x75   :  { %4489 = vmatprep.mubr.msk.bf16.mxu0 %vm5115_vm0, %v5114_v2 }
  0x7c   :  { %4490 = vmatmul.mubr.msk.bf16.gmra.mrb[48].mxu0 %vm176_vm2, %v138_v44 }
  0x7d   :  { %4493 = vmatprep.mubr.msk.bf16.mxu0 %vm5115_vm0, %v5114_v2 }
  0x84   :  { %4494 = vmatmul.mubr.msk.bf16.gmra.mrb[52].mxu0 %vm176_vm2, %v139_v47 }
  0x85   :  { %4497 = vmatprep.mubr.msk.bf16.mxu0 %vm5115_vm0, %v5114_v2 }
  0x8c   :  { %4498 = vmatmul.mubr.msk.bf16.gmra.mrb[56].mxu0 %vm176_vm2, %v140_v50 }
  0x8d   :  { %4501 = vmatprep.mubr.msk.bf16.mxu0 %vm5115_vm0, %v5114_v2 }
  0x94   :  { %4502 = vmatmul.mubr.msk.bf16.gmra.mrb[60].mxu0 %vm176_vm2, %v141_v53 }
  0x95   :  { %4505 = vmatprep.mubr.msk.bf16.mxu0 %vm5115_vm0, %v5114_v2 }
  0x9c   :  { %4506 = vmatmul.mubr.msk.bf16.gmra.mrb[64].mxu0 %vm176_vm2, %v142_v56 }
  0x9d   :  { %4509 = vmatprep.mubr.msk.bf16.mxu0 %vm5115_vm0, %v5114_v2 }
  0xa4   :  { %4510 = vmatmul.mubr.msk.bf16.gmra.mrb[68].mxu0 %vm176_vm2, %v143_v59 }
  0xa5   :  { %4513 = vmatprep.mubr.msk.bf16.mxu0 %vm5115_vm0, %v5114_v2 }
  0xac   :  { %4514 = vmatmul.mubr.msk.bf16.gmra.mrb[72].mxu0 %vm176_vm2, %v144_v62 }
  0xad   :  { %4517 = vmatprep.mubr.msk.bf16.mxu0 %vm5115_vm0, %v5114_v2 }
  0xb4   :  { %4518 = vmatmul.mubr.msk.bf16.gmra.mrb[76].mxu0 %vm176_vm2, %v145_v1 }
  0xb5   :  { %4521 = vmatprep.mubr.msk.bf16.mxu0 %vm5115_vm0, %v5114_v2 }
  0xbc   :  { %4522 = vmatmul.mubr.msk.bf16.gmra.mrb[80].mxu0 %vm176_vm2, %v146_v5 }
  0xbd   :  { %4525 = vmatprep.mubr.msk.bf16.mxu0 %vm5115_vm0, %v5114_v2 }
  0xc4   :  { %4526 = vmatmul.mubr.msk.bf16.gmra.mrb[84].mxu0 %vm176_vm2, %v147_v8 }
  0xc5   :  { %4529 = vmatprep.mubr.msk.bf16.mxu0 %vm5115_vm0, %v5114_v2 }
  0xcc   :  { %4530 = vmatmul.mubr.msk.bf16.gmra.mrb[88].mxu0 %vm176_vm2, %v148_v11  ;;  %vm610_vm2 = vcmask 123904  }
  0xcd   :  { %4725 = vmatprep.mubr.msk.bf16.mxu0 %vm5115_vm0, %v5114_v2 }
  0xef   :  { %v284_v13 = vpop.f32.mrb[0].mxu0 }
  0xf0   :  { %v285_v14 = vadd.f32 %v5478_v12, %v284_v13  ;;  %v4443_v15 = vpop.f32.mrb[1].mxu0 }
  0xf1   :  { %v287_v16 = vpop.f32.mrb[2].mxu0 }
  0xf2   :  { %v464_v17 = vmax.f32 %v285_v14, 0.0  ;;  %v288_v18 = vadd.f32 %v5478_v12, %v287_v16  ;;  %v4444_v19 = vpop.f32.mrb[3].mxu0 }
  0xf4   :  { %v465_v20 = vmax.f32 %v288_v18, 0.0  ;;  %v508_v21 = vsel %vm507_vm3, %v464_v17, -inf }
  0xf6   :  { %v509_v22 = vsel %vm507_vm3, %v465_v20, -inf }
  0xf7   :  { %v512_v23 = vmax.f32 %v508_v21, %v509_v22  ;;  %v292_v24 = vpop.f32.mrb[4].mxu0 }
  0xf8   :  { %v293_v25 = vadd.f32 %v5478_v12, %v292_v24  ;;  %v4447_v26 = vpop.f32.mrb[5].mxu0 }
  0xf9   :  { %v295_v27 = vpop.f32.mrb[6].mxu0 }
  0xfa   :  { %v466_v28 = vmax.f32 %v293_v25, 0.0  ;;  %v296_v29 = vadd.f32 %v5478_v12, %v295_v27  ;;  %v4448_v30 = vpop.f32.mrb[7].mxu0 }
  0xfc   :  { %v511_v31 = vsel %vm510_vm4, %v466_v28, -inf  ;;  %v467_v32 = vmax.f32 %v296_v29, 0.0  ;;  %v534_v34 = vsel %vm533_vm5, %v466_v28, -inf }
  0xfd   :  { %v513_v33 = vmax.f32 %v512_v23, %v511_v31 }
  0xfe   :  { %v535_v35 = vsel %vm507_vm3, %v467_v32, -inf }
  0xff   :  { %v537_v36 = vmax.f32 %v534_v34, %v535_v35  ;;  %v300_v37 = vpop.f32.mrb[8].mxu0  ;;  %v514_v16 = vrot.slane %v513_v33, 4 }
 0x100   :  { %v301_v38 = vadd.f32 %v5478_v12, %v300_v37  ;;  %v4451_v39 = vpop.f32.mrb[9].mxu0 }
 0x101   :  { %v303_v40 = vpop.f32.mrb[10].mxu0  ;;  %v515_v26 = vmax.f32 %v513_v33, %v514_v16 }
 0x102   :  { %v468_v41 = vmax.f32 %v301_v38, 0.0  ;;  %v4452_v42 = vpop.f32.mrb[11].mxu0  ;;  %v304_v44 = vadd.f32 %v5478_v12, %v303_v40 }
 0x103   :  { %v516_v34 = vrot.slane %v515_v26, 2 }
 0x104   :  { %v536_v43 = vsel %vm507_vm3, %v468_v41, -inf  ;;  %v469_v47 = vmax.f32 %v304_v44, 0.0 }
 0x105   :  { %v538_v45 = vmax.f32 %v537_v36, %v536_v43  ;;  %v517_v43 = vmax.f32 %v515_v26, %v516_v34 }
 0x106   :  { %v560_v54 = vsel %vm507_vm3, %v469_v47, -inf }
 0x107   :  { %v308_v46 = vpop.f32.mrb[12].mxu0  ;;  %v539_v17 = vrot.slane %v538_v45, 4 }
 0x108   :  { %v309_v48 = vadd.f32 %v5478_v12, %v308_v46  ;;  %v4455_v49 = vpop.f32.mrb[13].mxu0 }
 0x109   :  { %v311_v50 = vpop.f32.mrb[14].mxu0  ;;  %v540_v27 = vmax.f32 %v538_v45, %v539_v17 }
 0x10a   :  { %v470_v51 = vmax.f32 %v309_v48, 0.0  ;;  %v312_v52 = vadd.f32 %v5478_v12, %v311_v50  ;;  %v4456_v53 = vpop.f32.mrb[15].mxu0 }
 0x10b   :  { %v541_v35 = vrot.slane %v540_v27, 2 }
 0x10c   :  { %v561_v55 = vsel %vm507_vm3, %v470_v51, -inf  ;;  %v471_v56 = vmax.f32 %v312_v52, 0.0  ;;  %v518_v51 = vrot.slane %v517_v43, 1 }
 0x10d   :  { %v563_v57 = vmax.f32 %v560_v54, %v561_v55  ;;  %v542_v44 = vmax.f32 %v540_v27, %v541_v35 }
 0x10e   :  { %v562_v58 = vsel %vm510_vm4, %v471_v56, -inf  ;;  %v582_v4 = vsel %vm533_vm5, %v471_v56, -inf  ;;  %vm721_vm4 = vcmask 1046528   ;;  %vm634_vm5 = vcmask 130050  }
 0x10f   :  { %v5497_v59 = vmax.f32 %v563_v57, %v562_v58  ;;  %v316_v60 = vpop.f32.mrb[16].mxu0  ;;  %v543_v52 = vrot.slane %v542_v44, 1 }
 0x110   :  { %v317_v61 = vadd.f32 %v5478_v12, %v316_v60  ;;  %v4459_v62 = vpop.f32.mrb[17].mxu0 }
 0x111   :  { %v319_v63 = vpop.f32.mrb[18].mxu0  ;;  %v565_v55 = vrot.slane %v5497_v59, 4 }
 0x112   :  { %v472_v0 = vmax.f32 %v317_v61, 0.0  ;;  %v320_v1 = vadd.f32 %v5478_v12, %v319_v63  ;;  %v4460_v3 = vpop.f32.mrb[19].mxu0 }
 0x113   :  { %v544_v3 = vmax.f32 %v542_v44, %v543_v52 }
 0x114   :  { %v583_v5 = vsel %vm507_vm3, %v472_v0, -inf  ;;  %v473_v6 = vmax.f32 %v320_v1, 0.0  ;;  %v519_v1 = vmax.f32 %v517_v43, %v518_v51 }
 0x115   :  { %v585_v7 = vmax.f32 %v582_v4, %v583_v5  ;;  %v4862_v5 = vld [vmem:[%s6515_s5] sm:$0xff]  }
 0x116   :  { %v584_v8 = vsel %vm507_vm3, %v473_v6, -inf  ;;  %v566_v6 = vmax.f32 %v5497_v59, %v565_v55  ;;  %4534 = vmatpush3.bf16.msra.mxu1 %v4862_v5  ;;  %v4207_v5 = vld [vmem:[%s6516_s28] ss:$0 sm:$0xff] }
 0x117   :  { %v5504_v9 = vmax.f32 %v585_v7, %v584_v8  ;;  %v324_v10 = vpop.f32.mrb[20].mxu0  ;;  %4539 = vmatprep.subr.bf16.mxu1 %v5114_v2  ;;  %919 = vrot.lane.b32.xlu0 %v4207_v5, %s5117_s6 }
 0x118   :  { %v4463_v11 = vpop.f32.mrb[21].mxu0 }
 0x119   :  { %v326_v13 = vpop.f32.mrb[22].mxu0 }
 0x11a   :  { %v4464_v14 = vpop.f32.mrb[23].mxu0  ;;  %v327_v15 = vadd.f32 %v5478_v12, %v326_v13 }
 0x11b   :  { %v587_v14 = vrot.slane %v5504_v9, 4 }
 0x11c   :  { %v474_v19 = vmax.f32 %v327_v15, 0.0 }
 0x11e   :  { %v521_v28 = vsel %vm520_vm6, %v474_v19, -inf }
 0x11f   :  { %v331_v18 = vpop.f32.mrb[24].mxu0 }
 0x120   :  { %v332_v20 = vadd.f32 %v5478_v12, %v331_v18  ;;  %v4467_v21 = vpop.f32.mrb[25].mxu0 }
 0x121   :  { %v334_v22 = vpop.f32.mrb[26].mxu0 }
 0x122   :  { %v475_v23 = vmax.f32 %v332_v20, 0.0  ;;  %v335_v24 = vadd.f32 %v5478_v12, %v334_v22  ;;  %v4468_v25 = vpop.f32.mrb[27].mxu0  ;;  %v567_v20 = vrot.slane %v566_v6, 2 }
 0x123   :  { %v588_v25 = vmax.f32 %v5504_v9, %v587_v14 }
 0x124   :  { %v522_v29 = vsel %vm507_vm3, %v475_v23, -inf  ;;  %v476_v30 = vmax.f32 %v335_v24, 0.0 }
 0x125   :  { %v525_v31 = vmax.f32 %v521_v28, %v522_v29 }
 0x126   :  { %v524_v32 = vsel %vm523_vm7, %v476_v30, -inf  ;;  %v546_v46 = vsel %vm545_vm8, %v476_v30, -inf  ;;  %v568_v30 = vmax.f32 %v566_v6, %v567_v20 }
 0x127   :  { %v526_v36 = vmax.f32 %v525_v31, %v524_v32  ;;  %v339_v37 = vpop.f32.mrb[28].mxu0 }
 0x128   :  { %v340_v38 = vadd.f32 %v5478_v12, %v339_v37  ;;  %v4471_v39 = vpop.f32.mrb[29].mxu0 }
 0x129   :  { %v527_v40 = vrot.slane %v526_v36, 4  ;;  %v342_v33 = vpop.f32.mrb[30].mxu0 }
 0x12a   :  { %v477_v41 = vmax.f32 %v340_v38, 0.0  ;;  %v4472_v42 = vpop.f32.mrb[31].mxu0  ;;  %v343_v48 = vadd.f32 %v5478_v12, %v342_v33 }
 0x12b   :  { %v528_v45 = vmax.f32 %v526_v36, %v527_v40  ;;  %v589_v36 = vrot.slane %v588_v25, 2 }
 0x12c   :  { %v547_v47 = vsel %vm507_vm3, %v477_v41, -inf  ;;  %v478_v56 = vmax.f32 %v343_v48, 0.0  ;;  %v569_v41 = vrot.slane %v568_v30, 1 }
 0x12d   :  { %v529_v49 = vrot.slane %v528_v45, 2  ;;  %v551_v50 = vmax.f32 %v546_v46, %v547_v47  ;;  %v590_v47 = vmax.f32 %v588_v25, %v589_v36 }
 0x12e   :  { %v548_v7 = vsel %vm507_vm3, %v478_v56, -inf }
 0x12f   :  { %v530_v53 = vmax.f32 %v528_v45, %v529_v49  ;;  %v347_v54 = vpop.f32.mrb[32].mxu0 }
 0x130   :  { %v348_v57 = vadd.f32 %v5478_v12, %v347_v54  ;;  %v4475_v58 = vpop.f32.mrb[33].mxu0 }
 0x131   :  { %v531_v60 = vrot.slane %v530_v53, 1  ;;  %v350_v61 = vpop.f32.mrb[34].mxu0 }
 0x132   :  { %v479_v62 = vmax.f32 %v348_v57, 0.0  ;;  %v351_v63 = vadd.f32 %v5478_v12, %v350_v61  ;;  %v4476_v0 = vpop.f32.mrb[35].mxu0  ;;  %v591_v57 = vrot.slane %v590_v47, 1 }
 0x133   :  { %v532_v4 = vmax.f32 %v530_v53, %v531_v60  ;;  %v570_v53 = vmax.f32 %v568_v30, %v569_v41 }
 0x134   :  { %v550_v8 = vsel %vm549_vm9, %v479_v62, -inf  ;;  %v480_v10 = vmax.f32 %v351_v63, 0.0  ;;  %v571_v16 = vsel %vm520_vm6, %v479_v62, -inf  ;;  %v5116_v62 = vmov 0  }
 0x135   :  { %v711_v11 = vsel %vm710_vm10, %v519_v1, %v532_v4  ;;  %v552_v13 = vmax.f32 %v548_v7, %v550_v8  ;;  %4858 = vset.pattern.permute.xlu1 %v5116_v62  ;;  %4857 = vset.pattern.permute.xlu0 %v5116_v62  ;;  %vm637_vm6 = vcmask 128000  }
 0x136   :  { %v713_v15 = vsel %vm712_vm11, %v711_v11, %v544_v3  ;;  %v572_v17 = vsel %vm507_vm3, %v480_v10, -inf  ;;  %v592_v10 = vmax.f32 %v590_v47, %v591_v57 }
 0x137   :  { %v553_v59 = vmax.f32 %v551_v50, %v552_v13  ;;  %v574_v18 = vmax.f32 %v571_v16, %v572_v17  ;;  %v355_v19 = vpop.f32.mrb[36].mxu0 }
 0x138   :  { %v356_v21 = vadd.f32 %v5478_v12, %v355_v19  ;;  %v4479_v22 = vpop.f32.mrb[37].mxu0 }
 0x139   :  { %v554_v23 = vrot.slane %v553_v59, 4  ;;  %v358_v24 = vpop.f32.mrb[38].mxu0 }
 0x13a   :  { %v481_v26 = vmax.f32 %v356_v21, 0.0  ;;  %v359_v27 = vadd.f32 %v5478_v12, %v358_v24  ;;  %v4480_v28 = vpop.f32.mrb[39].mxu0 }
 0x13b   :  { %v555_v29 = vmax.f32 %v553_v59, %v554_v23 }
 0x13c   :  { %v573_v31 = vsel %vm523_vm7, %v481_v26, -inf  ;;  %v482_v32 = vmax.f32 %v359_v27, 0.0  ;;  %v593_v37 = vsel %vm545_vm8, %v481_v26, -inf  ;;  %vm621_vm7 = vcmask 130049  }
 0x13d   :  { %v556_v34 = vrot.slane %v555_v29, 2  ;;  %v575_v35 = vmax.f32 %v574_v18, %v573_v31  ;;  %vm624_vm8 = vcmask 126976  }
 0x13e   :  { %v594_v38 = vsel %vm507_vm3, %v482_v32, -inf }
 0x13f   :  { %v557_v39 = vmax.f32 %v555_v29, %v556_v34  ;;  %v576_v40 = vrot.slane %v575_v35, 4  ;;  %v597_v33 = vmax.f32 %v593_v37, %v594_v38  ;;  %v363_v9 = vpop.f32.mrb[40].mxu0 }
 0x140   :  { %v364_v42 = vadd.f32 %v5478_v12, %v363_v9  ;;  %v4483_v43 = vpop.f32.mrb[41].mxu0 }
 0x141   :  { %v558_v44 = vrot.slane %v557_v39, 1  ;;  %v577_v45 = vmax.f32 %v575_v35, %v576_v40  ;;  %v366_v46 = vpop.f32.mrb[42].mxu0 }
 0x142   :  { %v483_v48 = vmax.f32 %v364_v42, 0.0  ;;  %v367_v49 = vadd.f32 %v5478_v12, %v366_v46  ;;  %v4484_v50 = vpop.f32.mrb[43].mxu0 }
 0x143   :  { %v559_v51 = vmax.f32 %v557_v39, %v558_v44  ;;  %v578_v52 = vrot.slane %v577_v45, 2 }
 0x144   :  { %v484_v54 = vmax.f32 %v367_v49, 0.0  ;;  %v595_v58 = vsel %vm507_vm3, %v483_v48, -inf }
 0x145   :  { %v715_v55 = vsel %vm714_vm12, %v713_v15, %v559_v51  ;;  %v579_v56 = vmax.f32 %v577_v45, %v578_v52 }
 0x146   :  { %v596_v60 = vsel %vm549_vm9, %v484_v54, -inf  ;;  %v716_v61 = vsel %vm246_vm1, %v715_v55, %v570_v53  ;;  %vm647_vm9 = vcmask 130053  }
 0x147   :  { %v580_v63 = vrot.slane %v579_v56, 1  ;;  %v598_v0 = vmax.f32 %v595_v58, %v596_v60  ;;  %v371_v1 = vpop.f32.mrb[44].mxu0 }
 0x148   :  { %v372_v3 = vadd.f32 %v5478_v12, %v371_v1  ;;  %v4487_v4 = vpop.f32.mrb[45].mxu0 }
 0x149   :  { %v581_v6 = vmax.f32 %v579_v56, %v580_v63  ;;  %v599_v7 = vmax.f32 %v597_v33, %v598_v0  ;;  %v374_v8 = vpop.f32.mrb[46].mxu0 }
 0x14a   :  { %v485_v11 = vmax.f32 %v372_v3, 0.0  ;;  %v375_v13 = vadd.f32 %v5478_v12, %v374_v8  ;;  %v4488_v14 = vpop.f32.mrb[47].mxu0 }
 0x14b   :  { %v600_v15 = vrot.slane %v599_v7, 4  ;;  %v718_v16 = vsel %vm717_vm13, %v716_v61, %v581_v6 }
 0x14c   :  { %v486_v17 = vmax.f32 %v375_v13, 0.0  ;;  %v720_v59 = vsel %vm719_vm14, %v718_v16, %v592_v10  ;;  %v607_v19 = vsel %vm606_vm15, %v485_v11, -inf }
 0x14d   :  { %v601_v18 = vmax.f32 %v599_v7, %v600_v15 }
 0x14e   :  { %v608_v20 = vsel %vm507_vm3, %v486_v17, -inf }
 0x14f   :  { %v602_v21 = vrot.slane %v601_v18, 2  ;;  %v612_v22 = vmax.f32 %v607_v19, %v608_v20  ;;  %v379_v23 = vpop.f32.mrb[48].mxu0 }
 0x150   :  { %v380_v24 = vadd.f32 %v5478_v12, %v379_v23  ;;  %v4491_v25 = vpop.f32.mrb[49].mxu0 }
 0x151   :  { %v603_v26 = vmax.f32 %v601_v18, %v602_v21  ;;  %v382_v27 = vpop.f32.mrb[50].mxu0 }
 0x152   :  { %v487_v28 = vmax.f32 %v380_v24, 0.0  ;;  %v383_v29 = vadd.f32 %v5478_v12, %v382_v27  ;;  %v4492_v30 = vpop.f32.mrb[51].mxu0 }
 0x153   :  { %v604_v31 = vrot.slane %v603_v26, 1 }
 0x154   :  { %v488_v32 = vmax.f32 %v383_v29, 0.0  ;;  %v609_v35 = vsel %vm507_vm3, %v487_v28, -inf }
 0x155   :  { %v605_v34 = vmax.f32 %v603_v26, %v604_v31 }
 0x156   :  { %v611_v36 = vsel %vm610_vm2, %v488_v32, -inf  ;;  %v635_v45 = vsel %vm634_vm5, %v488_v32, -inf }
 0x157   :  { %v613_v37 = vmax.f32 %v609_v35, %v611_v36  ;;  %v387_v38 = vpop.f32.mrb[52].mxu0  ;;  %v5560_v39 = vsel %vm721_vm4, %v720_v59, %v605_v34 }
 0x158   :  { %v388_v40 = vadd.f32 %v5478_v12, %v387_v38  ;;  %v4495_v33 = vpop.f32.mrb[53].mxu0 }
 0x159   :  { %v5563_v9 = vmax.f32 %v612_v22, %v613_v37  ;;  %v390_v41 = vpop.f32.mrb[54].mxu0 }
 0x15a   :  { %v489_v42 = vmax.f32 %v388_v40, 0.0  ;;  %v391_v43 = vadd.f32 %v5478_v12, %v390_v41  ;;  %v4496_v44 = vpop.f32.mrb[55].mxu0 }
 0x15b   :  { %v615_v34 = vrot.slane %v5563_v9, 4 }
 0x15c   :  { %v636_v46 = vsel %vm507_vm3, %v489_v42, -inf  ;;  %v490_v47 = vmax.f32 %v391_v43, 0.0 }
 0x15d   :  { %v639_v48 = vmax.f32 %v635_v45, %v636_v46  ;;  %v616_v42 = vmax.f32 %v5563_v9, %v615_v34 }
 0x15e   :  { %v638_v49 = vsel %vm637_vm6, %v490_v47, -inf  ;;  %v662_v57 = vsel %vm606_vm15, %v490_v47, -inf  ;;  %vm651_vm15 = vcmask 122880  }
 0x15f   :  { %v640_v50 = vmax.f32 %v639_v48, %v638_v49  ;;  %v395_v51 = vpop.f32.mrb[56].mxu0 }
 0x160   :  { %v396_v52 = vadd.f32 %v5478_v12, %v395_v51  ;;  %v4499_v53 = vpop.f32.mrb[57].mxu0  ;;  %v617_v51 = vrot.slane %v616_v42, 2 }
 0x161   :  { %v398_v54 = vpop.f32.mrb[58].mxu0  ;;  %v641_v35 = vrot.slane %v640_v50, 4 }
 0x162   :  { %v491_v55 = vmax.f32 %v396_v52, 0.0  ;;  %v4500_v56 = vpop.f32.mrb[59].mxu0  ;;  %v399_v60 = vadd.f32 %v5478_v12, %v398_v54 }
 0x163   :  { %v642_v44 = vmax.f32 %v640_v50, %v641_v35 }
 0x164   :  { %v663_v58 = vsel %vm507_vm3, %v491_v55, -inf  ;;  %v492_v0 = vmax.f32 %v399_v60, 0.0  ;;  %v618_v60 = vmax.f32 %v616_v42, %v617_v51 }
 0x165   :  { %v666_v61 = vmax.f32 %v662_v57, %v663_v58  ;;  %v643_v53 = vrot.slane %v642_v44, 2 }
 0x166   :  { %v664_v8 = vsel %vm507_vm3, %v492_v0, -inf }
 0x167   :  { %v403_v63 = vpop.f32.mrb[60].mxu0  ;;  %v644_v0 = vmax.f32 %v642_v44, %v643_v53 }
 0x168   :  { %v404_v1 = vadd.f32 %v5478_v12, %v403_v63  ;;  %v4503_v3 = vpop.f32.mrb[61].mxu0 }
 0x169   :  { %v406_v4 = vpop.f32.mrb[62].mxu0 }
 0x16a   :  { %v493_v5 = vmax.f32 %v404_v1, 0.0  ;;  %v407_v6 = vadd.f32 %v5478_v12, %v406_v4  ;;  %v4504_v7 = vpop.f32.mrb[63].mxu0 }
 0x16c   :  { %v665_v10 = vsel %vm610_vm2, %v493_v5, -inf  ;;  %v494_v11 = vmax.f32 %v407_v6, 0.0  ;;  %v686_v14 = vsel %vm634_vm5, %v493_v5, -inf }
 0x16d   :  { %v667_v13 = vmax.f32 %v664_v8, %v665_v10  ;;  %v619_v8 = vrot.slane %v618_v60, 1 }
 0x16e   :  { %v687_v15 = vsel %vm507_vm3, %v494_v11, -inf  ;;  %v645_v11 = vrot.slane %v644_v0, 1 }
 0x16f   :  { %v668_v16 = vmax.f32 %v666_v61, %v667_v13  ;;  %v689_v17 = vmax.f32 %v686_v14, %v687_v15  ;;  %v411_v59 = vpop.f32.mrb[64].mxu0 }
 0x170   :  { %v412_v18 = vadd.f32 %v5478_v12, %v411_v59  ;;  %v4507_v19 = vpop.f32.mrb[65].mxu0 }
 0x171   :  { %v414_v20 = vpop.f32.mrb[66].mxu0  ;;  %v669_v1 = vrot.slane %v668_v16, 4 }
 0x172   :  { %v495_v21 = vmax.f32 %v412_v18, 0.0  ;;  %v4508_v22 = vpop.f32.mrb[67].mxu0 }
 0x173   :  { %v670_v13 = vmax.f32 %v668_v16, %v669_v1  ;;  %v620_v22 = vmax.f32 %v618_v60, %v619_v8 }
 0x174   :  { %v688_v23 = vsel %vm637_vm6, %v495_v21, -inf }
 0x175   :  { %v5581_v24 = vmax.f32 %v689_v17, %v688_v23 }
 0x177   :  { %v418_v25 = vpop.f32.mrb[68].mxu0  ;;  %v691_v17 = vrot.slane %v5581_v24, 4 }
 0x178   :  { %v419_v26 = vadd.f32 %v5478_v12, %v418_v25  ;;  %v4511_v27 = vpop.f32.mrb[69].mxu0 }
 0x179   :  { %v421_v28 = vpop.f32.mrb[70].mxu0  ;;  %v646_v27 = vmax.f32 %v644_v0, %v645_v11 }
 0x17a   :  { %v496_v29 = vmax.f32 %v419_v26, 0.0  ;;  %v422_v30 = vadd.f32 %v5478_v12, %v421_v28  ;;  %v4512_v31 = vpop.f32.mrb[71].mxu0  ;;  %v671_v28 = vrot.slane %v670_v13, 2 }
 0x17b   :  { %v692_v31 = vmax.f32 %v5581_v24, %v691_v17 }
 0x17c   :  { %v497_v32 = vmax.f32 %v422_v30, 0.0  ;;  %v622_v36 = vsel %vm621_vm7, %v496_v29, -inf }
 0x17e   :  { %v623_v37 = vsel %vm507_vm3, %v497_v32, -inf }
 0x17f   :  { %v626_v38 = vmax.f32 %v622_v36, %v623_v37  ;;  %v426_v40 = vpop.f32.mrb[72].mxu0 }
 0x180   :  { %v427_v33 = vadd.f32 %v5478_v12, %v426_v40  ;;  %v4515_v41 = vpop.f32.mrb[73].mxu0 }
 0x181   :  { %v429_v43 = vpop.f32.mrb[74].mxu0  ;;  %v672_v41 = vmax.f32 %v670_v13, %v671_v28 }
 0x182   :  { %v498_v45 = vmax.f32 %v427_v33, 0.0  ;;  %v430_v46 = vadd.f32 %v5478_v12, %v429_v43  ;;  %v4516_v47 = vpop.f32.mrb[75].mxu0 }
 0x184   :  { %v625_v48 = vsel %vm624_vm8, %v498_v45, -inf  ;;  %v499_v49 = vmax.f32 %v430_v46, 0.0  ;;  %v648_v54 = vsel %vm647_vm9, %v498_v45, -inf  ;;  %v693_v46 = vrot.slane %v692_v31, 2 }
 0x185   :  { %v627_v52 = vmax.f32 %v626_v38, %v625_v48 }
 0x186   :  { %v649_v55 = vsel %vm507_vm3, %v499_v49, -inf }
 0x187   :  { %v628_v56 = vrot.slane %v627_v52, 4  ;;  %v653_v9 = vmax.f32 %v648_v54, %v649_v55  ;;  %v434_v57 = vpop.f32.mrb[76].mxu0 }
 0x188   :  { %v435_v50 = vadd.f32 %v5478_v12, %v434_v57  ;;  %v4519_v58 = vpop.f32.mrb[77].mxu0 }
 0x189   :  { %v629_v61 = vmax.f32 %v627_v52, %v628_v56  ;;  %v437_v63 = vpop.f32.mrb[78].mxu0  ;;  %v673_v52 = vrot.slane %v672_v41, 1 }
 0x18a   :  { %v500_v3 = vmax.f32 %v435_v50, 0.0  ;;  %v438_v4 = vadd.f32 %v5478_v12, %v437_v63  ;;  %v4520_v5 = vpop.f32.mrb[79].mxu0 }
 0x18b   :  { %v630_v6 = vrot.slane %v629_v61, 2  ;;  %v674_v0 = vmax.f32 %v672_v41, %v673_v52 }
 0x18c   :  { %v501_v7 = vmax.f32 %v438_v4, 0.0  ;;  %v650_v14 = vsel %vm507_vm3, %v500_v3, -inf }
 0x18d   :  { %v631_v10 = vmax.f32 %v629_v61, %v630_v6 }
 0x18e   :  { %v652_v15 = vsel %vm651_vm15, %v501_v7, -inf  ;;  %v675_v36 = vsel %vm621_vm7, %v501_v7, -inf }
 0x18f   :  { %v632_v59 = vrot.slane %v631_v10, 1  ;;  %v654_v18 = vmax.f32 %v650_v14, %v652_v15  ;;  %v442_v19 = vpop.f32.mrb[80].mxu0 }
 0x190   :  { %v443_v20 = vadd.f32 %v5478_v12, %v442_v19  ;;  %v4523_v21 = vpop.f32.mrb[81].mxu0 }
 0x191   :  { %v633_v23 = vmax.f32 %v631_v10, %v632_v59  ;;  %v655_v25 = vmax.f32 %v653_v9, %v654_v18  ;;  %v445_v26 = vpop.f32.mrb[82].mxu0  ;;  %v694_v9 = vmax.f32 %v692_v31, %v693_v46  ;;  %v5666_v46 = vpop.permute.xlu0 %919 }
 0x192   :  { %v502_v29 = vmax.f32 %v443_v20, 0.0  ;;  %v446_v16 = vadd.f32 %v5478_v12, %v445_v26  ;;  %v4524_v30 = vpop.f32.mrb[83].mxu0 }
 0x193   :  { %v723_v32 = vsel %vm710_vm10, %v620_v22, %v633_v23  ;;  %v656_v34 = vrot.slane %v655_v25, 4  ;;  %v695_v5 = vrot.slane %v694_v9, 1  ;;  %v4863_v30 = vld [vmem:[%s6517_s0] sm:$0xff]   ;;  %s6520_s0 = sld [smem:[#allocation14_spill]]  ;;  %vm3780_vm10 = vcmask 254976  }
 0x194   :  { %v724_v35 = vsel %vm712_vm11, %v723_v32, %v646_v27  ;;  %v676_v37 = vsel %vm507_vm3, %v502_v29, -inf  ;;  %v503_v38 = vmax.f32 %v446_v16, 0.0  ;;  %v5630_v32 = vld [vmem:[%s6518_s30] sm:$0xff]  }
 0x195   :  { %v657_v40 = vmax.f32 %v655_v25, %v656_v34  ;;  %v678_v33 = vmax.f32 %v675_v36, %v676_v37  ;;  %v696_v59 = vmax.f32 %v694_v9, %v695_v5  ;;  %v4198_v36 = vld [vmem:[%s6519_s1] ss:$0 sm:$0xff] }
 0x196   :  { %v677_v42 = vsel %vm624_vm8, %v503_v38, -inf  ;;  %v697_v57 = vsel %vm647_vm9, %v503_v38, -inf  ;;  %vm4063_vm8 = vcmask 58368  }
 0x197   :  { %v658_v43 = vrot.slane %v657_v40, 2  ;;  %v679_v44 = vmax.f32 %v678_v33, %v677_v42  ;;  %v450_v45 = vpop.f32.mrb[84].mxu0  ;;  %v5659_v33 = vld [vmem:[%s6483_s9] ss:$0 sm:$0xff]  ;;  %s5118_s9 = smov 96  }
 0x198   :  { %v451_v24 = vadd.f32 %v5478_v12, %v450_v45  ;;  %v4527_v47 = vpop.f32.mrb[85].mxu0 }
 0x199   :  { %v659_v48 = vmax.f32 %v657_v40, %v658_v43  ;;  %v680_v49 = vrot.slane %v679_v44, 4  ;;  %v453_v51 = vpop.f32.mrb[86].mxu0 }
 0x19a   :  { %v504_v53 = vmax.f32 %v451_v24, 0.0  ;;  %v4528_v54 = vpop.f32.mrb[87].mxu0  ;;  %v454_v58 = vadd.f32 %v5478_v12, %v453_v51 }
 0x19b   :  { %v660_v55 = vrot.slane %v659_v48, 1  ;;  %v681_v56 = vmax.f32 %v679_v44, %v680_v49 }
 0x19c   :  { %v698_v50 = vsel %vm507_vm3, %v504_v53, -inf  ;;  %v505_v6 = vmax.f32 %v454_v58, 0.0 }
 0x19d   :  { %v661_v60 = vmax.f32 %v659_v48, %v660_v55  ;;  %v682_v61 = vrot.slane %v681_v56, 2  ;;  %v701_v63 = vmax.f32 %v697_v57, %v698_v50 }
 0x19e   :  { %v699_v18 = vsel %vm507_vm3, %v505_v6, -inf }
 0x19f   :  { %v725_v1 = vsel %vm714_vm12, %v724_v35, %v661_v60  ;;  %v683_v3 = vmax.f32 %v681_v56, %v682_v61  ;;  %v458_v4 = vpop.f32.mrb[88].mxu0 }
 0x1a0   :  { %v459_v7 = vadd.f32 %v5478_v12, %v458_v4  ;;  %v4531_v8 = vpop.f32.mrb[89].mxu0  ;;  %v726_v10 = vsel %vm246_vm1, %v725_v1, %v674_v0 }
 0x1a1   :  { %v684_v11 = vrot.slane %v683_v3, 1  ;;  %v461_v13 = vpop.f32.mrb[90].mxu0 }
 0x1a2   :  { %v506_v14 = vmax.f32 %v459_v7, 0.0  ;;  %v4532_v15 = vpop.f32.mrb[91].mxu0 }
 0x1a3   :  { %v685_v17 = vmax.f32 %v683_v3, %v684_v11 }
 0x1a4   :  { %v700_v19 = vsel %vm651_vm15, %v506_v14, -inf }
 0x1a5   :  { %v702_v20 = vmax.f32 %v699_v18, %v700_v19  ;;  %v727_v21 = vsel %vm717_vm13, %v726_v10, %v685_v17 }
 0x1a6   :  { %v728_v22 = vsel %vm719_vm14, %v727_v21, %v696_v59 }
 0x1a7   :  { %v703_v23 = vmax.f32 %v701_v63, %v702_v20 }
 0x1a9   :  { %v704_v12 = vrot.slane %v703_v23, 4 }
 0x1ab   :  { %v705_v25 = vmax.f32 %v703_v23, %v704_v12 }
 0x1ad   :  { %v706_v26 = vrot.slane %v705_v25, 2 }
 0x1af   :  { %v707_v27 = vmax.f32 %v705_v25, %v706_v26 }
 0x1b1   :  { %v708_v28 = vrot.slane %v707_v27, 1 }
 0x1b3   :  { %v709_v29 = vmax.f32 %v707_v27, %v708_v28 }
 0x1b5   :  { %v729_v16 = vsel %vm721_vm4, %v728_v22, %v709_v29 }
 0x1b6   :  { %v730_v31 = vpack.c.bf16 %v729_v16, %v5560_v39  ;;  %v5637_v39 = vld [vmem:[%s6518_s30 + $0x8] sm:$0xff]  }
 0x1b8   :  { %4536 = vmatmul.mubr.msk.bf16.vlgmr.msra.gmra.mrb[0].mxu1 %vm507_vm3, %v730_v31 }
 0x1b9   :  { %4540 = vmatpush3.bf16.msra.mxu1 %v4863_v30  ;;  %4541 = vmatprep.mubr.msk.bf16.mxu1 %vm5115_vm0, %v5114_v2 }
 0x1ba   :  { %4545 = vmatprep.subr.bf16.mxu1 %v5114_v2 }
 0x1c0   :  { %4542 = vmatmul.mubr.msk.bf16.vlgmr.msra.gmra.mrb[4].mxu1 %vm507_vm3, %v730_v31  ;;  %vm863_vm3 = vcmask 261120  }
 0x1c1   :  { %4546 = vmatpush3.bf16.msra.mxu1 %v5630_v32  ;;  %4549 = vmatprep.mubr.msk.bf16.mxu1 %vm5115_vm0, %v5114_v2 }
 0x1c2   :  { %4547 = vmatprep.subr.bf16.mxu1 %v5114_v2 }
 0x1c5   :  { %4548 = vmatpush3.bf16.msra.mxu1 %v5637_v39 }
 0x1c6   :  { %4553 = vmatprep.subr.bf16.mxu1 %v5114_v2 }
 0x1c8   :  { %4550 = vmatmul.mubr.bf16.vlgmr.msra.gmra.mrb[8].mxu1 %v5116_v62 }
 0x1c9   :  { %4554 = vmatpush3.bf16.msra.mxu1 %v5630_v32  ;;  %4557 = vmatprep.mubr.msk.bf16.mxu1 %vm5115_vm0, %v5114_v2 }
 0x1ca   :  { %4555 = vmatprep.subr.bf16.mxu1 %v5114_v2 }
 0x1cd   :  { %4556 = vmatpush3.bf16.msra.mxu1 %v5637_v39 }
 0x1ce   :  { %4561 = vmatprep.subr.bf16.mxu1 %v5114_v2 }
 0x28b   :  { %v783_v34 = vpop.f32.mrb[0].mxu1 }
 0x28c   :  { %v4537_v35 = vpop.f32.mrb[1].mxu1  ;;  %v5670_v52 = vadd.f32 %v4198_v36, %v783_v34 }
 0x28d   :  { %v786_v37 = vpop.f32.mrb[2].mxu1 }
 0x28e   :  { %v5654_v38 = vadd.f32 %v4198_v36, %v786_v37  ;;  %v4538_v40 = vpop.f32.mrb[3].mxu1 }
 0x293   :  { %v839_v41 = vpop.f32.mrb[4].mxu1 }
 0x294   :  { %v5662_v42 = vadd.f32 %v5659_v33, %v839_v41  ;;  %v4543_v43 = vpop.f32.mrb[5].mxu1 }
 0x295   :  { %v5664_v44 = vpop.f32.mrb[6].mxu1 }
 0x296   :  { %v4544_v45 = vpop.f32.mrb[7].mxu1 }
 0x29b   :  { %v901_v24 = vpop.f32.mrb[8].mxu1 }
 0x29c   :  { %v922_v47 = vadd.f32 %v5666_v46, %v901_v24  ;;  %v4551_v48 = vpop.f32.mrb[9].mxu1  ;;  %v907_v53 = vadd.f32 %v901_v24, %v5670_v52 }
 0x29d   :  { %v904_v49 = vpop.f32.mrb[10].mxu1 }
 0x29e   :  { %924 = vrot.lane.b32.xlu0 %v922_v47, %s5117_s6  ;;  %v4552_v51 = vpop.f32.mrb[11].mxu1  ;;  %v4206_v54 = vmul.f32 -1.442695, %v907_v53 }
 0x2a0   :  { %4880 = vpow2.f32 %v4206_v54 }
 0x2aa   :  { %v4881_v55 = vpop.eup %4880 }
 0x2ab   :  { %v911_v56 = vadd.f32 1.0, %v4881_v55 }
 0x2ad   :  { %4882 = vrcp.f32 %v911_v56 }
 0x2b7   :  { %v4883_v9 = vpop.eup %4882 }
 0x2b8   :  { %v934_v63 = vsub.f32 1.0, %v4883_v9  ;;  %v940_v1 = vmul.f32 0.0, %v4883_v9 }
 0x310   :  { %v925_v57 = vpop.permute.xlu0 %924 }
 0x311   :  { %v927_v50 = vmul.f32 %v4883_v9, %v925_v57 }
 0x313   :  { %929 = vrot.lane.b32.xlu1 %v927_v50, %s5117_s6 }
 0x385   :  { %v930_v58 = vpop.permute.xlu1 %929 }
 0x386   :  { %v932_v60 = vadd.f32 %v930_v58, %v5670_v52 }
 0x388   :  { %4884 = vtanh.f32 %v932_v60 }
 0x392   :  { %v4885_v61 = vpop.eup %4884 }
 0x393   :  { %936 = vrot.lane.b32.xlu1 %v4885_v61, %s5118_s9 }
 0x405   :  { %v937_v0 = vpop.permute.xlu1 %936 }
 0x406   :  { %v939_v3 = vmul.f32 %v937_v0, %v934_v63 }
 0x408   :  { %v5676_v4 = vadd.f32 %v940_v1, %v939_v3 }
 0x40a   :  { %v942_v5 = vpack.c.bf16 %v5676_v4, %v5676_v4  ;;  %v1019_v27 = vrot.slane %v5676_v4, 6 }
 0x40c   :  { %944 = vrot.lane.b32.xlu0 %v942_v5, %s5118_s9 }
 0x47e   :  { %v945_v6 = vpop.permute.xlu0 %944 }
 0x47f   :  { %4558 = vmatmul.mubr.msk.bf16.vlgmr.msra.gmra.mrb[12].mxu1 %vm863_vm3, %v945_v6 }
 0x480   :  { %4562 = vmatpush3.bf16.msra.mxu1 %v5630_v32  ;;  %4565 = vmatprep.mubr.msk.bf16.mxu1 %vm5115_vm0, %v5114_v2 }
 0x481   :  { %4563 = vmatprep.subr.bf16.mxu1 %v5114_v2 }
 0x484   :  { %4564 = vmatpush3.bf16.msra.mxu1 %v5637_v39 }
 0x485   :  { %4569 = vmatprep.subr.bf16.mxu1 %v5114_v2 }
 0x552   :  { %v983_v7 = vpop.f32.mrb[12].mxu1 }
 0x553   :  { %v999_v8 = vadd.f32 %v983_v7, %v5666_v46  ;;  %v4559_v10 = vpop.f32.mrb[13].mxu1  ;;  %v990_v15 = vrot.slane %v983_v7, 6 }
 0x554   :  { %v986_v11 = vpop.f32.mrb[14].mxu1 }
 0x555   :  { %v1001_v13 = vrot.slane %v999_v8, 6  ;;  %v4560_v14 = vpop.f32.mrb[15].mxu1  ;;  %v992_v17 = vadd.f32 %v990_v15, %v5670_v52 }
 0x557   :  { %1002 = vrot.lane.b32.xlu1 %v1001_v13, %s5117_s6  ;;  %v4209_v59 = vmul.f32 -1.442695, %v992_v17 }
 0x559   :  { %4886 = vpow2.f32 %v4209_v59 }
 0x563   :  { %v4887_v18 = vpop.eup %4886 }
 0x564   :  { %v996_v19 = vadd.f32 1.0, %v4887_v18 }
 0x566   :  { %4888 = vrcp.f32 %v996_v19 }
 0x570   :  { %v4889_v20 = vpop.eup %4888 }
 0x571   :  { %v1012_v26 = vsub.f32 1.0, %v4889_v20  ;;  %v1021_v29 = vmul.f32 %v4889_v20, %v1019_v27 }
 0x5c9   :  { %v1003_v21 = vpop.permute.xlu1 %1002 }
 0x5ca   :  { %v1005_v22 = vmul.f32 %v4889_v20, %v1003_v21 }
 0x5cc   :  { %1007 = vrot.lane.b32.xlu0 %v1005_v22, %s5117_s6 }
 0x63e   :  { %v1008_v23 = vpop.permute.xlu0 %1007 }
 0x63f   :  { %v1010_v12 = vadd.f32 %v1008_v23, %v5670_v52 }
 0x641   :  { %4890 = vtanh.f32 %v1010_v12 }
 0x64b   :  { %v4891_v25 = vpop.eup %4890 }
 0x64c   :  { %1014 = vrot.lane.b32.xlu1 %v4891_v25, %s5118_s9 }
 0x6be   :  { %v1015_v28 = vpop.permute.xlu1 %1014 }
 0x6bf   :  { %v1017_v16 = vmul.f32 %v1015_v28, %v1012_v26 }
 0x6c1   :  { %v1022_v30 = vadd.f32 %v1021_v29, %v1017_v16 }
 0x6c3   :  { %v1023_v31 = vpack.c.bf16 %v1022_v30, %v1022_v30  ;;  %v1101_v58 = vrot.slane %v1022_v30, 6  ;;  %v2171_v1 = vsel %vm712_vm11, %v5676_v4, %v1022_v30 }
 0x6c5   :  { %v1025_v34 = vrot.slane %v1023_v31, 1 }
 0x6c7   :  { %1026 = vrot.lane.b32.xlu0 %v1025_v34, %s5118_s9 }
 0x739   :  { %v1027_v35 = vpop.permute.xlu0 %1026 }
 0x73a   :  { %4566 = vmatmul.mubr.msk.bf16.vlgmr.msra.gmra.mrb[16].mxu1 %vm863_vm3, %v1027_v35 }
 0x73b   :  { %4570 = vmatpush3.bf16.msra.mxu1 %v5630_v32  ;;  %4573 = vmatprep.mubr.msk.bf16.mxu1 %vm5115_vm0, %v5114_v2 }
 0x73c   :  { %4571 = vmatprep.subr.bf16.mxu1 %v5114_v2 }
 0x73f   :  { %4572 = vmatpush3.bf16.msra.mxu1 %v5637_v39 }
 0x740   :  { %4577 = vmatprep.subr.bf16.mxu1 %v5114_v2 }
 0x80d   :  { %v1065_v36 = vpop.f32.mrb[16].mxu1 }
 0x80e   :  { %v1081_v37 = vadd.f32 %v1065_v36, %v5666_v46  ;;  %v4567_v40 = vpop.f32.mrb[17].mxu1  ;;  %v1072_v24 = vrot.slane %v1065_v36, 4 }
 0x80f   :  { %v1068_v41 = vpop.f32.mrb[18].mxu1 }
 0x810   :  { %v1083_v43 = vrot.slane %v1081_v37, 4  ;;  %v4568_v45 = vpop.f32.mrb[19].mxu1  ;;  %v1074_v47 = vadd.f32 %v1072_v24, %v5670_v52 }
 0x812   :  { %1084 = vrot.lane.b32.xlu1 %v1083_v43, %s5117_s6  ;;  %v4211_v48 = vmul.f32 -1.442695, %v1074_v47 }
 0x814   :  { %4892 = vpow2.f32 %v4211_v48 }
 0x81e   :  { %v4893_v49 = vpop.eup %4892 }
 0x81f   :  { %v1078_v51 = vadd.f32 1.0, %v4893_v49 }
 0x821   :  { %4894 = vrcp.f32 %v1078_v51 }
 0x82b   :  { %v4895_v53 = vpop.eup %4894 }
 0x82c   :  { %v1094_v50 = vsub.f32 1.0, %v4895_v53  ;;  %v1103_v61 = vmul.f32 %v4895_v53, %v1101_v58 }
 0x884   :  { %v1085_v54 = vpop.permute.xlu1 %1084 }
 0x885   :  { %v1087_v55 = vmul.f32 %v4895_v53, %v1085_v54 }
 0x887   :  { %1089 = vrot.lane.b32.xlu0 %v1087_v55, %s5117_s6 }
 0x8f9   :  { %v1090_v56 = vpop.permute.xlu0 %1089 }
 0x8fa   :  { %v1092_v9 = vadd.f32 %v1090_v56, %v5670_v52 }
 0x8fc   :  { %4896 = vtanh.f32 %v1092_v9 }
 0x906   :  { %v4897_v57 = vpop.eup %4896 }
 0x907   :  { %1096 = vrot.lane.b32.xlu1 %v4897_v57, %s5118_s9 }
 0x979   :  { %v1097_v60 = vpop.permute.xlu1 %1096 }
 0x97a   :  { %v1099_v63 = vmul.f32 %v1097_v60, %v1094_v50 }
 0x97c   :  { %v1104_v0 = vadd.f32 %v1103_v61, %v1099_v63 }
 0x97e   :  { %v1105_v3 = vpack.c.bf16 %v1104_v0, %v1104_v0  ;;  %v2172_v5 = vsel %vm246_vm1, %v2171_v1, %v1104_v0  ;;  %v1183_v27 = vrot.slane %v1104_v0, 6 }
 0x980   :  { %v1107_v6 = vrot.slane %v1105_v3, 2 }
 0x982   :  { %1108 = vrot.lane.b32.xlu0 %v1107_v6, %s5118_s9 }
 0x9f4   :  { %v1109_v7 = vpop.permute.xlu0 %1108 }
 0x9f5   :  { %4574 = vmatmul.mubr.msk.bf16.vlgmr.msra.gmra.mrb[20].mxu1 %vm863_vm3, %v1109_v7 }
 0x9f6   :  { %4578 = vmatpush3.bf16.msra.mxu1 %v5630_v32  ;;  %4581 = vmatprep.mubr.msk.bf16.mxu1 %vm5115_vm0, %v5114_v2 }
 0x9f7   :  { %4579 = vmatprep.subr.bf16.mxu1 %v5114_v2 }
 0x9fa   :  { %4580 = vmatpush3.bf16.msra.mxu1 %v5637_v39 }
 0x9fb   :  { %4585 = vmatprep.subr.bf16.mxu1 %v5114_v2 }
 0xac8   :  { %v1147_v4 = vpop.f32.mrb[20].mxu1 }
 0xac9   :  { %v1163_v8 = vadd.f32 %v1147_v4, %v5666_v46  ;;  %v4575_v10 = vpop.f32.mrb[21].mxu1  ;;  %v1154_v15 = vrot.slane %v1147_v4, 2 }
 0xaca   :  { %v1150_v11 = vpop.f32.mrb[22].mxu1 }
 0xacb   :  { %v1165_v13 = vrot.slane %v1163_v8, 2  ;;  %v4576_v14 = vpop.f32.mrb[23].mxu1  ;;  %v1156_v17 = vadd.f32 %v1154_v15, %v5670_v52 }
 0xacd   :  { %1166 = vrot.lane.b32.xlu1 %v1165_v13, %s5117_s6  ;;  %v4213_v59 = vmul.f32 -1.442695, %v1156_v17 }
 0xacf   :  { %4898 = vpow2.f32 %v4213_v59 }
 0xad9   :  { %v4899_v18 = vpop.eup %4898 }
 0xada   :  { %v1160_v19 = vadd.f32 1.0, %v4899_v18 }
 0xadc   :  { %4900 = vrcp.f32 %v1160_v19 }
 0xae6   :  { %v4901_v20 = vpop.eup %4900 }
 0xae7   :  { %v1176_v26 = vsub.f32 1.0, %v4901_v20  ;;  %v1185_v29 = vmul.f32 %v4901_v20, %v1183_v27 }
 0xb3f   :  { %v1167_v21 = vpop.permute.xlu1 %1166 }
 0xb40   :  { %v1169_v22 = vmul.f32 %v4901_v20, %v1167_v21 }
 0xb42   :  { %1171 = vrot.lane.b32.xlu0 %v1169_v22, %s5117_s6 }
 0xbb4   :  { %v1172_v23 = vpop.permute.xlu0 %1171 }
 0xbb5   :  { %v1174_v12 = vadd.f32 %v1172_v23, %v5670_v52 }
 0xbb7   :  { %4902 = vtanh.f32 %v1174_v12 }
 0xbc1   :  { %v4903_v25 = vpop.eup %4902 }
 0xbc2   :  { %1178 = vrot.lane.b32.xlu1 %v4903_v25, %s5118_s9 }
 0xc34   :  { %v1179_v28 = vpop.permute.xlu1 %1178 }
 0xc35   :  { %v1181_v16 = vmul.f32 %v1179_v28, %v1176_v26 }
 0xc37   :  { %v1186_v30 = vadd.f32 %v1185_v29, %v1181_v16 }
 0xc39   :  { %v1187_v31 = vpack.c.bf16 %v1186_v30, %v1186_v30  ;;  %v5727_v34 = vsel %vm719_vm14, %v2172_v5, %v1186_v30  ;;  %v1261_v57 = vrot.slane %v1186_v30, 6 }
 0xc3b   :  { %v1189_v35 = vrot.slane %v1187_v31, 3 }
 0xc3d   :  { %1190 = vrot.lane.b32.xlu0 %v1189_v35, %s5118_s9 }
 0xcaf   :  { %v1191_v36 = vpop.permute.xlu0 %1190 }
 0xcb0   :  { %4582 = vmatmul.mubr.msk.bf16.vlgmr.msra.gmra.mrb[24].mxu1 %vm863_vm3, %v1191_v36 }
 0xcb1   :  { %4586 = vmatpush3.bf16.msra.mxu1 %v5630_v32  ;;  %4589 = vmatprep.mubr.msk.bf16.mxu1 %vm5115_vm0, %v5114_v2 }
 0xcb2   :  { %4587 = vmatprep.subr.bf16.mxu1 %v5114_v2 }
 0xcb5   :  { %4588 = vmatpush3.bf16.msra.mxu1 %v5637_v39 }
 0xcb6   :  { %4593 = vmatprep.subr.bf16.mxu1 %v5114_v2 }
 0xd83   :  { %v1229_v52 = vpop.f32.mrb[24].mxu1 }
 0xd84   :  { %v1242_v37 = vadd.f32 %v1229_v52, %v5666_v46  ;;  %v4583_v40 = vpop.f32.mrb[25].mxu1  ;;  %v1235_v45 = vadd.f32 %v1229_v52, %v5654_v38 }
 0xd85   :  { %v1232_v41 = vpop.f32.mrb[26].mxu1 }
 0xd86   :  { %1244 = vrot.lane.b32.xlu1 %v1242_v37, %s5117_s6  ;;  %v4584_v43 = vpop.f32.mrb[27].mxu1  ;;  %v4215_v24 = vmul.f32 -1.442695, %v1235_v45 }
 0xd88   :  { %4904 = vpow2.f32 %v4215_v24 }
 0xd92   :  { %v4905_v47 = vpop.eup %4904 }
 0xd93   :  { %v1239_v48 = vadd.f32 1.0, %v4905_v47 }
 0xd95   :  { %4906 = vrcp.f32 %v1239_v48 }
 0xd9f   :  { %v4907_v49 = vpop.eup %4906 }
 0xda0   :  { %v1254_v9 = vsub.f32 1.0, %v4907_v49  ;;  %v1263_v58 = vmul.f32 %v4907_v49, %v1261_v57 }
 0xdf8   :  { %v1245_v51 = vpop.permute.xlu1 %1244 }
 0xdf9   :  { %v1247_v53 = vmul.f32 %v4907_v49, %v1245_v51 }
 0xdfb   :  { %1249 = vrot.lane.b32.xlu0 %v1247_v53, %s5117_s6 }
 0xe6d   :  { %v1250_v54 = vpop.permute.xlu0 %1249 }
 0xe6e   :  { %v1252_v55 = vadd.f32 %v1250_v54, %v5654_v38 }
 0xe70   :  { %4908 = vtanh.f32 %v1252_v55 }
 0xe7a   :  { %v4909_v56 = vpop.eup %4908 }
 0xe7b   :  { %1256 = vrot.lane.b32.xlu1 %v4909_v56, %s5118_s9 }
 0xeed   :  { %v1257_v50 = vpop.permute.xlu1 %1256 }
 0xeee   :  { %v1259_v60 = vmul.f32 %v1257_v50, %v1254_v9  ;;  %v4225_v50 = vld [vmem:[%s6484_s10] ss:$0 sm:$0xff] }
 0xef0   :  { %v5743_v61 = vadd.f32 %v1263_v58, %v1259_v60 }
 0xef2   :  { %v1265_v63 = vpack.c.bf16 %v5743_v61, %v5743_v61  ;;  %v1342_v22 = vrot.slane %v5743_v61, 6 }
 0xef4   :  { %1267 = vrot.lane.b32.xlu0 %v1265_v63, %s5118_s9 }
 0xf66   :  { %v1268_v0 = vpop.permute.xlu0 %1267 }
 0xf67   :  { %4590 = vmatmul.mubr.msk.bf16.vlgmr.msra.gmra.mrb[28].mxu1 %vm863_vm3, %v1268_v0 }
 0xf68   :  { %4594 = vmatpush3.bf16.msra.mxu1 %v5630_v32  ;;  %4597 = vmatprep.mubr.msk.bf16.mxu1 %vm5115_vm0, %v5114_v2 }
 0xf69   :  { %4595 = vmatprep.subr.bf16.mxu1 %v5114_v2 }
 0xf6c   :  { %4596 = vmatpush3.bf16.msra.mxu1 %v5637_v39 }
 0xf6d   :  { %4601 = vmatprep.subr.bf16.mxu1 %v5114_v2 }
0x103a   :  { %v1306_v1 = vpop.f32.mrb[28].mxu1 }
0x103b   :  { %v1322_v3 = vadd.f32 %v1306_v1, %v5666_v46  ;;  %v4591_v5 = vpop.f32.mrb[29].mxu1  ;;  %v1313_v8 = vrot.slane %v1306_v1, 6  ;;  %v5801_v1 = vld [vmem:[%s6520_s0 + $0x8] sm:$0xff]  }
0x103c   :  { %v1309_v6 = vpop.f32.mrb[30].mxu1 }
0x103d   :  { %v1324_v7 = vrot.slane %v1322_v3, 6  ;;  %v4592_v4 = vpop.f32.mrb[31].mxu1  ;;  %v1315_v10 = vadd.f32 %v1313_v8, %v5654_v38 }
0x103f   :  { %1325 = vrot.lane.b32.xlu1 %v1324_v7, %s5117_s6  ;;  %v4217_v11 = vmul.f32 -1.442695, %v1315_v10 }
0x1041   :  { %4910 = vpow2.f32 %v4217_v11 }
0x104b   :  { %v4911_v13 = vpop.eup %4910 }
0x104c   :  { %v1319_v14 = vadd.f32 1.0, %v4911_v13 }
0x104e   :  { %4912 = vrcp.f32 %v1319_v14 }
0x1058   :  { %v4913_v15 = vpop.eup %4912 }
0x1059   :  { %v1335_v21 = vsub.f32 1.0, %v4913_v15  ;;  %v1344_v12 = vmul.f32 %v4913_v15, %v1342_v22 }
0x10b1   :  { %v1326_v17 = vpop.permute.xlu1 %1325 }
0x10b2   :  { %v1328_v59 = vmul.f32 %v4913_v15, %v1326_v17 }
0x10b4   :  { %1330 = vrot.lane.b32.xlu0 %v1328_v59, %s5117_s6  ;;  %v5823_v59 = vadd.f32 %v5659_v33, %v5664_v44 }
0x1126   :  { %v1331_v18 = vpop.permute.xlu0 %1330 }
0x1127   :  { %v1333_v19 = vadd.f32 %v1331_v18, %v5654_v38 }
0x1129   :  { %4914 = vtanh.f32 %v1333_v19 }
0x1133   :  { %v4915_v20 = vpop.eup %4914 }
0x1134   :  { %1337 = vrot.lane.b32.xlu1 %v4915_v20, %s5118_s9 }
0x11a6   :  { %v1338_v23 = vpop.permute.xlu1 %1337 }
0x11a7   :  { %v1340_v25 = vmul.f32 %v1338_v23, %v1335_v21 }
0x11a9   :  { %v1345_v26 = vadd.f32 %v1344_v12, %v1340_v25 }
0x11ab   :  { %v1346_v27 = vpack.c.bf16 %v1345_v26, %v1345_v26  ;;  %v1424_v53 = vrot.slane %v1345_v26, 6  ;;  %v2174_v57 = vsel %vm712_vm11, %v5743_v61, %v1345_v26  ;;  %v5794_v61 = vld [vmem:[%s6520_s0] sm:$0xff]  }
0x11ad   :  { %v1348_v28 = vrot.slane %v1346_v27, 1 }
0x11af   :  { %1349 = vrot.lane.b32.xlu0 %v1348_v28, %s5118_s9 }
0x1221   :  { %v1350_v29 = vpop.permute.xlu0 %1349 }
0x1222   :  { %4598 = vmatmul.mubr.msk.bf16.vlgmr.msra.gmra.mrb[32].mxu1 %vm863_vm3, %v1350_v29 }
0x1223   :  { %4602 = vmatpush3.bf16.msra.mxu1 %v5630_v32  ;;  %4605 = vmatprep.mubr.msk.bf16.mxu1 %vm5115_vm0, %v5114_v2 }
0x1224   :  { %4603 = vmatprep.subr.bf16.mxu1 %v5114_v2 }
0x1227   :  { %4604 = vmatpush3.bf16.msra.mxu1 %v5637_v39 }
0x1228   :  { %4609 = vmatprep.subr.bf16.mxu1 %v5114_v2 }
0x12f5   :  { %v1388_v16 = vpop.f32.mrb[32].mxu1 }
0x12f6   :  { %v1404_v30 = vadd.f32 %v1388_v16, %v5666_v46  ;;  %v4599_v31 = vpop.f32.mrb[33].mxu1  ;;  %v1395_v37 = vrot.slane %v1388_v16, 4 }
0x12f7   :  { %v1391_v35 = vpop.f32.mrb[34].mxu1 }
0x12f8   :  { %v1406_v36 = vrot.slane %v1404_v30, 4  ;;  %v4600_v52 = vpop.f32.mrb[35].mxu1  ;;  %v1397_v32 = vadd.f32 %v1395_v37, %v5654_v38 }
0x12fa   :  { %1407 = vrot.lane.b32.xlu1 %v1406_v36, %s5117_s6  ;;  %v4219_v40 = vmul.f32 -1.442695, %v1397_v32 }
0x12fc   :  { %4916 = vpow2.f32 %v4219_v40 }
0x1306   :  { %v4917_v41 = vpop.eup %4916 }
0x1307   :  { %v1401_v43 = vadd.f32 1.0, %v4917_v41 }
0x1309   :  { %4918 = vrcp.f32 %v1401_v43 }
0x1313   :  { %v4919_v39 = vpop.eup %4918 }
0x1314   :  { %v1417_v51 = vsub.f32 1.0, %v4919_v39  ;;  %v1426_v55 = vmul.f32 %v4919_v39, %v1424_v53 }
0x136c   :  { %v1408_v45 = vpop.permute.xlu1 %1407 }
0x136d   :  { %v1410_v24 = vmul.f32 %v4919_v39, %v1408_v45 }
0x136f   :  { %1412 = vrot.lane.b32.xlu0 %v1410_v24, %s5117_s6 }
0x13e1   :  { %v1413_v47 = vpop.permute.xlu0 %1412 }
0x13e2   :  { %v1415_v48 = vadd.f32 %v1413_v47, %v5654_v38 }
0x13e4   :  { %4920 = vtanh.f32 %v1415_v48 }
0x13ee   :  { %v4921_v49 = vpop.eup %4920 }
0x13ef   :  { %1419 = vrot.lane.b32.xlu1 %v4921_v49, %s5118_s9 }
0x13f3   :  { %1582 = vrot.lane.b32.xlu1 %v4225_v50, %s5117_s6 }
0x1461   :  { %v1420_v54 = vpop.permute.xlu1 %1419 }
0x1462   :  { %v1422_v56 = vmul.f32 %v1420_v54, %v1417_v51 }
0x1464   :  { %v5776_v9 = vadd.f32 %v1426_v55, %v1422_v56 }
0x1465   :  { %v5817_v4 = vpop.permute.xlu1 %1582 }
0x1466   :  { %v1428_v58 = vpack.c.bf16 %v5776_v9, %v5776_v9  ;;  %v5788_v60 = vsel %vm246_vm1, %v2174_v57, %v5776_v9 }
0x1468   :  { %v1430_v63 = vrot.slane %v1428_v58, 2 }
0x146a   :  { %1431 = vrot.lane.b32.xlu0 %v1430_v63, %s5118_s9 }
0x14dc   :  { %v1432_v0 = vpop.permute.xlu0 %1431 }
0x14dd   :  { %4606 = vmatmul.mubr.msk.bf16.vlgmr.msra.gmra.mrb[36].mxu1 %vm863_vm3, %v1432_v0 }
0x14de   :  { %4610 = vmatpush3.bf16.msra.mxu1 %v5794_v61  ;;  %4613 = vmatprep.mubr.msk.bf16.mxu1 %vm5115_vm0, %v5114_v2 }
0x14df   :  { %4611 = vmatprep.subr.bf16.mxu1 %v5114_v2 }
0x14e2   :  { %4612 = vmatpush3.bf16.msra.mxu1 %v5801_v1 }
0x14e3   :  { %4617 = vmatprep.subr.bf16.mxu1 %v5114_v2 }
0x14e5   :  { %4614 = vmatmul.mubr.bf16.vlgmr.msra.gmra.mrb[40].mxu1 %v5116_v62 }
0x14e6   :  { %4618 = vmatpush3.bf16.msra.mxu1 %v5794_v61  ;;  %4621 = vmatprep.mubr.msk.bf16.mxu1 %vm5115_vm0, %v5114_v2 }
0x14e7   :  { %4619 = vmatprep.subr.bf16.mxu1 %v5114_v2 }
0x14ea   :  { %4620 = vmatpush3.bf16.msra.mxu1 %v5801_v1 }
0x14eb   :  { %4625 = vmatprep.subr.bf16.mxu1 %v5114_v2 }
0x15b0   :  { %v5815_v3 = vpop.f32.mrb[36].mxu1 }
0x15b1   :  { %v4607_v5 = vpop.f32.mrb[37].mxu1 }
0x15b2   :  { %v1473_v6 = vpop.f32.mrb[38].mxu1 }
0x15b3   :  { %v4608_v7 = vpop.f32.mrb[39].mxu1 }
0x15b8   :  { %v1561_v8 = vpop.f32.mrb[40].mxu1 }
0x15b9   :  { %v1585_v10 = vadd.f32 %v5817_v4, %v1561_v8  ;;  %v4615_v11 = vpop.f32.mrb[41].mxu1  ;;  %v1568_v17 = vrot.slane %v1561_v8, 2 }
0x15ba   :  { %v1564_v13 = vpop.f32.mrb[42].mxu1 }
0x15bb   :  { %v1587_v14 = vrot.slane %v1585_v10, 2  ;;  %v4616_v15 = vpop.f32.mrb[43].mxu1  ;;  %v1570_v18 = vadd.f32 %v1568_v17, %v5823_v59 }
0x15bd   :  { %1588 = vrot.lane.b32.xlu0 %v1587_v14, %s5117_s6  ;;  %v4224_v19 = vmul.f32 -1.442695, %v1570_v18 }
0x15bf   :  { %4922 = vpow2.f32 %v4224_v19 }
0x15c9   :  { %v4923_v20 = vpop.eup %4922 }
0x15ca   :  { %v1574_v21 = vadd.f32 1.0, %v4923_v20 }
0x15cc   :  { %4924 = vrcp.f32 %v1574_v21 }
0x15d6   :  { %v4925_v22 = vpop.eup %4924 }
0x15d7   :  { %v1598_v33 = vsub.f32 1.0, %v4925_v22  ;;  %v1604_v28 = vmul.f32 0.0, %v4925_v22 }
0x162f   :  { %v1589_v23 = vpop.permute.xlu0 %1588 }
0x1630   :  { %v1591_v12 = vmul.f32 %v4925_v22, %v1589_v23 }
0x1632   :  { %1593 = vrot.lane.b32.xlu1 %v1591_v12, %s5117_s6 }
0x16a4   :  { %v1594_v25 = vpop.permute.xlu1 %1593 }
0x16a5   :  { %v1596_v26 = vadd.f32 %v1594_v25, %v5823_v59 }
0x16a7   :  { %4926 = vtanh.f32 %v1596_v26 }
0x16b1   :  { %v4927_v27 = vpop.eup %4926 }
0x16b2   :  { %1600 = vrot.lane.b32.xlu0 %v4927_v27, %s5118_s9 }
0x1724   :  { %v1601_v44 = vpop.permute.xlu0 %1600 }
0x1725   :  { %v1603_v29 = vmul.f32 %v1601_v44, %v1598_v33 }
0x1727   :  { %v5829_v16 = vadd.f32 %v1604_v28, %v1603_v29 }
0x1729   :  { %v1606_v30 = vpack.c.bf16 %v5829_v16, %v5829_v16  ;;  %v1684_v57 = vrot.slane %v5829_v16, 2 }
0x172b   :  { %v1608_v31 = vrot.slane %v1606_v30, 3 }
0x172d   :  { %1609 = vrot.lane.b32.xlu1 %v1608_v31, %s5118_s9 }
0x179f   :  { %v1610_v35 = vpop.permute.xlu1 %1609 }
0x17a0   :  { %4622 = vmatmul.mubr.msk.bf16.vlgmr.msra.gmra.mrb[44].mxu1 %vm863_vm3, %v1610_v35 }
0x17a1   :  { %4626 = vmatpush3.bf16.msra.mxu1 %v5794_v61  ;;  %4629 = vmatprep.mubr.msk.bf16.mxu1 %vm5115_vm0, %v5114_v2 }
0x17a2   :  { %4627 = vmatprep.subr.bf16.mxu1 %v5114_v2 }
0x17a5   :  { %4628 = vmatpush3.bf16.msra.mxu1 %v5801_v1 }
0x17a6   :  { %4633 = vmatprep.subr.bf16.mxu1 %v5114_v2 }
0x1873   :  { %v1648_v36 = vpop.f32.mrb[44].mxu1 }
0x1874   :  { %v1664_v52 = vadd.f32 %v1648_v36, %v5817_v4  ;;  %v4623_v37 = vpop.f32.mrb[45].mxu1  ;;  %v1655_v43 = vrot.slane %v1648_v36, 4 }
0x1875   :  { %v1651_v32 = vpop.f32.mrb[46].mxu1 }
0x1876   :  { %v1666_v40 = vrot.slane %v1664_v52, 4  ;;  %v4624_v41 = vpop.f32.mrb[47].mxu1  ;;  %v1657_v39 = vadd.f32 %v1655_v43, %v5823_v59 }
0x1878   :  { %1667 = vrot.lane.b32.xlu0 %v1666_v40, %s5117_s6  ;;  %v4227_v45 = vmul.f32 -1.442695, %v1657_v39 }
0x187a   :  { %4928 = vpow2.f32 %v4227_v45 }
0x1884   :  { %v4929_v24 = vpop.eup %4928 }
0x1885   :  { %v1661_v47 = vadd.f32 1.0, %v4929_v24 }
0x1887   :  { %4930 = vrcp.f32 %v1661_v47 }
0x1891   :  { %v4931_v48 = vpop.eup %4930 }
0x1892   :  { %v1677_v56 = vsub.f32 1.0, %v4931_v48  ;;  %v1686_v58 = vmul.f32 %v4931_v48, %v1684_v57 }
0x18ea   :  { %v1668_v49 = vpop.permute.xlu0 %1667 }
0x18eb   :  { %v1670_v51 = vmul.f32 %v4931_v48, %v1668_v49 }
0x18ed   :  { %1672 = vrot.lane.b32.xlu1 %v1670_v51, %s5117_s6 }
0x195f   :  { %v1673_v53 = vpop.permute.xlu1 %1672 }
0x1960   :  { %v1675_v54 = vadd.f32 %v1673_v53, %v5823_v59 }
0x1962   :  { %4932 = vtanh.f32 %v1675_v54 }
0x196c   :  { %v4933_v55 = vpop.eup %4932 }
0x196d   :  { %1679 = vrot.lane.b32.xlu0 %v4933_v55, %s5118_s9 }
0x19df   :  { %v1680_v50 = vpop.permute.xlu0 %1679 }
0x19e0   :  { %v1682_v63 = vmul.f32 %v1680_v50, %v1677_v56 }
0x19e2   :  { %v5848_v0 = vadd.f32 %v1686_v58, %v1682_v63 }
0x19e4   :  { %v1688_v5 = vpack.c.bf16 %v5848_v0, %v5848_v0  ;;  %v1766_v44 = vrot.slane %v5848_v0, 2 }
0x19e6   :  { %v1690_v6 = vrot.slane %v1688_v5, 2 }
0x19e8   :  { %1691 = vrot.lane.b32.xlu1 %v1690_v6, %s5118_s9 }
0x1a5a   :  { %v1692_v7 = vpop.permute.xlu1 %1691 }
0x1a5b   :  { %4630 = vmatmul.mubr.msk.bf16.vlgmr.msra.gmra.mrb[48].mxu1 %vm863_vm3, %v1692_v7 }
0x1a5c   :  { %4634 = vmatpush3.bf16.msra.mxu1 %v5794_v61  ;;  %4637 = vmatprep.mubr.msk.bf16.mxu1 %vm5115_vm0, %v5114_v2 }
0x1a5d   :  { %4635 = vmatprep.subr.bf16.mxu1 %v5114_v2 }
0x1a60   :  { %4636 = vmatpush3.bf16.msra.mxu1 %v5801_v1 }
0x1a61   :  { %4641 = vmatprep.subr.bf16.mxu1 %v5114_v2 }
0x1b2e   :  { %v1730_v8 = vpop.f32.mrb[48].mxu1 }
0x1b2f   :  { %v1746_v10 = vadd.f32 %v1730_v8, %v5817_v4  ;;  %v4631_v11 = vpop.f32.mrb[49].mxu1  ;;  %v1737_v17 = vrot.slane %v1730_v8, 6 }
0x1b30   :  { %v1733_v13 = vpop.f32.mrb[50].mxu1 }
0x1b31   :  { %v1748_v14 = vrot.slane %v1746_v10, 6  ;;  %v4632_v15 = vpop.f32.mrb[51].mxu1  ;;  %v1739_v18 = vadd.f32 %v1737_v17, %v5823_v59 }
0x1b33   :  { %1749 = vrot.lane.b32.xlu0 %v1748_v14, %s5117_s6  ;;  %v4229_v19 = vmul.f32 -1.442695, %v1739_v18 }
0x1b35   :  { %4934 = vpow2.f32 %v4229_v19 }
0x1b3f   :  { %v4935_v20 = vpop.eup %4934 }
0x1b40   :  { %v1743_v21 = vadd.f32 1.0, %v4935_v20 }
0x1b42   :  { %4936 = vrcp.f32 %v1743_v21 }
0x1b4c   :  { %v4937_v22 = vpop.eup %4936 }
0x1b4d   :  { %v1759_v33 = vsub.f32 1.0, %v4937_v22  ;;  %v1768_v29 = vmul.f32 %v4937_v22, %v1766_v44 }
0x1ba5   :  { %v1750_v23 = vpop.permute.xlu0 %1749 }
0x1ba6   :  { %v1752_v12 = vmul.f32 %v4937_v22, %v1750_v23 }
0x1ba8   :  { %1754 = vrot.lane.b32.xlu1 %v1752_v12, %s5117_s6 }
0x1c1a   :  { %v1755_v25 = vpop.permute.xlu1 %1754 }
0x1c1b   :  { %v1757_v26 = vadd.f32 %v1755_v25, %v5823_v59 }
0x1c1d   :  { %4938 = vtanh.f32 %v1757_v26 }
0x1c27   :  { %v4939_v27 = vpop.eup %4938 }
0x1c28   :  { %1761 = vrot.lane.b32.xlu0 %v4939_v27, %s5118_s9 }
0x1c9a   :  { %v1762_v28 = vpop.permute.xlu0 %1761 }
0x1c9b   :  { %v1764_v30 = vmul.f32 %v1762_v28, %v1759_v33 }
0x1c9d   :  { %v5867_v31 = vadd.f32 %v1768_v29, %v1764_v30 }
0x1c9f   :  { %v1770_v35 = vpack.c.bf16 %v5867_v31, %v5867_v31  ;;  %v1844_v57 = vrot.slane %v5867_v31, 2 }
0x1ca1   :  { %v1772_v36 = vrot.slane %v1770_v35, 1 }
0x1ca3   :  { %1773 = vrot.lane.b32.xlu1 %v1772_v36, %s5118_s9 }
0x1d15   :  { %v1774_v52 = vpop.permute.xlu1 %1773 }
0x1d16   :  { %4638 = vmatmul.mubr.msk.bf16.vlgmr.msra.gmra.mrb[52].mxu1 %vm863_vm3, %v1774_v52 }
0x1d17   :  { %4642 = vmatpush3.bf16.msra.mxu1 %v5794_v61  ;;  %4645 = vmatprep.mubr.msk.bf16.mxu1 %vm5115_vm0, %v5114_v2 }
0x1d18   :  { %4643 = vmatprep.subr.bf16.mxu1 %v5114_v2 }
0x1d1b   :  { %4644 = vmatpush3.bf16.msra.mxu1 %v5801_v1 }
0x1d1c   :  { %4649 = vmatprep.subr.bf16.mxu1 %v5114_v2 }
0x1de9   :  { %v1812_v37 = vpop.f32.mrb[52].mxu1 }
0x1dea   :  { %v1825_v32 = vadd.f32 %v1812_v37, %v5817_v4  ;;  %v4639_v40 = vpop.f32.mrb[53].mxu1  ;;  %v1818_v39 = vadd.f32 %v1812_v37, %v5823_v59 }
0x1deb   :  { %v1815_v41 = vpop.f32.mrb[54].mxu1 }
0x1dec   :  { %1827 = vrot.lane.b32.xlu0 %v1825_v32, %s5117_s6  ;;  %v4640_v43 = vpop.f32.mrb[55].mxu1  ;;  %v4231_v45 = vmul.f32 -1.442695, %v1818_v39 }
0x1dee   :  { %4940 = vpow2.f32 %v4231_v45 }
0x1df8   :  { %v4941_v24 = vpop.eup %4940 }
0x1df9   :  { %v1822_v47 = vadd.f32 1.0, %v4941_v24 }
0x1dfb   :  { %4942 = vrcp.f32 %v1822_v47 }
0x1e05   :  { %v4943_v48 = vpop.eup %4942 }
0x1e06   :  { %v1837_v56 = vsub.f32 1.0, %v4943_v48  ;;  %v1846_v58 = vmul.f32 %v4943_v48, %v1844_v57 }
0x1e5e   :  { %v1828_v49 = vpop.permute.xlu0 %1827 }
0x1e5f   :  { %v1830_v51 = vmul.f32 %v4943_v48, %v1828_v49 }
0x1e61   :  { %1832 = vrot.lane.b32.xlu1 %v1830_v51, %s5117_s6 }
0x1ed3   :  { %v1833_v53 = vpop.permute.xlu1 %1832 }
0x1ed4   :  { %v1835_v54 = vadd.f32 %v1833_v53, %v5823_v59 }
0x1ed6   :  { %4944 = vtanh.f32 %v1835_v54 }
0x1ee0   :  { %v4945_v55 = vpop.eup %4944 }
0x1ee1   :  { %1839 = vrot.lane.b32.xlu0 %v4945_v55, %s5118_s9 }
0x1f53   :  { %v1840_v50 = vpop.permute.xlu0 %1839 }
0x1f54   :  { %v1842_v63 = vmul.f32 %v1840_v50, %v1837_v56 }
0x1f56   :  { %v5886_v5 = vadd.f32 %v1846_v58, %v1842_v63 }
0x1f58   :  { %v1848_v6 = vpack.c.bf16 %v5886_v5, %v5886_v5  ;;  %v1925_v33 = vrot.slane %v5886_v5, 2 }
0x1f5a   :  { %1850 = vrot.lane.b32.xlu1 %v1848_v6, %s5118_s9 }
0x1fcc   :  { %v1851_v7 = vpop.permute.xlu1 %1850 }
0x1fcd   :  { %4646 = vmatmul.mubr.msk.bf16.vlgmr.msra.gmra.mrb[56].mxu1 %vm863_vm3, %v1851_v7 }
0x1fce   :  { %4650 = vmatpush3.bf16.msra.mxu1 %v5794_v61  ;;  %4653 = vmatprep.mubr.msk.bf16.mxu1 %vm5115_vm0, %v5114_v2 }
0x1fcf   :  { %4651 = vmatprep.subr.bf16.mxu1 %v5114_v2 }
0x1fd2   :  { %4652 = vmatpush3.bf16.msra.mxu1 %v5801_v1 }
0x1fd3   :  { %4657 = vmatprep.subr.bf16.mxu1 %v5114_v2 }
0x20a0   :  { %v1889_v59 = vpop.f32.mrb[56].mxu1 }
0x20a1   :  { %v1905_v8 = vadd.f32 %v1889_v59, %v5817_v4  ;;  %v4647_v10 = vpop.f32.mrb[57].mxu1  ;;  %v1896_v15 = vrot.slane %v1889_v59, 2 }
0x20a2   :  { %v1892_v11 = vpop.f32.mrb[58].mxu1 }
0x20a3   :  { %v1907_v13 = vrot.slane %v1905_v8, 2  ;;  %v4648_v14 = vpop.f32.mrb[59].mxu1  ;;  %v1898_v17 = vadd.f32 %v1896_v15, %v5662_v42 }
0x20a5   :  { %1908 = vrot.lane.b32.xlu0 %v1907_v13, %s5117_s6  ;;  %v4233_v18 = vmul.f32 -1.442695, %v1898_v17 }
0x20a7   :  { %4946 = vpow2.f32 %v4233_v18 }
0x20b1   :  { %v4947_v19 = vpop.eup %4946 }
0x20b2   :  { %v1902_v20 = vadd.f32 1.0, %v4947_v19 }
0x20b4   :  { %4948 = vrcp.f32 %v1902_v20 }
0x20be   :  { %v4949_v21 = vpop.eup %4948 }
0x20bf   :  { %v1918_v27 = vsub.f32 1.0, %v4949_v21  ;;  %v1927_v28 = vmul.f32 %v4949_v21, %v1925_v33 }
0x2117   :  { %v1909_v22 = vpop.permute.xlu0 %1908 }
0x2118   :  { %v1911_v23 = vmul.f32 %v4949_v21, %v1909_v22 }
0x211a   :  { %1913 = vrot.lane.b32.xlu1 %v1911_v23, %s5117_s6 }
0x218c   :  { %v1914_v12 = vpop.permute.xlu1 %1913 }
0x218d   :  { %v1916_v25 = vadd.f32 %v1914_v12, %v5662_v42 }
0x218f   :  { %4950 = vtanh.f32 %v1916_v25 }
0x2199   :  { %v4951_v26 = vpop.eup %4950 }
0x219a   :  { %1920 = vrot.lane.b32.xlu0 %v4951_v26, %s5118_s9 }
0x220c   :  { %v1921_v44 = vpop.permute.xlu0 %1920 }
0x220d   :  { %v1923_v29 = vmul.f32 %v1921_v44, %v1918_v27 }
0x220f   :  { %v5905_v30 = vadd.f32 %v1927_v28, %v1923_v29 }
0x2211   :  { %v1929_v35 = vpack.c.bf16 %v5905_v30, %v5905_v30  ;;  %v2007_v58 = vrot.slane %v5905_v30, 2 }
0x2213   :  { %v1931_v36 = vrot.slane %v1929_v35, 3 }
0x2215   :  { %1932 = vrot.lane.b32.xlu1 %v1931_v36, %s5118_s9 }
0x2287   :  { %v1933_v52 = vpop.permute.xlu1 %1932 }
0x2288   :  { %4654 = vmatmul.mubr.msk.bf16.vlgmr.msra.gmra.mrb[60].mxu1 %vm863_vm3, %v1933_v52 }
0x2289   :  { %4658 = vmatpush3.bf16.msra.mxu1 %v5794_v61  ;;  %4661 = vmatprep.mubr.msk.bf16.mxu1 %vm5115_vm0, %v5114_v2 }
0x228a   :  { %4659 = vmatprep.subr.bf16.mxu1 %v5114_v2 }
0x228d   :  { %4660 = vmatpush3.bf16.msra.mxu1 %v5801_v1 }
0x228e   :  { %4665 = vmatprep.subr.bf16.mxu1 %v5114_v2 }
0x235b   :  { %v1971_v37 = vpop.f32.mrb[60].mxu1 }
0x235c   :  { %v1987_v32 = vadd.f32 %v1971_v37, %v5817_v4  ;;  %v4655_v40 = vpop.f32.mrb[61].mxu1  ;;  %v1978_v45 = vrot.slane %v1971_v37, 4 }
0x235d   :  { %v1974_v41 = vpop.f32.mrb[62].mxu1 }
0x235e   :  { %v1989_v43 = vrot.slane %v1987_v32, 4  ;;  %v4656_v39 = vpop.f32.mrb[63].mxu1  ;;  %v1980_v24 = vadd.f32 %v1978_v45, %v5662_v42  ;;  %v1486_v32 = vadd.f32 %v5815_v3, %v5666_v46 }
0x2360   :  { %1990 = vrot.lane.b32.xlu0 %v1989_v43, %s5117_s6  ;;  %v4235_v47 = vmul.f32 -1.442695, %v1980_v24  ;;  %v1488_v41 = vrot.slane %v1486_v32, 2  ;;  %v1477_v43 = vrot.slane %v5815_v3, 2  ;;  %v4874_v32 = vld [vmem:[%s6490_s16] sm:$0xff]  }
0x2362   :  { %4952 = vpow2.f32 %v4235_v47  ;;  %v1479_v39 = vadd.f32 %v1477_v43, %v5654_v38 }
0x2364   :  { %v4221_v45 = vmul.f32 -1.442695, %v1479_v39 }
0x236c   :  { %v4953_v48 = vpop.eup %4952 }
0x236d   :  { %v1984_v49 = vadd.f32 1.0, %v4953_v48 }
0x236f   :  { %4954 = vrcp.f32 %v1984_v49 }
0x2379   :  { %v4955_v51 = vpop.eup %4954 }
0x237a   :  { %v2000_v50 = vsub.f32 1.0, %v4955_v51  ;;  %v2009_v6 = vmul.f32 %v4955_v51, %v2007_v58 }
0x23d2   :  { %v1991_v53 = vpop.permute.xlu0 %1990 }
0x23d3   :  { %v1993_v54 = vmul.f32 %v4955_v51, %v1991_v53 }
0x23d5   :  { %1995 = vrot.lane.b32.xlu1 %v1993_v54, %s5117_s6 }
0x2447   :  { %v1996_v55 = vpop.permute.xlu1 %1995 }
0x2448   :  { %v1998_v56 = vadd.f32 %v1996_v55, %v5662_v42 }
0x244a   :  { %4956 = vtanh.f32 %v1998_v56 }
0x2454   :  { %v4957_v57 = vpop.eup %4956 }
0x2455   :  { %2002 = vrot.lane.b32.xlu0 %v4957_v57, %s5118_s9 }
0x24c7   :  { %v2003_v63 = vpop.permute.xlu0 %2002 }
0x24c8   :  { %v2005_v7 = vmul.f32 %v2003_v63, %v2000_v50 }
0x24ca   :  { %v5924_v59 = vadd.f32 %v2009_v6, %v2005_v7  ;;  %v1506_v6 = vrot.slane %v5776_v9, 6 }
0x24cc   :  { %v2011_v8 = vpack.c.bf16 %v5924_v59, %v5924_v59  ;;  %v2089_v28 = vrot.slane %v5924_v59, 2 }
0x24ce   :  { %v2013_v10 = vrot.slane %v2011_v8, 2 }
0x24d0   :  { %2014 = vrot.lane.b32.xlu1 %v2013_v10, %s5118_s9 }
0x2542   :  { %v2015_v11 = vpop.permute.xlu1 %2014 }
0x2543   :  { %4662 = vmatmul.mubr.msk.bf16.vlgmr.msra.gmra.mrb[64].mxu1 %vm863_vm3, %v2015_v11 }
0x2544   :  { %4666 = vmatpush3.bf16.msra.mxu1 %v5794_v61  ;;  %4669 = vmatprep.mubr.msk.bf16.mxu1 %vm5115_vm0, %v5114_v2 }
0x2545   :  { %4667 = vmatprep.subr.bf16.mxu1 %v5114_v2 }
0x2548   :  { %4668 = vmatpush3.bf16.msra.mxu1 %v5801_v1 }
0x2549   :  { %4673 = vmatprep.subr.bf16.mxu1 %v5114_v2 }
0x2616   :  { %v2053_v13 = vpop.f32.mrb[64].mxu1 }
0x2617   :  { %v2069_v14 = vadd.f32 %v2053_v13, %v5817_v4  ;;  %v4663_v15 = vpop.f32.mrb[65].mxu1  ;;  %v2060_v20 = vrot.slane %v2053_v13, 6 }
0x2618   :  { %v2056_v17 = vpop.f32.mrb[66].mxu1 }
0x2619   :  { %v2071_v18 = vrot.slane %v2069_v14, 6  ;;  %v4664_v19 = vpop.f32.mrb[67].mxu1  ;;  %v2062_v61 = vadd.f32 %v2060_v20, %v5662_v42 }
0x261b   :  { %2072 = vrot.lane.b32.xlu0 %v2071_v18, %s5117_s6  ;;  %v4237_v21 = vmul.f32 -1.442695, %v2062_v61 }
0x261d   :  { %4958 = vpow2.f32 %v4237_v21 }
0x2627   :  { %v4959_v22 = vpop.eup %4958 }
0x2628   :  { %v2066_v23 = vadd.f32 1.0, %v4959_v22 }
0x262a   :  { %4960 = vrcp.f32 %v2066_v23 }
0x2634   :  { %v4961_v1 = vpop.eup %4960 }
0x2635   :  { %v2082_v44 = vsub.f32 1.0, %v4961_v1  ;;  %v2091_v35 = vmul.f32 %v4961_v1, %v2089_v28 }
0x268d   :  { %v2073_v12 = vpop.permute.xlu0 %2072 }
0x268e   :  { %v2075_v25 = vmul.f32 %v4961_v1, %v2073_v12  ;;  %v2181_v1 = vsel %vm712_vm11, %v5886_v5, %v5867_v31  ;;  %v5999_v31 = vld [vmem:[%s6487_s13] sm:$0xff]  }
0x268f   :  { %4722 = vmatpush3.bf16.msra.mxu0 %v5999_v31  ;;  %v4870_v5 = vld [vmem:[%s6485_s11] sm:$0xff]  }
0x2690   :  { %2077 = vrot.lane.b32.xlu1 %v2075_v25, %s5117_s6  ;;  %4723 = vmatprep.subr.bf16.mxu0 %v5114_v2 }
0x2702   :  { %v2078_v26 = vpop.permute.xlu1 %2077 }
0x2703   :  { %v2080_v27 = vadd.f32 %v2078_v26, %v5662_v42 }
0x2705   :  { %4962 = vtanh.f32 %v2080_v27  ;;  %v2182_v27 = vsel %vm246_vm1, %v2181_v1, %v5848_v0  ;;  %v6006_v0 = vld [vmem:[%s6487_s13 + $0x8] sm:$0xff]  }
0x2706   :  { %4964 = vpow2.f32 %v4221_v45  ;;  %4724 = vmatpush3.bf16.msra.mxu0 %v6006_v0 }
0x2707   :  { %4737 = vmatprep.subr.bf16.mxu0 %v5114_v2 }
0x270f   :  { %v4963_v33 = vpop.eup %4962 }
0x2710   :  { %2084 = vrot.lane.b32.xlu0 %v4963_v33, %s5118_s9  ;;  %v4965_v24 = vpop.eup %4964 }
0x2711   :  { %v1483_v47 = vadd.f32 1.0, %v4965_v24 }
0x2713   :  { %4966 = vrcp.f32 %v1483_v47 }
0x271d   :  { %v4967_v46 = vpop.eup %4966 }
0x271e   :  { %v1499_v63 = vsub.f32 1.0, %v4967_v46  ;;  %v1508_v8 = vmul.f32 %v4967_v46, %v1506_v6 }
0x2782   :  { %v2085_v29 = vpop.permute.xlu0 %2084 }
0x2783   :  { %v2087_v36 = vmul.f32 %v2085_v29, %v2082_v44  ;;  %v2183_v29 = vsel %vm719_vm14, %v2182_v27, %v5829_v16  ;;  %v4257_v16 = vld [vmem:[%s6489_s15] ss:$0 sm:$0xff] }
0x2785   :  { %v5943_v52 = vadd.f32 %v2091_v35, %v2087_v36  ;;  %v4872_v36 = vld [vmem:[%s6491_s17] sm:$0xff]  }
0x2787   :  { %v2093_v37 = vpack.c.bf16 %v5943_v52, %v5943_v52 }
0x2789   :  { %v2095_v40 = vrot.slane %v2093_v37, 1  ;;  %v4873_v37 = vld [vmem:[%s6491_s17 + $0x8] sm:$0xff]  }
0x278b   :  { %2096 = vrot.lane.b32.xlu1 %v2095_v40, %s5118_s9  ;;  %v4875_v40 = vld [vmem:[%s6490_s16 + $0x8] sm:$0xff]  }
0x278f   :  { %1489 = vrot.lane.b32.xlu1 %v1488_v41, %s5117_s6 }
0x27fd   :  { %v2097_v48 = vpop.permute.xlu1 %2096 }
0x27fe   :  { %4670 = vmatmul.mubr.msk.bf16.vlgmr.msra.gmra.mrb[68].mxu1 %vm863_vm3, %v2097_v48 }
0x27ff   :  { %4677 = vmatprep.mubr.msk.bf16.mxu1 %vm5115_vm0, %v5114_v2 }
0x2801   :  { %v1490_v49 = vpop.permute.xlu1 %1489 }
0x2802   :  { %v1492_v51 = vmul.f32 %v4967_v46, %v1490_v49 }
0x2804   :  { %1494 = vrot.lane.b32.xlu1 %v1492_v51, %s5117_s6 }
0x2876   :  { %v1495_v53 = vpop.permute.xlu1 %1494 }
0x2877   :  { %v1497_v3 = vadd.f32 %v1495_v53, %v5654_v38  ;;  %v4246_v53 = vld [vmem:[%s6488_s14] ss:$0 sm:$0xff] }
0x2879   :  { %4968 = vtanh.f32 %v1497_v3 }
0x2883   :  { %v4969_v54 = vpop.eup %4968 }
0x2884   :  { %1501 = vrot.lane.b32.xlu1 %v4969_v54, %s5118_s9 }
0x28d1   :  { %v2135_v55 = vpop.f32.mrb[68].mxu1 }
0x28d2   :  { %v2148_v56 = vadd.f32 %v2135_v55, %v5817_v4  ;;  %v4671_v57 = vpop.f32.mrb[69].mxu1  ;;  %v2141_v4 = vadd.f32 %v2135_v55, %v5662_v42 }
0x28d3   :  { %v2138_v50 = vpop.f32.mrb[70].mxu1 }
0x28d4   :  { %2150 = vrot.lane.b32.xlu0 %v2148_v56, %s5117_s6  ;;  %v4672_v58 = vpop.f32.mrb[71].mxu1  ;;  %v4239_v14 = vmul.f32 -1.442695, %v2141_v4 }
0x28d5   :  { %v6069_v58 = vld [vmem:[%s6493_s19] ss:$0 sm:$0xff] }
0x28d6   :  { %4970 = vpow2.f32 %v4239_v14 }
0x28e0   :  { %v4971_v15 = vpop.eup %4970 }
0x28e1   :  { %v2145_v17 = vadd.f32 1.0, %v4971_v15 }
0x28e3   :  { %4972 = vrcp.f32 %v2145_v17 }
0x28ed   :  { %v4973_v9 = vpop.eup %4972 }
0x28ee   :  { %v2160_v22 = vsub.f32 1.0, %v4973_v9 }
0x28f6   :  { %v1502_v7 = vpop.permute.xlu1 %1501 }
0x28f7   :  { %v1504_v10 = vmul.f32 %v1502_v7, %v1499_v63 }
0x28f9   :  { %v5962_v11 = vadd.f32 %v1508_v8, %v1504_v10 }
0x28fb   :  { %v2176_v38 = vsel %vm719_vm14, %v5788_v60, %v5962_v11  ;;  %v4869_v60 = vld [vmem:[%s6486_s12 + $0x8] sm:$0xff]  }
0x28fc   :  { %v2177_v13 = vpack.c.bf16 %v2176_v38, %v5727_v34  ;;  %v4868_v34 = vld [vmem:[%s6486_s12] sm:$0xff]  }
0x28fd   :  { %4674 = vmatpush3.bf16.msra.mxu1 %v4868_v34 }
0x28fe   :  { %2253 = vrot.lane.b32.xlu1 %v2177_v13, %s5118_s9  ;;  %4675 = vmatprep.subr.bf16.mxu1 %v5114_v2 }
0x2901   :  { %4676 = vmatpush3.bf16.msra.mxu1 %v4869_v60 }
0x2902   :  { %4681 = vmatprep.subr.bf16.mxu1 %v5114_v2 }
0x2946   :  { %v2151_v18 = vpop.permute.xlu0 %2150 }
0x2947   :  { %v2153_v19 = vmul.f32 %v4973_v9, %v2151_v18 }
0x2949   :  { %2155 = vrot.lane.b32.xlu0 %v2153_v19, %s5117_s6 }
0x29bb   :  { %v2156_v20 = vpop.permute.xlu0 %2155 }
0x29bc   :  { %v2158_v61 = vadd.f32 %v2156_v20, %v5662_v42  ;;  %v2167_v42 = vrot.slane %v5943_v52, 2 }
0x29be   :  { %4974 = vtanh.f32 %v2158_v61  ;;  %v2169_v12 = vmul.f32 %v4973_v9, %v2167_v42 }
0x29c8   :  { %v4975_v21 = vpop.eup %4974 }
0x29c9   :  { %2162 = vrot.lane.b32.xlu0 %v4975_v21, %s5118_s9 }
0x2a3b   :  { %v2163_v23 = vpop.permute.xlu0 %2162 }
0x2a3c   :  { %v2165_v25 = vmul.f32 %v2163_v23, %v2160_v22 }
0x2a3e   :  { %v2170_v26 = vadd.f32 %v2169_v12, %v2165_v25 }
0x2a40   :  { %v2178_v33 = vsel %vm712_vm11, %v2170_v26, %v5943_v52  ;;  %v2254_v52 = vpop.permute.xlu1 %2253  ;;  %vm3811_vm11 = vcmask 261126  }
0x2a41   :  { %v2179_v44 = vsel %vm246_vm1, %v2178_v33, %v5924_v59  ;;  %v4871_v59 = vld [vmem:[%s6485_s11 + $0x8] sm:$0xff]   ;;  %vm3802_vm1 = vcmask 259076  }
0x2a42   :  { %v2180_v28 = vsel %vm719_vm14, %v2179_v44, %v5905_v30 }
0x2a43   :  { %v2184_v35 = vpack.c.bf16 %v2183_v29, %v2180_v28 }
0x2a45   :  { %2194 = vrot.lane.b32.xlu0 %v2184_v35, %s5118_s9 }
0x2a49   :  { %2512 = vrot.lane.b32.xlu0 %v4257_v16, %s5117_s6 }
0x2ab7   :  { %v2195_v30 = vpop.permute.xlu0 %2194 }
0x2ab8   :  { %4678 = vmatmul.mubr.msk.bf16.vlgmr.msra.gmra.mrb[72].mxu1 %vm863_vm3, %v2195_v30 }
0x2ab9   :  { %4682 = vmatpush3.bf16.msra.mxu1 %v4870_v5  ;;  %4685 = vmatprep.mubr.msk.bf16.mxu1 %vm5115_vm0, %v5114_v2 }
0x2aba   :  { %4683 = vmatprep.subr.bf16.mxu1 %v5114_v2 }
0x2abb   :  { %v6076_v13 = vpop.permute.xlu0 %2512 }
0x2abd   :  { %4684 = vmatpush3.bf16.msra.mxu1 %v4871_v59 }
0x2abe   :  { %4689 = vmatprep.subr.bf16.mxu1 %v5114_v2 }
0x2ac0   :  { %4686 = vmatmul.mubr.msk.bf16.vlgmr.msra.gmra.mrb[76].mxu1 %vm863_vm3, %v2254_v52 }
0x2ac1   :  { %4690 = vmatpush3.bf16.msra.mxu1 %v4872_v36  ;;  %4693 = vmatprep.mubr.msk.bf16.mxu1 %vm5115_vm0, %v5114_v2 }
0x2ac2   :  { %4691 = vmatprep.subr.bf16.mxu1 %v5114_v2 }
0x2ac5   :  { %4692 = vmatpush3.bf16.msra.mxu1 %v4873_v37 }
0x2ac6   :  { %4697 = vmatprep.subr.bf16.mxu1 %v5114_v2 }
0x2ac8   :  { %4694 = vmatmul.mubr.msk.bf16.vlgmr.msra.gmra.mrb[80].mxu1 %vm863_vm3, %v2195_v30 }
0x2ac9   :  { %4698 = vmatpush3.bf16.msra.mxu1 %v4874_v32  ;;  %4701 = vmatprep.mubr.msk.bf16.mxu1 %vm5115_vm0, %v5114_v2 }
0x2aca   :  { %4699 = vmatprep.subr.bf16.mxu1 %v5114_v2 }
0x2acd   :  { %4700 = vmatpush3.bf16.msra.mxu1 %v4875_v40 }
0x2ace   :  { %4705 = vmatprep.subr.bf16.mxu1 %v5114_v2 }
0x2ad0   :  { %4702 = vmatmul.mubr.msk.bf16.vlgmr.msra.gmra.mrb[84].mxu1 %vm863_vm3, %v2254_v52 }
0x2ad1   :  { %4706 = vmatpush3.bf16.msra.mxu1 %v5999_v31  ;;  %4709 = vmatprep.mubr.msk.bf16.mxu1 %vm5115_vm0, %v5114_v2 }
0x2ad2   :  { %4707 = vmatprep.subr.bf16.mxu1 %v5114_v2 }
0x2ad5   :  { %4708 = vmatpush3.bf16.msra.mxu1 %v6006_v0 }
0x2ad6   :  { %4713 = vmatprep.subr.bf16.mxu1 %v5114_v2 }
0x2ad8   :  { %4710 = vmatmul.mubr.bf16.vlgmr.msra.gmra.mrb[88].mxu1 %v5116_v62 }
0x2ad9   :  { %4714 = vmatpush3.bf16.msra.mxu1 %v5999_v31  ;;  %4717 = vmatprep.mubr.msk.bf16.mxu1 %vm5115_vm0, %v5114_v2 }
0x2ada   :  { %4715 = vmatprep.subr.bf16.mxu1 %v5114_v2 }
0x2add   :  { %4716 = vmatpush3.bf16.msra.mxu1 %v6006_v0 }
0x2ade   :  { %4729 = vmatprep.subr.bf16.mxu1 %v5114_v2 }
0x2b8b   :  { %v2245_v41 = vpop.f32.mrb[72].mxu1 }
0x2b8c   :  { %v4679_v43 = vpop.f32.mrb[73].mxu1 }
0x2b8d   :  { %v2248_v39 = vpop.f32.mrb[74].mxu1 }
0x2b8e   :  { %v4680_v45 = vpop.f32.mrb[75].mxu1 }
0x2b93   :  { %v2304_v24 = vpop.f32.mrb[76].mxu1 }
0x2b94   :  { %v2305_v47 = vadd.f32 %v2304_v24, %v2245_v41  ;;  %v4687_v48 = vpop.f32.mrb[77].mxu1 }
0x2b95   :  { %v2307_v46 = vpop.f32.mrb[78].mxu1 }
0x2b96   :  { %v2308_v49 = vadd.f32 %v2307_v46, %v2248_v39  ;;  %v4688_v51 = vpop.f32.mrb[79].mxu1  ;;  %v6080_v18 = vadd.f32 %v4246_v53, %v2305_v47 }
0x2b98   :  { %v6064_v3 = vadd.f32 %v4246_v53, %v2308_v49 }
0x2b9b   :  { %v2374_v54 = vpop.f32.mrb[80].mxu1 }
0x2b9c   :  { %v4695_v55 = vpop.f32.mrb[81].mxu1 }
0x2b9d   :  { %v2377_v56 = vpop.f32.mrb[82].mxu1 }
0x2b9e   :  { %v4696_v57 = vpop.f32.mrb[83].mxu1 }
0x2ba3   :  { %v2427_v50 = vpop.f32.mrb[84].mxu1 }
0x2ba4   :  { %v2428_v63 = vadd.f32 %v2427_v50, %v2374_v54  ;;  %v4703_v6 = vpop.f32.mrb[85].mxu1 }
0x2ba5   :  { %v2430_v7 = vpop.f32.mrb[86].mxu1 }
0x2ba6   :  { %v6072_v8 = vadd.f32 %v6069_v58, %v2428_v63  ;;  %v6074_v10 = vadd.f32 %v2430_v7, %v2377_v56  ;;  %v4704_v38 = vpop.f32.mrb[87].mxu1 }
0x2bab   :  { %v2494_v4 = vpop.f32.mrb[88].mxu1 }
0x2bac   :  { %v2515_v14 = vadd.f32 %v6076_v13, %v2494_v4  ;;  %v4711_v15 = vpop.f32.mrb[89].mxu1  ;;  %v2500_v19 = vadd.f32 %v2494_v4, %v6080_v18 }
0x2bad   :  { %v2497_v17 = vpop.f32.mrb[90].mxu1 }
0x2bae   :  { %2517 = vrot.lane.b32.xlu1 %v2515_v14, %s5117_s6  ;;  %v4712_v9 = vpop.f32.mrb[91].mxu1  ;;  %v4256_v20 = vmul.f32 -1.442695, %v2500_v19 }
0x2bb0   :  { %4976 = vpow2.f32 %v4256_v20 }
0x2bba   :  { %v4977_v61 = vpop.eup %4976 }
0x2bbb   :  { %v2504_v34 = vadd.f32 1.0, %v4977_v61 }
0x2bbd   :  { %4978 = vrcp.f32 %v2504_v34 }
0x2bc7   :  { %v4979_v60 = vpop.eup %4978 }
0x2bc8   :  { %v2527_v12 = vsub.f32 1.0, %v4979_v60  ;;  %v2533_v26 = vmul.f32 0.0, %v4979_v60 }
0x2c20   :  { %v2518_v21 = vpop.permute.xlu1 %2517 }
0x2c21   :  { %v2520_v22 = vmul.f32 %v4979_v60, %v2518_v21 }
0x2c23   :  { %2522 = vrot.lane.b32.xlu0 %v2520_v22, %s5117_s6 }
0x2c95   :  { %v2523_v42 = vpop.permute.xlu0 %2522 }
0x2c96   :  { %v2525_v23 = vadd.f32 %v2523_v42, %v6080_v18 }
0x2c98   :  { %4980 = vtanh.f32 %v2525_v23 }
0x2ca2   :  { %v4981_v1 = vpop.eup %4980 }
0x2ca3   :  { %2529 = vrot.lane.b32.xlu1 %v4981_v1, %s5118_s9 }
0x2d15   :  { %v2530_v25 = vpop.permute.xlu1 %2529 }
0x2d16   :  { %v2532_v27 = vmul.f32 %v2530_v25, %v2527_v12 }
0x2d18   :  { %v6086_v33 = vadd.f32 %v2533_v26, %v2532_v27 }
0x2d1a   :  { %v2535_v44 = vpack.c.bf16 %v6086_v33, %v6086_v33  ;;  %v2612_v46 = vrot.slane %v6086_v33, 6 }
0x2d1c   :  { %2537 = vrot.lane.b32.xlu0 %v2535_v44, %s5118_s9 }
0x2d8e   :  { %v2538_v28 = vpop.permute.xlu0 %2537 }
0x2d8f   :  { %4718 = vmatmul.mubr.msk.bf16.vlgmr.msra.gmra.mrb[92].mxu1 %vm863_vm3, %v2538_v28 }
0x2d90   :  { %4730 = vmatpush3.bf16.msra.mxu1 %v5999_v31  ;;  %4733 = vmatprep.mubr.msk.bf16.mxu1 %vm5115_vm0, %v5114_v2 }
0x2d91   :  { %4731 = vmatprep.subr.bf16.mxu1 %v5114_v2 }
0x2d94   :  { %4732 = vmatpush3.bf16.msra.mxu1 %v6006_v0 }
0x2d95   :  { %4745 = vmatprep.subr.bf16.mxu1 %v5114_v2 }
0x2e62   :  { %v2576_v29 = vpop.f32.mrb[92].mxu1 }
0x2e63   :  { %v2592_v35 = vadd.f32 %v2576_v29, %v6076_v13  ;;  %v4719_v16 = vpop.f32.mrb[93].mxu1  ;;  %v2583_v36 = vrot.slane %v2576_v29, 6 }
0x2e64   :  { %v2579_v5 = vpop.f32.mrb[94].mxu1 }
0x2e65   :  { %v2594_v30 = vrot.slane %v2592_v35, 6  ;;  %v4720_v59 = vpop.f32.mrb[95].mxu1  ;;  %v2585_v52 = vadd.f32 %v2583_v36, %v6080_v18 }
0x2e67   :  { %2595 = vrot.lane.b32.xlu1 %v2594_v30, %s5117_s6  ;;  %v4259_v37 = vmul.f32 -1.442695, %v2585_v52 }
0x2e69   :  { %4982 = vpow2.f32 %v4259_v37 }
0x2e73   :  { %v4983_v32 = vpop.eup %4982 }
0x2e74   :  { %v2589_v40 = vadd.f32 1.0, %v4983_v32 }
0x2e76   :  { %4984 = vrcp.f32 %v2589_v40 }
0x2e80   :  { %v4985_v41 = vpop.eup %4984 }
0x2e81   :  { %v2605_v48 = vsub.f32 1.0, %v4985_v41  ;;  %v2614_v51 = vmul.f32 %v4985_v41, %v2612_v46 }
0x2ed9   :  { %v2596_v43 = vpop.permute.xlu1 %2595 }
0x2eda   :  { %v2598_v39 = vmul.f32 %v4985_v41, %v2596_v43 }
0x2edc   :  { %2600 = vrot.lane.b32.xlu0 %v2598_v39, %s5117_s6 }
0x2f4e   :  { %v2601_v45 = vpop.permute.xlu0 %2600 }
0x2f4f   :  { %v2603_v24 = vadd.f32 %v2601_v45, %v6080_v18 }
0x2f51   :  { %4986 = vtanh.f32 %v2603_v24 }
0x2f5b   :  { %v4987_v47 = vpop.eup %4986 }
0x2f5c   :  { %2607 = vrot.lane.b32.xlu1 %v4987_v47, %s5118_s9 }
0x2fce   :  { %v2608_v49 = vpop.permute.xlu1 %2607 }
0x2fcf   :  { %v2610_v53 = vmul.f32 %v2608_v49, %v2605_v48 }
0x2fd1   :  { %v6105_v54 = vadd.f32 %v2614_v51, %v2610_v53 }
0x2fd3   :  { %v2616_v55 = vpack.c.bf16 %v6105_v54, %v6105_v54  ;;  %v2694_v23 = vrot.slane %v6105_v54, 6 }
0x2fd5   :  { %v2618_v56 = vrot.slane %v2616_v55, 1 }
0x2fd7   :  { %2619 = vrot.lane.b32.xlu0 %v2618_v56, %s5118_s9 }
0x3049   :  { %v2620_v57 = vpop.permute.xlu0 %2619 }
0x304a   :  { %4726 = vmatmul.mubr.msk.bf16.vlgmr.msra.gmra.mrb[92].mxu0 %vm863_vm3, %v2620_v57 }
0x304b   :  { %4738 = vmatpush3.bf16.msra.mxu0 %v5999_v31  ;;  %4741 = vmatprep.mubr.msk.bf16.mxu0 %vm5115_vm0, %v5114_v2 }
0x304c   :  { %4739 = vmatprep.subr.bf16.mxu0 %v5114_v2 }
0x304f   :  { %4740 = vmatpush3.bf16.msra.mxu0 %v6006_v0 }
0x3050   :  { %4753 = vmatprep.subr.bf16.mxu0 %v5114_v2 }
0x311d   :  { %v2658_v50 = vpop.f32.mrb[92].mxu0 }
0x311e   :  { %v2674_v63 = vadd.f32 %v2658_v50, %v6076_v13  ;;  %v4727_v6 = vpop.f32.mrb[93].mxu0  ;;  %v2665_v14 = vrot.slane %v2658_v50, 4 }
0x311f   :  { %v2661_v7 = vpop.f32.mrb[94].mxu0 }
0x3120   :  { %v2676_v38 = vrot.slane %v2674_v63, 4  ;;  %v4728_v4 = vpop.f32.mrb[95].mxu0  ;;  %v2667_v15 = vadd.f32 %v2665_v14, %v6080_v18 }
0x3122   :  { %2677 = vrot.lane.b32.xlu1 %v2676_v38, %s5117_s6  ;;  %v4261_v17 = vmul.f32 -1.442695, %v2667_v15 }
0x3124   :  { %4988 = vpow2.f32 %v4261_v17 }
0x312e   :  { %v4989_v9 = vpop.eup %4988 }
0x312f   :  { %v2671_v19 = vadd.f32 1.0, %v4989_v9 }
0x3131   :  { %4990 = vrcp.f32 %v2671_v19 }
0x313b   :  { %v4991_v20 = vpop.eup %4990 }
0x313c   :  { %v2687_v42 = vsub.f32 1.0, %v4991_v20  ;;  %v2696_v12 = vmul.f32 %v4991_v20, %v2694_v23 }
0x3194   :  { %v2678_v61 = vpop.permute.xlu1 %2677 }
0x3195   :  { %v2680_v34 = vmul.f32 %v4991_v20, %v2678_v61 }
0x3197   :  { %2682 = vrot.lane.b32.xlu0 %v2680_v34, %s5117_s6 }
0x3209   :  { %v2683_v60 = vpop.permute.xlu0 %2682 }
0x320a   :  { %v2685_v21 = vadd.f32 %v2683_v60, %v6080_v18 }
0x320c   :  { %4992 = vtanh.f32 %v2685_v21 }
0x3216   :  { %v4993_v22 = vpop.eup %4992 }
0x3217   :  { %2689 = vrot.lane.b32.xlu1 %v4993_v22, %s5118_s9 }
0x3289   :  { %v2690_v1 = vpop.permute.xlu1 %2689 }
0x328a   :  { %v2692_v25 = vmul.f32 %v2690_v1, %v2687_v42 }
0x328c   :  { %v6124_v26 = vadd.f32 %v2696_v12, %v2692_v25 }
0x328e   :  { %v2698_v27 = vpack.c.bf16 %v6124_v26, %v6124_v26  ;;  %v2776_v46 = vrot.slane %v6124_v26, 6 }
0x3290   :  { %v2700_v44 = vrot.slane %v2698_v27, 2 }
0x3292   :  { %2701 = vrot.lane.b32.xlu0 %v2700_v44, %s5118_s9 }
0x3304   :  { %v2702_v28 = vpop.permute.xlu0 %2701 }
0x3305   :  { %4734 = vmatmul.mubr.msk.bf16.vlgmr.msra.gmra.mrb[96].mxu1 %vm863_vm3, %v2702_v28 }
0x3306   :  { %4746 = vmatpush3.bf16.msra.mxu1 %v5999_v31  ;;  %4749 = vmatprep.mubr.msk.bf16.mxu1 %vm5115_vm0, %v5114_v2 }
0x3307   :  { %4747 = vmatprep.subr.bf16.mxu1 %v5114_v2 }
0x330a   :  { %4748 = vmatpush3.bf16.msra.mxu1 %v6006_v0 }
0x330b   :  { %4761 = vmatprep.subr.bf16.mxu1 %v5114_v2 }
0x33d8   :  { %v2740_v29 = vpop.f32.mrb[96].mxu1 }
0x33d9   :  { %v2756_v35 = vadd.f32 %v2740_v29, %v6076_v13  ;;  %v4735_v16 = vpop.f32.mrb[97].mxu1  ;;  %v2747_v36 = vrot.slane %v2740_v29, 2 }
0x33da   :  { %v2743_v5 = vpop.f32.mrb[98].mxu1 }
0x33db   :  { %v2758_v30 = vrot.slane %v2756_v35, 2  ;;  %v4736_v59 = vpop.f32.mrb[99].mxu1  ;;  %v2749_v52 = vadd.f32 %v2747_v36, %v6080_v18 }
0x33dd   :  { %2759 = vrot.lane.b32.xlu1 %v2758_v30, %s5117_s6  ;;  %v4263_v37 = vmul.f32 -1.442695, %v2749_v52 }
0x33df   :  { %4994 = vpow2.f32 %v4263_v37 }
0x33e9   :  { %v4995_v32 = vpop.eup %4994 }
0x33ea   :  { %v2753_v40 = vadd.f32 1.0, %v4995_v32 }
0x33ec   :  { %4996 = vrcp.f32 %v2753_v40 }
0x33f6   :  { %v4997_v41 = vpop.eup %4996 }
0x33f7   :  { %v2769_v48 = vsub.f32 1.0, %v4997_v41  ;;  %v2778_v51 = vmul.f32 %v4997_v41, %v2776_v46 }
0x344f   :  { %v2760_v43 = vpop.permute.xlu1 %2759 }
0x3450   :  { %v2762_v39 = vmul.f32 %v4997_v41, %v2760_v43 }
0x3452   :  { %2764 = vrot.lane.b32.xlu0 %v2762_v39, %s5117_s6 }
0x34c4   :  { %v2765_v45 = vpop.permute.xlu0 %2764 }
0x34c5   :  { %v2767_v24 = vadd.f32 %v2765_v45, %v6080_v18 }
0x34c7   :  { %4998 = vtanh.f32 %v2767_v24 }
0x34d1   :  { %v4999_v47 = vpop.eup %4998 }
0x34d2   :  { %2771 = vrot.lane.b32.xlu1 %v4999_v47, %s5118_s9 }
0x3544   :  { %v2772_v49 = vpop.permute.xlu1 %2771 }
0x3545   :  { %v2774_v53 = vmul.f32 %v2772_v49, %v2769_v48  ;;  %v4275_v49 = vld [vmem:[%s6494_s20] ss:$0 sm:$0xff] }
0x3547   :  { %v6143_v55 = vadd.f32 %v2778_v51, %v2774_v53 }
0x3549   :  { %v2780_v56 = vpack.c.bf16 %v6143_v55, %v6143_v55  ;;  %v2854_v22 = vrot.slane %v6143_v55, 6 }
0x354b   :  { %v2782_v57 = vrot.slane %v2780_v56, 3  ;;  %v6193_v56 = vld [vmem:[%s6492_s18] sm:$0xff]  }
0x354d   :  { %2783 = vrot.lane.b32.xlu0 %v2782_v57, %s5118_s9 }
0x35bf   :  { %v2784_v50 = vpop.permute.xlu0 %2783 }
0x35c0   :  { %4742 = vmatmul.mubr.msk.bf16.vlgmr.msra.gmra.mrb[96].mxu0 %vm863_vm3, %v2784_v50  ;;  %v6200_v50 = vld [vmem:[%s6492_s18 + $0x8] sm:$0xff]  }
0x35c1   :  { %4754 = vmatpush3.bf16.msra.mxu0 %v5999_v31  ;;  %4757 = vmatprep.mubr.msk.bf16.mxu0 %vm5115_vm0, %v5114_v2 }
0x35c2   :  { %4755 = vmatprep.subr.bf16.mxu0 %v5114_v2 }
0x35c5   :  { %4756 = vmatpush3.bf16.msra.mxu0 %v6006_v0 }
0x35c6   :  { %4769 = vmatprep.subr.bf16.mxu0 %v5114_v2 }
0x3693   :  { %v2822_v18 = vpop.f32.mrb[96].mxu0 }
0x3694   :  { %v2835_v63 = vadd.f32 %v2822_v18, %v6076_v13  ;;  %v4743_v6 = vpop.f32.mrb[97].mxu0  ;;  %v2828_v4 = vadd.f32 %v2822_v18, %v6064_v3 }
0x3695   :  { %v2825_v7 = vpop.f32.mrb[98].mxu0 }
0x3696   :  { %2837 = vrot.lane.b32.xlu1 %v2835_v63, %s5117_s6  ;;  %v4744_v38 = vpop.f32.mrb[99].mxu0  ;;  %v4265_v14 = vmul.f32 -1.442695, %v2828_v4 }
0x3698   :  { %5000 = vpow2.f32 %v4265_v14 }
0x36a2   :  { %v5001_v15 = vpop.eup %5000 }
0x36a3   :  { %v2832_v17 = vadd.f32 1.0, %v5001_v15 }
0x36a5   :  { %5002 = vrcp.f32 %v2832_v17 }
0x36af   :  { %v5003_v9 = vpop.eup %5002 }
0x36b0   :  { %v2847_v21 = vsub.f32 1.0, %v5003_v9  ;;  %v2856_v23 = vmul.f32 %v5003_v9, %v2854_v22  ;;  %v6223_v22 = vadd.f32 %v6069_v58, %v6074_v10 }
0x3708   :  { %v2838_v19 = vpop.permute.xlu1 %2837 }
0x3709   :  { %v2840_v20 = vmul.f32 %v5003_v9, %v2838_v19 }
0x370b   :  { %2842 = vrot.lane.b32.xlu0 %v2840_v20, %s5117_s6 }
0x377d   :  { %v2843_v61 = vpop.permute.xlu0 %2842 }
0x377e   :  { %v2845_v34 = vadd.f32 %v2843_v61, %v6064_v3 }
0x3780   :  { %5004 = vtanh.f32 %v2845_v34 }
0x378a   :  { %v5005_v60 = vpop.eup %5004 }
0x378b   :  { %2849 = vrot.lane.b32.xlu1 %v5005_v60, %s5118_s9 }
0x37fd   :  { %v2850_v42 = vpop.permute.xlu1 %2849 }
0x37fe   :  { %v2852_v1 = vmul.f32 %v2850_v42, %v2847_v21 }
0x3800   :  { %v6162_v12 = vadd.f32 %v2856_v23, %v2852_v1 }
0x3802   :  { %v2858_v25 = vpack.c.bf16 %v6162_v12, %v6162_v12  ;;  %v2935_v45 = vrot.slane %v6162_v12, 6 }
0x3804   :  { %2860 = vrot.lane.b32.xlu0 %v2858_v25, %s5118_s9 }
0x3876   :  { %v2861_v27 = vpop.permute.xlu0 %2860 }
0x3877   :  { %4750 = vmatmul.mubr.msk.bf16.vlgmr.msra.gmra.mrb[100].mxu1 %vm863_vm3, %v2861_v27 }
0x3878   :  { %4762 = vmatpush3.bf16.msra.mxu1 %v5999_v31  ;;  %4765 = vmatprep.mubr.msk.bf16.mxu1 %vm5115_vm0, %v5114_v2 }
0x3879   :  { %4763 = vmatprep.subr.bf16.mxu1 %v5114_v2 }
0x387c   :  { %4764 = vmatpush3.bf16.msra.mxu1 %v6006_v0 }
0x387d   :  { %4777 = vmatprep.subr.bf16.mxu1 %v5114_v2 }
0x394a   :  { %v2899_v44 = vpop.f32.mrb[100].mxu1 }
0x394b   :  { %v2915_v28 = vadd.f32 %v2899_v44, %v6076_v13  ;;  %v4751_v29 = vpop.f32.mrb[101].mxu1  ;;  %v2906_v30 = vrot.slane %v2899_v44, 6 }
0x394c   :  { %v2902_v35 = vpop.f32.mrb[102].mxu1 }
0x394d   :  { %v2917_v16 = vrot.slane %v2915_v28, 6  ;;  %v4752_v5 = vpop.f32.mrb[103].mxu1  ;;  %v2908_v31 = vadd.f32 %v2906_v30, %v6064_v3 }
0x394f   :  { %2918 = vrot.lane.b32.xlu1 %v2917_v16, %s5117_s6  ;;  %v4267_v59 = vmul.f32 -1.442695, %v2908_v31 }
0x3951   :  { %5006 = vpow2.f32 %v4267_v59 }
0x395b   :  { %v5007_v36 = vpop.eup %5006 }
0x395c   :  { %v2912_v52 = vadd.f32 1.0, %v5007_v36 }
0x395e   :  { %5008 = vrcp.f32 %v2912_v52 }
0x3968   :  { %v5009_v0 = vpop.eup %5008 }
0x3969   :  { %v2928_v39 = vsub.f32 1.0, %v5009_v0  ;;  %v2937_v47 = vmul.f32 %v5009_v0, %v2935_v45 }
0x39c1   :  { %v2919_v37 = vpop.permute.xlu1 %2918 }
0x39c2   :  { %v2921_v32 = vmul.f32 %v5009_v0, %v2919_v37 }
0x39c4   :  { %2923 = vrot.lane.b32.xlu0 %v2921_v32, %s5117_s6 }
0x3a36   :  { %v2924_v40 = vpop.permute.xlu0 %2923 }
0x3a37   :  { %v2926_v41 = vadd.f32 %v2924_v40, %v6064_v3 }
0x3a39   :  { %5010 = vtanh.f32 %v2926_v41 }
0x3a43   :  { %v5011_v43 = vpop.eup %5010 }
0x3a44   :  { %2930 = vrot.lane.b32.xlu1 %v5011_v43, %s5118_s9 }
0x3a48   :  { %3175 = vrot.lane.b32.xlu1 %v4275_v49, %s5117_s6 }
0x3ab6   :  { %v2931_v24 = vpop.permute.xlu1 %2930 }
0x3ab7   :  { %v2933_v48 = vmul.f32 %v2931_v24, %v2928_v39 }
0x3ab9   :  { %v6181_v46 = vadd.f32 %v2937_v47, %v2933_v48 }
0x3abb   :  { %v2939_v51 = vpack.c.bf16 %v6181_v46, %v6181_v46  ;;  %v3017_v37 = vrot.slane %v6181_v46, 6 }
0x3abd   :  { %v2941_v53 = vrot.slane %v2939_v51, 1 }
0x3abf   :  { %2942 = vrot.lane.b32.xlu0 %v2941_v53, %s5118_s9 }
0x3b31   :  { %v2943_v57 = vpop.permute.xlu0 %2942 }
0x3b32   :  { %4758 = vmatmul.mubr.msk.bf16.vlgmr.msra.gmra.mrb[100].mxu0 %vm863_vm3, %v2943_v57 }
0x3b33   :  { %4770 = vmatpush3.bf16.msra.mxu0 %v6193_v56  ;;  %4773 = vmatprep.mubr.msk.bf16.mxu0 %vm5115_vm0, %v5114_v2 }
0x3b34   :  { %4771 = vmatprep.subr.bf16.mxu0 %v5114_v2 }
0x3b37   :  { %4772 = vmatpush3.bf16.msra.mxu0 %v6200_v50 }
0x3b38   :  { %4785 = vmatprep.subr.bf16.mxu0 %v5114_v2 }
0x3b3a   :  { %4774 = vmatmul.mubr.bf16.vlgmr.msra.gmra.mrb[104].mxu0 %v5116_v62  ;;  %v6216_v62 = vpop.permute.xlu1 %3175 }
0x3b3b   :  { %4786 = vmatpush3.bf16.msra.mxu0 %v6193_v56  ;;  %4789 = vmatprep.mubr.msk.bf16.mxu0 %vm5115_vm0, %v5114_v2 }
0x3b3c   :  { %4787 = vmatprep.subr.bf16.mxu0 %v5114_v2 }
0x3b3f   :  { %4788 = vmatpush3.bf16.msra.mxu0 %v6200_v50 }
0x3b40   :  { %4801 = vmatprep.subr.bf16.mxu0 %v5114_v2 }
0x3c05   :  { %v2981_v18 = vpop.f32.mrb[100].mxu0 }
0x3c06   :  { %v2997_v63 = vadd.f32 %v2981_v18, %v6076_v13  ;;  %v4759_v6 = vpop.f32.mrb[101].mxu0  ;;  %v2988_v61 = vrot.slane %v2981_v18, 4 }
0x3c07   :  { %v2984_v7 = vpop.f32.mrb[102].mxu0 }
0x3c08   :  { %v2999_v38 = vrot.slane %v2997_v63, 4  ;;  %v4760_v4 = vpop.f32.mrb[103].mxu0  ;;  %v2990_v34 = vadd.f32 %v2988_v61, %v6064_v3 }
0x3c0a   :  { %3000 = vrot.lane.b32.xlu0 %v2999_v38, %s5117_s6  ;;  %v4269_v60 = vmul.f32 -1.442695, %v2990_v34 }
0x3c0c   :  { %5012 = vpow2.f32 %v4269_v60 }
0x3c0d   :  { %v3154_v14 = vpop.f32.mrb[104].mxu0 }
0x3c0e   :  { %v3178_v15 = vadd.f32 %v6216_v62, %v3154_v14  ;;  %v4775_v17 = vpop.f32.mrb[105].mxu0  ;;  %v3161_v21 = vrot.slane %v3154_v14, 2 }
0x3c0f   :  { %v3157_v9 = vpop.f32.mrb[106].mxu0 }
0x3c10   :  { %v3180_v19 = vrot.slane %v3178_v15, 2  ;;  %v4776_v20 = vpop.f32.mrb[107].mxu0  ;;  %v3163_v42 = vadd.f32 %v3161_v21, %v6223_v22 }
0x3c12   :  { %3181 = vrot.lane.b32.xlu1 %v3180_v19, %s5117_s6  ;;  %v4274_v23 = vmul.f32 -1.442695, %v3163_v42 }
0x3c14   :  { %5014 = vpow2.f32 %v4274_v23 }
0x3c16   :  { %v5013_v1 = vpop.eup %5012 }
0x3c17   :  { %v2994_v25 = vadd.f32 1.0, %v5013_v1 }
0x3c19   :  { %5016 = vrcp.f32 %v2994_v25 }
0x3c1e   :  { %v5015_v27 = vpop.eup %5014 }
0x3c1f   :  { %v3167_v44 = vadd.f32 1.0, %v5015_v27 }
0x3c21   :  { %5018 = vrcp.f32 %v3167_v44 }
0x3c23   :  { %v5017_v28 = vpop.eup %5016 }
0x3c24   :  { %v3010_v0 = vsub.f32 1.0, %v5017_v28  ;;  %v3019_v40 = vmul.f32 %v5017_v28, %v3017_v37 }
0x3c2b   :  { %v5019_v16 = vpop.eup %5018 }
0x3c2c   :  { %v3191_v45 = vsub.f32 1.0, %v5019_v16  ;;  %v3197_v48 = vmul.f32 0.0, %v5019_v16 }
0x3c7c   :  { %v3001_v29 = vpop.permute.xlu0 %3000 }
0x3c7d   :  { %v3003_v35 = vmul.f32 %v5017_v28, %v3001_v29 }
0x3c7f   :  { %3005 = vrot.lane.b32.xlu0 %v3003_v35, %s5117_s6 }
0x3c84   :  { %v3182_v5 = vpop.permute.xlu1 %3181 }
0x3c85   :  { %v3184_v58 = vmul.f32 %v5019_v16, %v3182_v5 }
0x3c87   :  { %3186 = vrot.lane.b32.xlu1 %v3184_v58, %s5117_s6 }
0x3cf1   :  { %v3006_v10 = vpop.permute.xlu0 %3005 }
0x3cf2   :  { %v3008_v30 = vadd.f32 %v3006_v10, %v6064_v3 }
0x3cf4   :  { %5020 = vtanh.f32 %v3008_v30 }
0x3cf9   :  { %v3187_v31 = vpop.permute.xlu1 %3186 }
0x3cfa   :  { %v3189_v59 = vadd.f32 %v3187_v31, %v6223_v22 }
0x3cfc   :  { %5022 = vtanh.f32 %v3189_v59 }
0x3cfe   :  { %v5021_v36 = vpop.eup %5020 }
0x3cff   :  { %3012 = vrot.lane.b32.xlu0 %v5021_v36, %s5118_s9 }
0x3d06   :  { %v5023_v52 = vpop.eup %5022 }
0x3d07   :  { %3193 = vrot.lane.b32.xlu1 %v5023_v52, %s5118_s9 }
0x3d71   :  { %v3013_v32 = vpop.permute.xlu0 %3012 }
0x3d72   :  { %v3015_v41 = vmul.f32 %v3013_v32, %v3010_v0 }
0x3d74   :  { %v6233_v43 = vadd.f32 %v3019_v40, %v3015_v41 }
0x3d76   :  { %v3021_v39 = vpack.c.bf16 %v6233_v43, %v6233_v43 }
0x3d78   :  { %v3023_v24 = vrot.slane %v3021_v39, 2 }
0x3d79   :  { %v3194_v47 = vpop.permute.xlu1 %3193 }
0x3d7a   :  { %v3196_v49 = vmul.f32 %v3194_v47, %v3191_v45  ;;  %3024 = vrot.lane.b32.xlu0 %v3023_v24, %s5118_s9 }
0x3d7c   :  { %v6238_v51 = vadd.f32 %v3197_v48, %v3196_v49 }
0x3d7e   :  { %v3199_v53 = vpack.c.bf16 %v6238_v51, %v6238_v51  ;;  %v3277_v35 = vrot.slane %v6238_v51, 2 }
0x3d80   :  { %v3201_v57 = vrot.slane %v3199_v53, 3 }
0x3d82   :  { %3202 = vrot.lane.b32.xlu1 %v3201_v57, %s5118_s9 }
0x3dec   :  { %v3025_v18 = vpop.permute.xlu0 %3024 }
0x3ded   :  { %4766 = vmatmul.mubr.msk.bf16.vlgmr.msra.gmra.mrb[104].mxu1 %vm863_vm3, %v3025_v18 }
0x3dee   :  { %4778 = vmatpush3.bf16.msra.mxu1 %v6193_v56  ;;  %4781 = vmatprep.mubr.msk.bf16.mxu1 %vm5115_vm0, %v5114_v2 }
0x3def   :  { %4779 = vmatprep.subr.bf16.mxu1 %v5114_v2 }
0x3df2   :  { %4780 = vmatpush3.bf16.msra.mxu1 %v6200_v50 }
0x3df3   :  { %4793 = vmatprep.subr.bf16.mxu1 %v5114_v2 }
0x3df4   :  { %v3203_v63 = vpop.permute.xlu1 %3202 }
0x3df5   :  { %4782 = vmatmul.mubr.msk.bf16.vlgmr.msra.gmra.mrb[108].mxu1 %vm863_vm3, %v3203_v63 }
0x3df6   :  { %4794 = vmatpush3.bf16.msra.mxu1 %v6193_v56  ;;  %4797 = vmatprep.mubr.msk.bf16.mxu1 %vm5115_vm0, %v5114_v2 }
0x3df7   :  { %4795 = vmatprep.subr.bf16.mxu1 %v5114_v2 }
0x3dfa   :  { %4796 = vmatpush3.bf16.msra.mxu1 %v6200_v50 }
0x3dfb   :  { %4809 = vmatprep.subr.bf16.mxu1 %v5114_v2 }
0x3ec0   :  { %v6257_v6 = vpop.f32.mrb[104].mxu1 }
0x3ec1   :  { %v4767_v7 = vpop.f32.mrb[105].mxu1 }
0x3ec2   :  { %v3066_v38 = vpop.f32.mrb[106].mxu1 }
0x3ec3   :  { %v4768_v4 = vpop.f32.mrb[107].mxu1 }
0x3ec8   :  { %v3241_v14 = vpop.f32.mrb[108].mxu1 }
0x3ec9   :  { %v3257_v15 = vadd.f32 %v3241_v14, %v6216_v62  ;;  %v4783_v17 = vpop.f32.mrb[109].mxu1  ;;  %v3248_v61 = vrot.slane %v3241_v14, 4 }
0x3eca   :  { %v3244_v9 = vpop.f32.mrb[110].mxu1 }
0x3ecb   :  { %v3259_v19 = vrot.slane %v3257_v15, 4  ;;  %v4784_v20 = vpop.f32.mrb[111].mxu1  ;;  %v3250_v34 = vadd.f32 %v3248_v61, %v6223_v22 }
0x3ecd   :  { %3260 = vrot.lane.b32.xlu0 %v3259_v19, %s5117_s6  ;;  %v4277_v60 = vmul.f32 -1.442695, %v3250_v34 }
0x3ecf   :  { %5024 = vpow2.f32 %v4277_v60 }
0x3ed9   :  { %v5025_v21 = vpop.eup %5024 }
0x3eda   :  { %v3254_v42 = vadd.f32 1.0, %v5025_v21 }
0x3edc   :  { %5026 = vrcp.f32 %v3254_v42 }
0x3ee6   :  { %v5027_v23 = vpop.eup %5026 }
0x3ee7   :  { %v3270_v29 = vsub.f32 1.0, %v5027_v23  ;;  %v3279_v5 = vmul.f32 %v5027_v23, %v3277_v35 }
0x3f3f   :  { %v3261_v1 = vpop.permute.xlu0 %3260 }
0x3f40   :  { %v3263_v25 = vmul.f32 %v5027_v23, %v3261_v1 }
0x3f42   :  { %3265 = vrot.lane.b32.xlu1 %v3263_v25, %s5117_s6 }
0x3fb4   :  { %v3266_v27 = vpop.permute.xlu1 %3265 }
0x3fb5   :  { %v3268_v44 = vadd.f32 %v3266_v27, %v6223_v22 }
0x3fb7   :  { %5028 = vtanh.f32 %v3268_v44 }
0x3fc1   :  { %v5029_v28 = vpop.eup %5028 }
0x3fc2   :  { %3272 = vrot.lane.b32.xlu0 %v5029_v28, %s5118_s9 }
0x4034   :  { %v3273_v16 = vpop.permute.xlu0 %3272 }
0x4035   :  { %v3275_v58 = vmul.f32 %v3273_v16, %v3270_v29 }
0x4037   :  { %v6266_v10 = vadd.f32 %v3279_v5, %v3275_v58 }
0x4039   :  { %v3281_v30 = vpack.c.bf16 %v6266_v10, %v6266_v10  ;;  %v3359_v38 = vrot.slane %v6266_v10, 2 }
0x403b   :  { %v3283_v31 = vrot.slane %v3281_v30, 2 }
0x403d   :  { %3284 = vrot.lane.b32.xlu1 %v3283_v31, %s5118_s9 }
0x40af   :  { %v3285_v59 = vpop.permute.xlu1 %3284 }
0x40b0   :  { %4790 = vmatmul.mubr.msk.bf16.vlgmr.msra.gmra.mrb[108].mxu0 %vm863_vm3, %v3285_v59 }
0x40b1   :  { %4802 = vmatpush3.bf16.msra.mxu0 %v6193_v56  ;;  %4805 = vmatprep.mubr.msk.bf16.mxu0 %vm5115_vm0, %v5114_v2 }
0x40b2   :  { %4803 = vmatprep.subr.bf16.mxu0 %v5114_v2 }
0x40b5   :  { %4804 = vmatpush3.bf16.msra.mxu0 %v6200_v50 }
0x40b6   :  { %4817 = vmatprep.subr.bf16.mxu0 %v5114_v2 }
0x4183   :  { %v3323_v36 = vpop.f32.mrb[108].mxu0 }
0x4184   :  { %v3339_v52 = vadd.f32 %v3323_v36, %v6216_v62  ;;  %v4791_v0 = vpop.f32.mrb[109].mxu0  ;;  %v3330_v41 = vrot.slane %v3323_v36, 6 }
0x4185   :  { %v3326_v37 = vpop.f32.mrb[110].mxu0 }
0x4186   :  { %v3341_v32 = vrot.slane %v3339_v52, 6  ;;  %v4792_v40 = vpop.f32.mrb[111].mxu0  ;;  %v3332_v39 = vadd.f32 %v3330_v41, %v6223_v22 }
0x4188   :  { %3342 = vrot.lane.b32.xlu0 %v3341_v32, %s5117_s6  ;;  %v4279_v45 = vmul.f32 -1.442695, %v3332_v39 }
0x418a   :  { %5030 = vpow2.f32 %v4279_v45 }
0x4194   :  { %v5031_v24 = vpop.eup %5030 }
0x4195   :  { %v3336_v47 = vadd.f32 1.0, %v5031_v24 }
0x4197   :  { %5032 = vrcp.f32 %v3336_v47 }
0x41a1   :  { %v5033_v48 = vpop.eup %5032 }
0x41a2   :  { %v3352_v7 = vsub.f32 1.0, %v5033_v48  ;;  %v3361_v14 = vmul.f32 %v5033_v48, %v3359_v38 }
0x41fa   :  { %v3343_v49 = vpop.permute.xlu0 %3342 }
0x41fb   :  { %v3345_v53 = vmul.f32 %v5033_v48, %v3343_v49 }
0x41fd   :  { %3347 = vrot.lane.b32.xlu1 %v3345_v53, %s5117_s6 }
0x426f   :  { %v3348_v57 = vpop.permute.xlu1 %3347 }
0x4270   :  { %v3350_v18 = vadd.f32 %v3348_v57, %v6223_v22 }
0x4272   :  { %5034 = vtanh.f32 %v3350_v18 }
0x427c   :  { %v5035_v63 = vpop.eup %5034 }
0x427d   :  { %3354 = vrot.lane.b32.xlu0 %v5035_v63, %s5118_s9 }
0x42ef   :  { %v3355_v4 = vpop.permute.xlu0 %3354 }
0x42f0   :  { %v3357_v15 = vmul.f32 %v3355_v4, %v3352_v7 }
0x42f2   :  { %v6285_v17 = vadd.f32 %v3361_v14, %v3357_v15 }
0x42f4   :  { %v3363_v9 = vpack.c.bf16 %v6285_v17, %v6285_v17  ;;  %v3437_v30 = vrot.slane %v6285_v17, 2 }
0x42f6   :  { %v3365_v19 = vrot.slane %v3363_v9, 1 }
0x42f8   :  { %3366 = vrot.lane.b32.xlu1 %v3365_v19, %s5118_s9 }
0x436a   :  { %v3367_v20 = vpop.permute.xlu1 %3366 }
0x436b   :  { %4798 = vmatmul.mubr.msk.bf16.vlgmr.msra.gmra.mrb[112].mxu1 %vm863_vm3, %v3367_v20 }
0x436c   :  { %4810 = vmatpush3.bf16.msra.mxu1 %v6193_v56  ;;  %4813 = vmatprep.mubr.msk.bf16.mxu1 %vm5115_vm0, %v5114_v2 }
0x436d   :  { %4811 = vmatprep.subr.bf16.mxu1 %v5114_v2 }
0x4370   :  { %4812 = vmatpush3.bf16.msra.mxu1 %v6200_v50 }
0x4371   :  { %4825 = vmatprep.subr.bf16.mxu1 %v5114_v2 }
0x443e   :  { %v3405_v61 = vpop.f32.mrb[112].mxu1 }
0x443f   :  { %v3418_v34 = vadd.f32 %v3405_v61, %v6216_v62  ;;  %v4799_v60 = vpop.f32.mrb[113].mxu1  ;;  %v3411_v23 = vadd.f32 %v3405_v61, %v6223_v22 }
0x4440   :  { %v3408_v21 = vpop.f32.mrb[114].mxu1 }
0x4441   :  { %3420 = vrot.lane.b32.xlu0 %v3418_v34, %s5117_s6  ;;  %v4800_v42 = vpop.f32.mrb[115].mxu1  ;;  %v4281_v1 = vmul.f32 -1.442695, %v3411_v23 }
0x4443   :  { %5036 = vpow2.f32 %v4281_v1 }
0x444d   :  { %v5037_v25 = vpop.eup %5036 }
0x444e   :  { %v3415_v27 = vadd.f32 1.0, %v5037_v25 }
0x4450   :  { %5038 = vrcp.f32 %v3415_v27 }
0x445a   :  { %v5039_v44 = vpop.eup %5038 }
0x445b   :  { %v3430_v58 = vsub.f32 1.0, %v5039_v44  ;;  %v3439_v59 = vmul.f32 %v5039_v44, %v3437_v30 }
0x44b3   :  { %v3421_v28 = vpop.permute.xlu0 %3420 }
0x44b4   :  { %v3423_v29 = vmul.f32 %v5039_v44, %v3421_v28 }
0x44b6   :  { %3425 = vrot.lane.b32.xlu1 %v3423_v29, %s5117_s6 }
0x4528   :  { %v3426_v35 = vpop.permute.xlu1 %3425 }
0x4529   :  { %v3428_v16 = vadd.f32 %v3426_v35, %v6223_v22 }
0x452b   :  { %5040 = vtanh.f32 %v3428_v16 }
0x4535   :  { %v5041_v5 = vpop.eup %5040 }
0x4536   :  { %3432 = vrot.lane.b32.xlu0 %v5041_v5, %s5118_s9 }
0x45a8   :  { %v3433_v31 = vpop.permute.xlu0 %3432 }
0x45a9   :  { %v3435_v36 = vmul.f32 %v3433_v31, %v3430_v58 }
0x45ab   :  { %v6304_v52 = vadd.f32 %v3439_v59, %v3435_v36 }
0x45ad   :  { %v3441_v0 = vpack.c.bf16 %v6304_v52, %v6304_v52  ;;  %v3518_v15 = vrot.slane %v6304_v52, 2 }
0x45af   :  { %3443 = vrot.lane.b32.xlu1 %v3441_v0, %s5118_s9 }
0x4621   :  { %v3444_v37 = vpop.permute.xlu1 %3443 }
0x4622   :  { %4806 = vmatmul.mubr.msk.bf16.vlgmr.msra.gmra.mrb[112].mxu0 %vm863_vm3, %v3444_v37 }
0x4623   :  { %4818 = vmatpush3.bf16.msra.mxu0 %v6193_v56  ;;  %4821 = vmatprep.mubr.msk.bf16.mxu0 %vm5115_vm0, %v5114_v2 }
0x4624   :  { %4819 = vmatprep.subr.bf16.mxu0 %v5114_v2 }
0x4627   :  { %4820 = vmatpush3.bf16.msra.mxu0 %v6200_v50 }
0x46f5   :  { %v3482_v22 = vpop.f32.mrb[112].mxu0 }
0x46f6   :  { %v3498_v32 = vadd.f32 %v3482_v22, %v6216_v62  ;;  %v4807_v40 = vpop.f32.mrb[113].mxu0  ;;  %v3489_v24 = vrot.slane %v3482_v22, 2 }
0x46f7   :  { %v3485_v41 = vpop.f32.mrb[114].mxu0 }
0x46f8   :  { %v3500_v39 = vrot.slane %v3498_v32, 2  ;;  %v4808_v45 = vpop.f32.mrb[115].mxu0  ;;  %v3491_v47 = vadd.f32 %v3489_v24, %v6072_v8 }
0x46fa   :  { %3501 = vrot.lane.b32.xlu0 %v3500_v39, %s5117_s6  ;;  %v4283_v48 = vmul.f32 -1.442695, %v3491_v47 }
0x46fc   :  { %5042 = vpow2.f32 %v4283_v48 }
0x4706   :  { %v5043_v49 = vpop.eup %5042 }
0x4707   :  { %v3495_v53 = vadd.f32 1.0, %v5043_v49 }
0x4709   :  { %5044 = vrcp.f32 %v3495_v53 }
0x4713   :  { %v5045_v57 = vpop.eup %5044 }
0x4714   :  { %v3511_v14 = vsub.f32 1.0, %v5045_v57  ;;  %v3520_v19 = vmul.f32 %v5045_v57, %v3518_v15 }
0x476c   :  { %v3502_v18 = vpop.permute.xlu0 %3501 }
0x476d   :  { %v3504_v63 = vmul.f32 %v5045_v57, %v3502_v18 }
0x476f   :  { %3506 = vrot.lane.b32.xlu1 %v3504_v63, %s5117_s6 }
0x47e1   :  { %v3507_v7 = vpop.permute.xlu1 %3506 }
0x47e2   :  { %v3509_v38 = vadd.f32 %v3507_v7, %v6072_v8 }
0x47e4   :  { %5046 = vtanh.f32 %v3509_v38 }
0x47ee   :  { %v5047_v4 = vpop.eup %5046 }
0x47ef   :  { %3513 = vrot.lane.b32.xlu0 %v5047_v4, %s5118_s9 }
0x4861   :  { %v3514_v9 = vpop.permute.xlu0 %3513 }
0x4862   :  { %v3516_v20 = vmul.f32 %v3514_v9, %v3511_v14 }
0x4864   :  { %v6322_v61 = vadd.f32 %v3520_v19, %v3516_v20 }
0x4866   :  { %v3522_v34 = vpack.c.bf16 %v6322_v61, %v6322_v61  ;;  %v3600_v0 = vrot.slane %v6322_v61, 2 }
0x4868   :  { %v3524_v60 = vrot.slane %v3522_v34, 3 }
0x486a   :  { %3525 = vrot.lane.b32.xlu1 %v3524_v60, %s5118_s9 }
0x48dc   :  { %v3526_v21 = vpop.permute.xlu1 %3525 }
0x48dd   :  { %4814 = vmatmul.mubr.msk.bf16.vlgmr.msra.gmra.mrb[116].mxu1 %vm863_vm3, %v3526_v21 }
0x48de   :  { %4826 = vmatpush3.bf16.msra.mxu1 %v6193_v56  ;;  %4829 = vmatprep.mubr.msk.bf16.mxu1 %vm5115_vm0, %v5114_v2 }
0x48df   :  { %4827 = vmatprep.subr.bf16.mxu1 %v5114_v2 }
0x48e2   :  { %4828 = vmatpush3.bf16.msra.mxu1 %v6200_v50 }
0x49b0   :  { %v3564_v42 = vpop.f32.mrb[116].mxu1 }
0x49b1   :  { %v3580_v23 = vadd.f32 %v3564_v42, %v6216_v62  ;;  %v4815_v1 = vpop.f32.mrb[117].mxu1  ;;  %v3571_v28 = vrot.slane %v3564_v42, 4 }
0x49b2   :  { %v3567_v25 = vpop.f32.mrb[118].mxu1 }
0x49b3   :  { %v3582_v27 = vrot.slane %v3580_v23, 4  ;;  %v4816_v44 = vpop.f32.mrb[119].mxu1  ;;  %v3573_v29 = vadd.f32 %v3571_v28, %v6072_v8 }
0x49b5   :  { %3583 = vrot.lane.b32.xlu0 %v3582_v27, %s5117_s6  ;;  %v4285_v56 = vmul.f32 -1.442695, %v3573_v29  ;;  %v3079_v27 = vadd.f32 %v6257_v6, %v6076_v13  ;;  %v3070_v29 = vrot.slane %v6257_v6, 2 }
0x49b7   :  { %5048 = vpow2.f32 %v4285_v56  ;;  %v3081_v28 = vrot.slane %v3079_v27, 2  ;;  %v3072_v56 = vadd.f32 %v3070_v29, %v6064_v3 }
0x49c1   :  { %v5049_v35 = vpop.eup %5048 }
0x49c2   :  { %v3577_v16 = vadd.f32 1.0, %v5049_v35  ;;  %v4271_v35 = vmul.f32 -1.442695, %v3072_v56 }
0x49c4   :  { %5050 = vrcp.f32 %v3577_v16 }
0x49ce   :  { %v5051_v5 = vpop.eup %5050 }
0x49cf   :  { %v3593_v36 = vsub.f32 1.0, %v5051_v5  ;;  %v3602_v22 = vmul.f32 %v5051_v5, %v3600_v0 }
0x4a27   :  { %v3584_v58 = vpop.permute.xlu0 %3583 }
0x4a28   :  { %v3586_v50 = vmul.f32 %v5051_v5, %v3584_v58 }
0x4a2a   :  { %3588 = vrot.lane.b32.xlu1 %v3586_v50, %s5117_s6 }
0x4a9c   :  { %v3589_v30 = vpop.permute.xlu1 %3588 }
0x4a9d   :  { %v3591_v31 = vadd.f32 %v3589_v30, %v6072_v8 }
0x4a9f   :  { %5052 = vtanh.f32 %v3591_v31 }
0x4aa9   :  { %v5053_v59 = vpop.eup %5052 }
0x4aaa   :  { %3595 = vrot.lane.b32.xlu0 %v5053_v59, %s5118_s9 }
0x4b1c   :  { %v3596_v37 = vpop.permute.xlu0 %3595 }
0x4b1d   :  { %v3598_v32 = vmul.f32 %v3596_v37, %v3593_v36 }
0x4b1f   :  { %v6340_v40 = vadd.f32 %v3602_v22, %v3598_v32 }
0x4b21   :  { %v3604_v41 = vpack.c.bf16 %v6340_v40, %v6340_v40  ;;  %v3682_v60 = vrot.slane %v6340_v40, 2 }
0x4b23   :  { %v3606_v39 = vrot.slane %v3604_v41, 2 }
0x4b25   :  { %3607 = vrot.lane.b32.xlu1 %v3606_v39, %s5118_s9 }
0x4b97   :  { %v3608_v45 = vpop.permute.xlu1 %3607 }
0x4b98   :  { %4822 = vmatmul.mubr.msk.bf16.vlgmr.msra.gmra.mrb[116].mxu0 %vm863_vm3, %v3608_v45 }
0x4b99   :  { %4841 = vmatprep.mubr.msk.f32.mxu0 %vm5115_vm0, %v5114_v2  ;;  %vm3791_vm0 = vcmask 257026  }
0x4c6b   :  { %v3646_v24 = vpop.f32.mrb[116].mxu0 }
0x4c6c   :  { %v3662_v47 = vadd.f32 %v3646_v24, %v6216_v62  ;;  %v4823_v48 = vpop.f32.mrb[117].mxu0  ;;  %v3653_v18 = vrot.slane %v3646_v24, 6 }
0x4c6d   :  { %v3649_v49 = vpop.f32.mrb[118].mxu0 }
0x4c6e   :  { %v3664_v53 = vrot.slane %v3662_v47, 6  ;;  %v4824_v57 = vpop.f32.mrb[119].mxu0  ;;  %v3655_v63 = vadd.f32 %v3653_v18, %v6072_v8  ;;  %v3784_v18 = vrot.slane %v5962_v11, 4 }
0x4c70   :  { %3665 = vrot.lane.b32.xlu0 %v3664_v53, %s5117_s6  ;;  %v4287_v7 = vmul.f32 -1.442695, %v3655_v63  ;;  %v6385_v63 = vadd.f32 %v6340_v40, %v6124_v26  ;;  %v6399_v26 = vadd.f32 %v6266_v10, %v6233_v43 }
0x4c72   :  { %5054 = vpow2.f32 %v4287_v7 }
0x4c7c   :  { %v5055_v38 = vpop.eup %5054 }
0x4c7d   :  { %v3659_v4 = vadd.f32 1.0, %v5055_v38  ;;  %v6392_v38 = vadd.f32 %v6304_v52, %v6162_v12 }
0x4c7f   :  { %5056 = vrcp.f32 %v3659_v4  ;;  %v3773_v4 = vrot.slane %v5962_v11, 6 }
0x4c81   :  { %v3815_v40 = vmul.f32 %v3773_v4, %v6392_v38 }
0x4c89   :  { %v5057_v14 = vpop.eup %5056 }
0x4c8a   :  { %v3675_v34 = vsub.f32 1.0, %v5057_v14  ;;  %v3684_v42 = vmul.f32 %v5057_v14, %v3682_v60 }
0x4ce2   :  { %v3666_v15 = vpop.permute.xlu0 %3665 }
0x4ce3   :  { %v3668_v2 = vmul.f32 %v5057_v14, %v3666_v15 }
0x4ce5   :  { %3670 = vrot.lane.b32.xlu1 %v3668_v2, %s5117_s6 }
0x4d57   :  { %v3671_v9 = vpop.permute.xlu1 %3670 }
0x4d58   :  { %v3673_v19 = vadd.f32 %v3671_v9, %v6072_v8 }
0x4d5a   :  { %5058 = vtanh.f32 %v3673_v19 }
0x4d5b   :  { %5060 = vpow2.f32 %v4271_v35 }
0x4d64   :  { %v5059_v20 = vpop.eup %5058 }
0x4d65   :  { %3677 = vrot.lane.b32.xlu0 %v5059_v20, %s5118_s9  ;;  %v5061_v16 = vpop.eup %5060 }
0x4d66   :  { %v3076_v5 = vadd.f32 1.0, %v5061_v16 }
0x4d68   :  { %5062 = vrcp.f32 %v3076_v5 }
0x4d72   :  { %v6366_v50 = vpop.eup %5062 }
0x4d73   :  { %v3092_v10 = vsub.f32 1.0, %v6366_v50 }
0x4dd7   :  { %v3678_v21 = vpop.permute.xlu0 %3677 }
0x4dd8   :  { %v3680_v23 = vmul.f32 %v3678_v21, %v3675_v34 }
0x4dda   :  { %v6355_v1 = vadd.f32 %v3684_v42, %v3680_v23  ;;  %v6413_v42 = vadd.f32 %v6322_v61, %v6143_v55  ;;  %v3099_v23 = vrot.slane %v6233_v43, 6 }
0x4ddc   :  { %v3686_v25 = vpack.c.bf16 %v6355_v1, %v6355_v1  ;;  %v6379_v53 = vadd.f32 %v6355_v1, %v6105_v54  ;;  %v3760_v52 = vrot.slane %v6355_v1, 2  ;;  %v3806_v55 = vmul.f32 %v6413_v42, %v5962_v11 }
0x4dde   :  { %v3688_v44 = vrot.slane %v3686_v25, 1  ;;  %v3786_v7 = vmul.f32 %v3784_v18, %v6379_v53 }
0x4de0   :  { %3689 = vrot.lane.b32.xlu1 %v3688_v44, %s5118_s9  ;;  %v3101_v44 = vmul.f32 %v6366_v50, %v3099_v23 }
0x4de4   :  { %3082 = vrot.lane.b32.xlu1 %v3081_v28, %s5117_s6 }
0x4e52   :  { %v3690_v58 = vpop.permute.xlu1 %3689 }
0x4e53   :  { %4830 = vmatmul.mubr.msk.bf16.vlgmr.msra.gmra.mrb[120].mxu1 %vm863_vm3, %v3690_v58 }
0x4e56   :  { %v3083_v13 = vpop.permute.xlu1 %3082 }
0x4e57   :  { %v3085_v30 = vmul.f32 %v6366_v50, %v3083_v13 }
0x4e59   :  { %3087 = vrot.lane.b32.xlu1 %v3085_v30, %s5117_s6 }
0x4ecb   :  { %v3088_v31 = vpop.permute.xlu1 %3087 }
0x4ecc   :  { %v3090_v6 = vadd.f32 %v3088_v31, %v6064_v3 }
0x4ece   :  { %5064 = vtanh.f32 %v3090_v6 }
0x4ed8   :  { %v5065_v59 = vpop.eup %5064 }
0x4ed9   :  { %3094 = vrot.lane.b32.xlu1 %v5065_v59, %s5118_s9 }
0x4f26   :  { %v3728_v36 = vpop.f32.mrb[120].mxu1 }
0x4f27   :  { %v3741_v0 = vadd.f32 %v3728_v36, %v6216_v62  ;;  %v4831_v37 = vpop.f32.mrb[121].mxu1  ;;  %v3734_v41 = vadd.f32 %v3728_v36, %v6072_v8 }
0x4f28   :  { %v3731_v22 = vpop.f32.mrb[122].mxu1 }
0x4f29   :  { %3743 = vrot.lane.b32.xlu0 %v3741_v0, %s5117_s6  ;;  %v4832_v32 = vpop.f32.mrb[123].mxu1  ;;  %v4289_v39 = vmul.f32 -1.442695, %v3734_v41 }
0x4f2b   :  { %5066 = vpow2.f32 %v4289_v39 }
0x4f35   :  { %v5067_v45 = vpop.eup %5066 }
0x4f36   :  { %v3738_v24 = vadd.f32 1.0, %v5067_v45 }
0x4f38   :  { %5068 = vrcp.f32 %v3738_v24 }
0x4f42   :  { %v5069_v3 = vpop.eup %5068 }
0x4f43   :  { %v3753_v12 = vsub.f32 1.0, %v5069_v3  ;;  %v3762_v2 = vmul.f32 %v5069_v3, %v3760_v52 }
0x4f4b   :  { %v3095_v20 = vpop.permute.xlu1 %3094 }
0x4f4c   :  { %v3097_v1 = vmul.f32 %v3095_v20, %v3092_v10 }
0x4f4e   :  { %v3102_v29 = vadd.f32 %v3101_v44, %v3097_v1 }
0x4f50   :  { %v6428_v43 = vadd.f32 %v6238_v51, %v3102_v29 }
0x4f52   :  { %v3839_v56 = vmul.f32 %v6428_v43, %v5962_v11 }
0x4f9b   :  { %v3744_v47 = vpop.permute.xlu0 %3743 }
0x4f9c   :  { %v3746_v48 = vmul.f32 %v5069_v3, %v3744_v47 }
0x4f9e   :  { %3748 = vrot.lane.b32.xlu0 %v3746_v48, %s5117_s6 }
0x5010   :  { %v3749_v49 = vpop.permute.xlu0 %3748 }
0x5011   :  { %v3751_v62 = vadd.f32 %v3749_v49, %v6072_v8  ;;  %v3795_v8 = vrot.slane %v5962_v11, 2 }
0x5013   :  { %5070 = vtanh.f32 %v3751_v62  ;;  %v3797_v54 = vmul.f32 %v3795_v8, %v6385_v63  ;;  %v3831_v14 = vmul.f32 %v3795_v8, %v6399_v26 }
0x501d   :  { %v5071_v57 = vpop.eup %5070 }
0x501e   :  { %3755 = vrot.lane.b32.xlu0 %v5071_v57, %s5118_s9 }
0x5022   :  { %3788 = vrot.lane.b32.xlu0 %v3786_v7, %s5118_s9 }
0x5026   :  { %3799 = vrot.lane.b32.xlu0 %v3797_v54, %s5118_s9 }
0x502a   :  { %3817 = vrot.lane.b32.xlu0 %v3815_v40, %s5118_s9 }
0x502e   :  { %3833 = vrot.lane.b32.xlu0 %v3831_v14, %s5118_s9 }
0x5090   :  { %v3756_v15 = vpop.permute.xlu0 %3755 }
0x5091   :  { %v3758_v9 = vmul.f32 %v3756_v15, %v3753_v12 }
0x5093   :  { %v3763_v19 = vadd.f32 %v3762_v2, %v3758_v9 }
0x5094   :  { %v3789_v34 = vpop.permute.xlu0 %3788 }
0x5095   :  { %v6408_v60 = vadd.f32 %v3763_v19, %v6086_v33  ;;  %v3792_v21 = vsel %vm3791_vm0, %v3789_v34, 0.0  ;;  %v6422_v33 = vadd.f32 %v6285_v17, %v6181_v46 }
0x5096   :  { %3793 = vadd.xlane.f32.xlu0 %v3792_v21 }
0x5097   :  { %v3775_v25 = vmul.f32 %v3773_v4, %v6408_v60  ;;  %v3823_v61 = vmul.f32 %v3784_v18, %v6422_v33 }
0x5098   :  { %v3800_v27 = vpop.permute.xlu0 %3799 }
0x5099   :  { %v3803_v28 = vsel %vm3802_vm1, %v3800_v27, 0.0  ;;  %3777 = vrot.lane.b32.xlu1 %v3775_v25, %s5118_s9 }
0x509a   :  { %3804 = vadd.xlane.f32.xlu0 %v3803_v28 }
0x509c   :  { %v3818_v46 = vpop.permute.xlu0 %3817 }
0x509d   :  { %3808 = vrot.lane.b32.xlu1 %v3806_v55, %s5118_s9  ;;  %v3820_v5 = vsel %vm3780_vm10, %v3818_v46, 0.0 }
0x50a0   :  { %v3834_v51 = vpop.permute.xlu0 %3833 }
0x50a1   :  { %3825 = vrot.lane.b32.xlu1 %v3823_v61, %s5118_s9  ;;  %v3836_v13 = vsel %vm3802_vm1, %v3834_v51, 0.0 }
0x50a5   :  { %3841 = vrot.lane.b32.xlu1 %v3839_v56, %s5118_s9 }
0x510b   :  { %v3778_v17 = vpop.permute.xlu1 %3777 }
0x510c   :  { %v3781_v35 = vsel %vm3780_vm10, %v3778_v17, 0.0 }
0x510d   :  { %3782 = vadd.xlane.f32.xlu1 %v3781_v35 }
0x510f   :  { %v3809_v16 = vpop.permute.xlu1 %3808 }
0x5110   :  { %v3812_v58 = vsel %vm3811_vm11, %v3809_v16, 0.0 }
0x5111   :  { %3821 = vadd.xlane.f32.xlu1 %v3820_v5  ;;  %3813 = vadd.xlane.f32.xlu0 %v3812_v58 }
0x5113   :  { %v3826_v50 = vpop.permute.xlu1 %3825 }
0x5114   :  { %v3828_v30 = vsel %vm3791_vm0, %v3826_v50, 0.0 }
0x5115   :  { %3837 = vadd.xlane.f32.xlu1 %v3836_v13  ;;  %3829 = vadd.xlane.f32.xlu0 %v3828_v30 }
0x5117   :  { %v3842_v11 = vpop.permute.xlu1 %3841 }
0x5118   :  { %v3844_v31 = vsel %vm3811_vm11, %v3842_v11, 0.0 }
0x5119   :  { %3845 = vadd.xlane.f32.xlu0 %v3844_v31 }
0x5123   :  { %v3794_v6 = vpop.xlane.xlu0 %3793 }
0x5124   :  { %v3848_v59 = vrot.slane %v3794_v6, 2 }
0x5127   :  { %v3805_v36 = vpop.xlane.xlu0 %3804 }
0x5128   :  { %v3852_v22 = vrot.slane %v3805_v36, 4 }
0x519a   :  { %v3783_v0 = vpop.xlane.xlu1 %3782 }
0x519b   :  { %v3850_v37 = vmax.f32 %v3783_v0, %v3848_v59 }
0x519d   :  { %v3854_v39 = vmax.f32 %v3850_v37, %v3852_v22 }
0x519e   :  { %v3814_v32 = vpop.xlane.xlu0 %3813  ;;  %v3822_v41 = vpop.xlane.xlu1 %3821 }
0x519f   :  { %v3856_v45 = vrot.slane %v3814_v32, 6 }
0x51a1   :  { %v3858_v24 = vmax.f32 %v3854_v39, %v3856_v45 }
0x51a2   :  { %v3830_v3 = vpop.xlane.xlu0 %3829  ;;  %v3838_v47 = vpop.xlane.xlu1 %3837 }
0x51a3   :  { %v3859_v48 = vmax.f32 %v3858_v24, %v3822_v41  ;;  %v3861_v49 = vrot.slane %v3830_v3, 2  ;;  %v3865_v57 = vrot.slane %v3838_v47, 4 }
0x51a5   :  { %v3863_v62 = vmax.f32 %v3859_v48, %v3861_v49 }
0x51a6   :  { %v3846_v18 = vpop.xlane.xlu0 %3845 }
0x51a7   :  { %v3867_v7 = vmax.f32 %v3863_v62, %v3865_v57  ;;  %v3869_v8 = vrot.slane %v3846_v18, 6 }
0x51a9   :  { %v3871_v54 = vmax.f32 %v3867_v7, %v3869_v8  ;;  %v4066_v7 = vld [vmem:[%s6495_s21 + $0x8] sm:$0xff]  ;;  %v4067_v8 = vld [vmem:[%s6495_s21 + $0x10] sm:$0xff] }
0x51ab   :  { %v3872_v4 = vsub.f32 %v3783_v0, %v3871_v54  ;;  %v3876_v40 = vrot.slane %v3871_v54, 6  ;;  %v3881_v14 = vrot.slane %v3871_v54, 4  ;;  %v3886_v12 = vrot.slane %v3871_v54, 2 }
0x51ac   :  { %v3891_v21 = vsub.f32 %v3822_v41, %v3871_v54  ;;  %v5119_v54 = vmov 0.0|0.0  }
0x51ad   :  { %v3873_v52 = vmul.f32 1.442695, %v3872_v4  ;;  %v3878_v15 = vsub.f32 %v3794_v6, %v3876_v40  ;;  %v3883_v2 = vsub.f32 %v3805_v36, %v3881_v14  ;;  %v3888_v9 = vsub.f32 %v3814_v32, %v3886_v12  ;;  %4844 = vmatprep.subr.bf16.mxu0 %v5119_v54 }
0x51ae   :  { %v3894_v10 = vsub.f32 %v3830_v3, %v3876_v40  ;;  %v3897_v23 = vsub.f32 %v3838_v47, %v3881_v14  ;;  %v3900_v25 = vsub.f32 %v3846_v18, %v3886_v12  ;;  %v3892_v27 = vmul.f32 1.442695, %v3891_v21  ;;  %v4065_v18 = vld [vmem:[%s6495_s21] sm:$0xff]  ;;  %v4068_v40 = vld [vmem:[%s6495_s21 + $0x18] sm:$0xff]  ;;  %s5120_s21 = smov [#allocation3]  }
0x51af   :  { %v3879_v19 = vmul.f32 1.442695, %v3878_v15  ;;  %v3884_v20 = vmul.f32 1.442695, %v3883_v2  ;;  %v3889_v34 = vmul.f32 1.442695, %v3888_v9  ;;  %5072 = vpow2.f32 %v3873_v52 }
0x51b0   :  { %v3895_v1 = vmul.f32 1.442695, %v3894_v10  ;;  %v3898_v44 = vmul.f32 1.442695, %v3897_v23  ;;  %v3901_v28 = vmul.f32 1.442695, %v3900_v25  ;;  %v4845_v4 = vpack.c.bf16 %v4066_v7, %v4065_v18 }
0x51b1   :  { %5074 = vpow2.f32 %v3879_v19  ;;  %v4848_v14 = vpack.c.bf16 %v4068_v40, %v4067_v8  ;;  %v3930_v12 = vlaneseq  ;;  %s4161_s2 = sshll.u32 %s5120_s21, 4  ;;  %s4162_s2 = int_to_ptr.vmem [resolvable:$true] %s4161_s2 }
0x51b2   :  { %5076 = vpow2.f32 %v3884_v20  ;;  %4846 = vmatpush3.bf16.msra.mxu0 %v4845_v4  ;;  %s5090_s15 = scalar_lea.vmem %s4162_s2, 32  ;;  %p5095_p1 = scmp.lt.s32.totalorder %s4162_s2, %s4162_s2 }
0x51b3   :  { %5078 = vpow2.f32 %v3889_v34  ;;  %4847 = vmatprep.subr.bf16.mxu0 %v5119_v54  ;;  %v3931_v52 = vand.u32 127, %v3930_v12  ;;  %p5091_p0 = scmp.ne.s32.totalorder %s4162_s2, %s5090_s15  ;;  %p5096_p2 = scmp.lt.s32.totalorder %s5090_s15, %s5090_s15 }
0x51b4   :  { %5080 = vpow2.f32 %v3895_v1 }
0x51b5   :  { %5082 = vpow2.f32 %v3892_v27  ;;  %vm3947_vm12 = vcmp.eq.s32.totalorder %v3931_v52, 1  ;;  %vm3966_vm13 = vcmp.eq.s32.totalorder %v3931_v52, 2  ;;  %vm3933_vm14 = vcmp.eq.s32.totalorder %v3931_v52, 0  ;;  %p5097_p3 = por %p5096_p2, %p5095_p1 }
0x51b6   :  { %5084 = vpow2.f32 %v3898_v44  ;;  %4849 = vmatpush3.bf16.msra.mxu0 %v4848_v14  ;;  %vm3985_vm2 = vcmp.eq.s32.totalorder %v3931_v52, 3  ;;  %vm4013_vm4 = vcmp.eq.s32.totalorder %v3931_v52, 5  ;;  %vm4002_vm5 = vcmp.eq.s32.totalorder %v3931_v52, 4 }
0x51b7   :  { %5086 = vpow2.f32 %v3901_v28  ;;  %vm4030_vm6 = vcmp.eq.s32.totalorder %v3931_v52, 6  ;;  %vm4047_vm7 = vcmp.eq.s32.totalorder %v3931_v52, 7  ;;  %p5098_p4 = pnand %p5097_p3, %p5091_p0 }
0x51b9   :  { %v5073_v29 = vpop.eup %5072 }
0x51bb   :  { %v5075_v55 = vpop.eup %5074 }
0x51bc   :  { %v5077_v61 = vpop.eup %5076  ;;  %v3904_v56 = vrot.slane %v5075_v55, 2 }
0x51bd   :  { %v5079_v46 = vpop.eup %5078  ;;  %v3908_v35 = vrot.slane %v5077_v61, 4 }
0x51be   :  { %v3906_v17 = vadd.f32 %v5073_v29, %v3904_v56  ;;  %v3912_v5 = vrot.slane %v5079_v46, 6  ;;  %v5081_v58 = vpop.eup %5080 }
0x51bf   :  { %v5083_v51 = vpop.eup %5082  ;;  %v3917_v11 = vrot.slane %v5081_v58, 2 }
0x51c0   :  { %v3910_v16 = vadd.f32 %v3908_v35, %v3906_v17  ;;  %v5085_v13 = vpop.eup %5084 }
0x51c1   :  { %v5087_v31 = vpop.eup %5086  ;;  %v3921_v59 = vrot.slane %v5085_v13, 4 }
0x51c2   :  { %v3914_v50 = vadd.f32 %v3912_v5, %v3910_v16  ;;  %v3925_v0 = vrot.slane %v5087_v31, 6 }
0x51c4   :  { %v3915_v30 = vadd.f32 %v5083_v51, %v3914_v50 }
0x51c6   :  { %v3919_v6 = vadd.f32 %v3917_v11, %v3915_v30 }
0x51c8   :  { %v3923_v36 = vadd.f32 %v3921_v59, %v3919_v6 }
0x51ca   :  { %v3927_v37 = vadd.f32 %v3925_v0, %v3923_v36 }
0x51cc   :  { %5088 = vrcp.f32 %v3927_v37 }
0x51d6   :  { %v5089_v22 = vpop.eup %5088 }
0x51d7   :  { %v4001_v32 = vmul.f32 %v5089_v22, %v5083_v51  ;;  %v3932_v41 = vmul.f32 %v5089_v22, %v5073_v29  ;;  %v3944_v39 = vrot.slane %v5089_v22, 6  ;;  %v3963_v24 = vrot.slane %v5089_v22, 4 }
0x51d8   :  { %v3982_v47 = vrot.slane %v5089_v22, 2 }
0x51d9   :  { %4005 = vperm.xlu1 %4858, %v4001_v32   ;;  %3936 = vperm.xlu0 %4857, %v3932_v41   ;;  %v3946_v45 = vmul.f32 %v5075_v55, %v3944_v39  ;;  %v3965_v3 = vmul.f32 %v5077_v61, %v3963_v24  ;;  %v4012_v49 = vmul.f32 %v5081_v58, %v3944_v39 }
0x51da   :  { %v3984_v48 = vmul.f32 %v5079_v46, %v3982_v47  ;;  %v4029_v62 = vmul.f32 %v5085_v13, %v3963_v24  ;;  %v4046_v57 = vmul.f32 %v5087_v31, %v3982_v47 }
0x51dd   :  { %3950 = vperm.xlu1 %4858, %v3946_v45  }
0x51e1   :  { %3969 = vperm.xlu1 %4858, %v3965_v3  }
0x51e5   :  { %3988 = vperm.xlu1 %4858, %v3984_v48  }
0x51e9   :  { %4016 = vperm.xlu1 %4858, %v4012_v49  }
0x51ed   :  { %4033 = vperm.xlu1 %4858, %v4029_v62  }
0x51f1   :  { %4050 = vperm.xlu1 %4858, %v4046_v57  }
0x5258   :  { %v4006_v15 = vpop.permute.xlu1 %4005  ;;  %v3937_v20 = vpop.permute.xlu0 %3936 }
0x5259   :  { %v3939_v27 = vsel %vm3933_vm14, %v3937_v20, 0.0  ;;  %v3941_v44 = vmul.f32 %v3937_v20, %v6408_v60  ;;  %v4008_v60 = vsel %vm4002_vm5, %v4006_v15, 0.0  ;;  %v4010_v13 = vmul.f32 %v4006_v15, %v6392_v38 }
0x525c   :  { %v3951_v2 = vpop.permute.xlu1 %3950 }
0x525d   :  { %v3953_v9 = vsel %vm3947_vm12, %v3951_v2, 0.0  ;;  %v3958_v19 = vmul.f32 %v3951_v2, %v6379_v53 }
0x525e   :  { %v3955_v34 = vrot.slane %v3953_v9, 2 }
0x525f   :  { %v3960_v21 = vrot.slane %v3958_v19, 2 }
0x5260   :  { %v3970_v10 = vpop.permute.xlu1 %3969  ;;  %v3957_v29 = vadd.f32 %v3955_v34, %v3939_v27 }
0x5261   :  { %v3972_v23 = vsel %vm3966_vm13, %v3970_v10, 0.0  ;;  %v3977_v1 = vmul.f32 %v3970_v10, %v6385_v63  ;;  %v3962_v61 = vadd.f32 %v3960_v21, %v3941_v44 }
0x5262   :  { %v3974_v25 = vrot.slane %v3972_v23, 4 }
0x5263   :  { %v3979_v28 = vrot.slane %v3977_v1, 4 }
0x5264   :  { %v3989_v55 = vpop.permute.xlu1 %3988  ;;  %v3976_v46 = vadd.f32 %v3974_v25, %v3957_v29 }
0x5265   :  { %v3991_v56 = vsel %vm3985_vm2, %v3989_v55, 0.0  ;;  %v3996_v53 = vmul.f32 %v3989_v55, %v6413_v42  ;;  %v3981_v35 = vadd.f32 %v3979_v28, %v3962_v61 }
0x5266   :  { %v3993_v17 = vrot.slane %v3991_v56, 6 }
0x5267   :  { %v3998_v16 = vrot.slane %v3996_v53, 6 }
0x5268   :  { %v3995_v5 = vadd.f32 %v3993_v17, %v3976_v46  ;;  %v4017_v63 = vpop.permute.xlu1 %4016 }
0x5269   :  { %v4000_v58 = vadd.f32 %v3998_v16, %v3981_v35  ;;  %v4019_v51 = vsel %vm4013_vm4, %v4017_v63, 0.0  ;;  %v4024_v50 = vmul.f32 %v4017_v63, %v6422_v33 }
0x526a   :  { %v4009_v30 = vadd.f32 %v4008_v60, %v3995_v5  ;;  %v4021_v11 = vrot.slane %v4019_v51, 2 }
0x526b   :  { %v4011_v42 = vadd.f32 %v4010_v13, %v4000_v58  ;;  %v4026_v6 = vrot.slane %v4024_v50, 2 }
0x526c   :  { %v4034_v31 = vpop.permute.xlu1 %4033  ;;  %v4023_v22 = vadd.f32 %v4021_v11, %v4009_v30 }
0x526d   :  { %v4036_v59 = vsel %vm4030_vm6, %v4034_v31, 0.0  ;;  %v4041_v36 = vmul.f32 %v4034_v31, %v6399_v26  ;;  %v4028_v41 = vadd.f32 %v4026_v6, %v4011_v42 }
0x526e   :  { %v4038_v0 = vrot.slane %v4036_v59, 4 }
0x526f   :  { %v4043_v37 = vrot.slane %v4041_v36, 4 }
0x5270   :  { %v4051_v32 = vpop.permute.xlu1 %4050  ;;  %v4040_v45 = vadd.f32 %v4038_v0, %v4023_v22 }
0x5271   :  { %v4053_v39 = vsel %vm4047_vm7, %v4051_v32, 0.0  ;;  %v4058_v33 = vmul.f32 %v4051_v32, %v6428_v43  ;;  %v4045_v38 = vadd.f32 %v4043_v37, %v4028_v41 }
0x5272   :  { %v4055_v24 = vrot.slane %v4053_v39, 6 }
0x5273   :  { %v4060_v3 = vrot.slane %v4058_v33, 6 }
0x5274   :  { %v4057_v47 = vadd.f32 %v4055_v24, %v4040_v45 }
0x5275   :  { %v4062_v48 = vadd.f32 %v4060_v3, %v4045_v38 }
0x5276   :  { %4064 = vst.msk [vmem:[#allocation3] sm:$0x3] %vm4063_vm8, %v4057_v47 }
0x5277   :  { %4077 = vrot.lane.b32.xlu1 %v4062_v48, %s5118_s9 }
0x52e9   :  { %v4078_v26 = vpop.permute.xlu1 %4077 }
0x52ea   :  { %4842 = vmatmul.mubr.msk.f32.vlgmr.msra.gmra.mrb[120].mxu0 %vm863_vm3, %v4078_v26 }
0x52eb   :  { %5101 = shalt.err (!%p5098_p4)
}
0x52ec   :  { %s5102_s10 = scalar_lea.hbm %s6498_s24, 32 }
0x52ed   :  { %p5103_p5 = scmp.ne.s32.totalorder %s6498_s24, %s5102_s10  ;;  %p5106_p6 = scmp.lt.u32.totalorder %s5102_s10, %s6498_s24 }
0x52ef   :  { %p5108_p7 = pnand %p5106_p6, %p5103_p5 }
0x52f1   :  { %5111 = shalt.err (!%p5108_p7)
}
0x52f2   :  { %4164 = dma.vmem_to_hbm [thread:$0]  %s4162_s2, 32, %s6498_s24, [#allocation4]   ;;  %v4290_v43 = vld [vmem:[#allocation2] ss:$0 sm:$0xff]  ;;  %vm4151_vm9 = vcmask 1024  }
0x53bd   :  { %v4147_v49 = vpop.f32.mrb[120].mxu0 }
0x53be   :  { %v4148_v62 = vadd.f32 %v4290_v43, %v4147_v49  ;;  %v4843_v57 = vpop.f32.mrb[121].mxu0 }
0x53c0   :  { %4152 = vst.msk [vmem:[%s6497_s23] sm:$0x3] %vm4151_vm9, %v4148_v62 }
0x53c1   :  { %5112 = dma.done.wait [#allocation4], 32  }
0x53c2   :  { %5113 = vsyncadd [#allocation4], 4294967264 }
0x53c3   :  { %4170 = vsyncpa [#allocation4], 1 }

</bundles_post_ra>
